<compile_context>
chip_gen: v5e
topology: v5e:2x2
jax: 0.10.0
libtpu: 0.0.40
codegen_flags: <defaults>
</compile_context>

<pallas_src>
import functools

import jax
import jax.numpy as jnp
from jax.experimental import pallas as pl
from jax.experimental.pallas import tpu as pltpu


def _round_up(x, m):
    return ((x + m - 1) // m) * m


# ---------------------------------------------------------------------------
# Fused sensor-MLP + GRU recurrence kernel.
#   grid = (batch_blocks, time_blocks); the hidden state persists in a VMEM
#   scratch across the (sequential) time axis and is reset at t == 0.
# ---------------------------------------------------------------------------
def _sensor_gru_kernel(x_ref, w0_ref, b0_ref, w1_ref, b1_ref, wt_ref, bt_ref,
                       wm_ref, h_out_ref, h_state, enc, *, memsz_p, steps):
    M = memsz_p
    bb = h_state.shape[0]
    D = x_ref.shape[-1]

    @pl.when(pl.program_id(1) == 0)
    def _():
        h_state[...] = jnp.zeros_like(h_state)

    # ---- sensor MLP over the whole (bb*steps, D) time block: one wide MXU
    # pass, f32 accumulation; bias/ReLU in f32 (v5e-friendly).  The encoded
    # block (with the folded mem2mem bias riding on bt) goes to a VMEM
    # scratch so it never stays live in vregs across the recurrence. ----
    x2d = x_ref[...].reshape(bb * steps, D).astype(w0_ref.dtype)
    h = jnp.dot(x2d, w0_ref[...], preferred_element_type=jnp.float32)
    h = jnp.maximum(h + b0_ref[...], 0.0)
    h = jnp.dot(h.astype(w1_ref.dtype), w1_ref[...],
                preferred_element_type=jnp.float32)
    h = jnp.maximum(h + b1_ref[...], 0.0)
    e = jnp.dot(h.astype(wt_ref.dtype), wt_ref[...],
                preferred_element_type=jnp.float32)
    enc[...] = (e + bt_ref[...]).reshape(bb, steps, 3 * M)

    # ---- GRU recurrence, statically unrolled over the block's timesteps.
    # Carry stays f32; each step is stored directly (lane-dense, MP % 128).
    # The (MP, 3*MP) recurrent weight is re-read from VMEM per dot instead of
    # being held in vregs across the unrolled loop.
    # TODO(synk): for very large mem_sz (MP >= ~2048) the full w_m2m block no
    # longer fits v7x's 64 MiB VMEM; K/N-tile it (or use matmul_push_rhs to
    # keep the RHS MXU-resident) instead of raising vmem_limit_bytes.
    h = h_state[...]                                            # (bb, MP) f32
    for j in range(steps):                                      # static unroll
        xt = enc[:, j, :]                                       # (bb, 3*MP) f32
        h_proj = jnp.dot(h.astype(wm_ref.dtype), wm_ref[...],
                         preferred_element_type=jnp.float32)
        # Gate slices start at 128-lane-aligned offsets -> whole-vreg views.
        x_a, x_c, x_h = xt[:, 0:M], xt[:, M:2 * M], xt[:, 2 * M:3 * M]
        h_a, h_c, h_h = h_proj[:, 0:M], h_proj[:, M:2 * M], h_proj[:, 2 * M:3 * M]
        a = jax.nn.sigmoid(x_a + h_a)                           # BRC=False branch
        c = jax.nn.sigmoid(x_c + h_c)
        h = (1.0 - c) * h + c * jnp.tanh(x_h + a * h_h)
        h_out_ref[:, j, :] = h.astype(h_out_ref.dtype)          # per-step dense store
    h_state[...] = h


def sensor_gru(x_seq, sensor_params, w_m2m, memsz_p, out_dtype, *, time_block=128):
    """x_seq (B, L, D) raw input -> h_seq (B, L, MP).  Sensor encode fused."""
    B, L, D = x_seq.shape
    mp = memsz_p
    three_m = 3 * mp

    # Batch blocking: give both v7x TensorCores recurrence work when the batch
    # is large enough (>= 8 batch sublanes per core); otherwise one block.
    bb = B // 2 if (B >= 16 and B % 16 == 0) else B
    nb = B // bb

    # Timesteps per grid step: big (amortize per-step pipeline overhead), but
    # keep the f32 encode scratch modest so the config stays v7x-safe.
    tb = max(16, (time_block // 16) * 16)
    tt_cap = max(16, ((6 << 20) // (bb * three_m * 4)) // 16 * 16)
    tb = min(tb, tt_cap)
    if _round_up(L, 8) <= tb:
        tt = _round_up(L, 8)          # whole (padded) sequence in one block
    else:
        tt = tb                       # multiple of 16 -> bf16/f32 block legal
    l_pad = _round_up(L, tt)
    if l_pad != L:
        # zero-pad time so padded steps compute on finite data; their outputs
        # are sliced off below and the carry is never reused afterwards.
        x_seq = jnp.pad(x_seq, ((0, 0), (0, l_pad - L), (0, 0)))

    w0, b0, w1, b1, wt, bt = sensor_params
    kernel = functools.partial(_sensor_gru_kernel, memsz_p=mp, steps=tt)
    h_seq = pl.pallas_call(
        kernel,
        out_shape=jax.ShapeDtypeStruct((B, l_pad, mp), out_dtype),
        grid_spec=pltpu.PrefetchScalarGridSpec(
            num_scalar_prefetch=0,
            grid=(nb, l_pad // tt),
            in_specs=[
                pl.BlockSpec((bb, tt, D), lambda b, t: (b, t, 0)),
                pl.BlockSpec(w0.shape, lambda b, t: (0, 0)),
                pl.BlockSpec(b0.shape, lambda b, t: (0, 0)),
                pl.BlockSpec(w1.shape, lambda b, t: (0, 0)),
                pl.BlockSpec(b1.shape, lambda b, t: (0, 0)),
                pl.BlockSpec(wt.shape, lambda b, t: (0, 0)),
                pl.BlockSpec(bt.shape, lambda b, t: (0, 0)),
                pl.BlockSpec(w_m2m.shape, lambda b, t: (0, 0)),
            ],
            out_specs=pl.BlockSpec((bb, tt, mp), lambda b, t: (b, t, 0)),
            scratch_shapes=[
                pltpu.VMEM((bb, mp), jnp.float32),            # recurrent carry
                pltpu.VMEM((bb, tt, three_m), jnp.float32),   # encoded block
            ],
        ),
        compiler_params=pltpu.CompilerParams(
            dimension_semantics=("parallel", "arbitrary"),    # batch || , time seq
            vmem_limit_bytes=32 * 1024 * 1024,                # v7x-safe budget
        ),
    )(x_seq, w0, b0, w1, b1, wt, bt, w_m2m)
    return h_seq[:, :L, :] if l_pad != L else h_seq


# ---------------------------------------------------------------------------
# Actuator MLP kernel: relu(x@W0+b0) -> relu(.@W1+b1) -> .@Wt+bt
# Row-tiled 1-D "parallel" grid; output last dim padded to 128 lanes.
# ---------------------------------------------------------------------------
def _mlp_kernel(x_ref, w0_ref, b0_ref, w1_ref, b1_ref, wt_ref, bt_ref, o_ref):
    h = jnp.dot(x_ref[...].astype(w0_ref.dtype), w0_ref[...],
                preferred_element_type=jnp.float32)
    h = jnp.maximum(h + b0_ref[...], 0.0)
    h = jnp.dot(h.astype(w1_ref.dtype), w1_ref[...],
                preferred_element_type=jnp.float32)
    h = jnp.maximum(h + b1_ref[...], 0.0)
    o = jnp.dot(h.astype(wt_ref.dtype), wt_ref[...],
                preferred_element_type=jnp.float32) + bt_ref[...]
    o_ref[...] = o.astype(o_ref.dtype)


def _pick_tile_rows(n, tile_rows):
    """>= 2 grid steps when useful (both v7x TCs get work); 16-row granularity
    keeps bf16/f32 blocks legal."""
    if n <= 16:
        return n
    if n > tile_rows:
        return tile_rows
    return min(_round_up(pl.cdiv(n, 2), 16), _round_up(n, 16))


def mlp_apply(x2d, params, out_dtype, *, tile_rows=2048):
    n, d = x2d.shape
    w0, b0, w1, b1, wt, bt = params
    out_dim = wt.shape[-1]
    tile_rows = max(16, (tile_rows // 16) * 16)
    tm = _pick_tile_rows(n, tile_rows)
    return pl.pallas_call(
        _mlp_kernel,
        out_shape=jax.ShapeDtypeStruct((n, out_dim), out_dtype),
        grid_spec=pltpu.PrefetchScalarGridSpec(
            num_scalar_prefetch=0,
            grid=(pl.cdiv(n, tm),),
            in_specs=[
                pl.BlockSpec((tm, d), lambda i: (i, 0)),
                pl.BlockSpec(w0.shape, lambda i: (0, 0)),
                pl.BlockSpec(b0.shape, lambda i: (0, 0)),
                pl.BlockSpec(w1.shape, lambda i: (0, 0)),
                pl.BlockSpec(b1.shape, lambda i: (0, 0)),
                pl.BlockSpec(wt.shape, lambda i: (0, 0)),
                pl.BlockSpec(bt.shape, lambda i: (0, 0)),
            ],
            out_specs=pl.BlockSpec((tm, out_dim), lambda i: (i, 0)),
        ),
        compiler_params=pltpu.CompilerParams(
            dimension_semantics=("parallel",),
            vmem_limit_bytes=32 * 1024 * 1024,
        ),
    )(x2d, w0, b0, w1, b1, wt, bt)


# ---------------------------------------------------------------------------
# Parameter construction (torch.nn.Linear default init), padded to the
# 128-lane-aligned internal layout.  Padded rows/cols are zero -> numerics on
# real lanes are identical to the unpadded model.
# ---------------------------------------------------------------------------
def _linear_params(key, in_dim, out_dim):
    kw, kb = jax.random.split(key)
    bound = 1.0 / (in_dim ** 0.5)
    w = jax.random.uniform(kw, (in_dim, out_dim), jnp.float32, -bound, bound)
    b = jax.random.uniform(kb, (1, out_dim), jnp.float32, -bound, bound)
    return w, b


def _mlp_params(key, in_dim, state_dim, hidden):
    assert len(hidden) == 2, "this script fuses a 2-hidden-layer MLP kernel"
    k0, k1, kt = jax.random.split(key, 3)
    w0, b0 = _linear_params(k0, in_dim, hidden[0])
    w1, b1 = _linear_params(k1, hidden[0], hidden[1])
    wt, bt = _linear_params(kt, hidden[1], state_dim)
    return (w0, b0, w1, b1, wt, bt)


def _pad_cols_gated(w, memsz, mp):
    """(r, 3*memsz) -> (r, 3*mp): gate g moved to lanes [g*mp, g*mp + memsz)."""
    out = jnp.zeros((w.shape[0], 3 * mp), w.dtype)
    for g in range(3):
        out = out.at[:, g * mp:g * mp + memsz].set(w[:, g * memsz:(g + 1) * memsz])
    return out


def init_dyn_gru_params(key, input_dim, mem_sz, output_dim, hidden,
                        compute_dtype=jnp.bfloat16):
    mp = _round_up(mem_sz, 128)
    out_p = _round_up(output_dim, 128)
    ks, ka, km = jax.random.split(key, 3)

    # sensor: input_dim -> 3*mem_sz, tail padded to gate-aligned 3*MP columns
    s_w0, s_b0, s_w1, s_b1, s_wt, s_bt = _mlp_params(ks, input_dim, 3 * mem_sz, hidden)
    s_wt = _pad_cols_gated(s_wt, mem_sz, mp)
    s_bt = _pad_cols_gated(s_bt, mem_sz, mp)

    # GRU recurrent weight; its bias is FOLDED into the sensor tail bias
    # (gates compute x + h@W + b, so b can ride on the encoded input).
    w_m2m, b_m2m = _linear_params(km, mem_sz, 3 * mem_sz)
    w_pad = jnp.zeros((mp, 3 * mp), jnp.float32).at[:mem_sz].set(
        _pad_cols_gated(w_m2m, mem_sz, mp))
    s_bt = s_bt + _pad_cols_gated(b_m2m, mem_sz, mp)

    # actuator: mem_sz -> output_dim; first-layer rows padded to MP, tail
    # columns padded to a 128-lane-dense output (sliced in the wrapper).
    a_w0, a_b0, a_w1, a_b1, a_wt, a_bt = _mlp_params(ka, mem_sz, output_dim, hidden)
    a_w0 = jnp.zeros((mp, a_w0.shape[1]), a_w0.dtype).at[:mem_sz].set(a_w0)
    a_wt = jnp.zeros((a_wt.shape[0], out_p), a_wt.dtype).at[:, :output_dim].set(a_wt)
    a_bt = jnp.zeros((1, out_p), a_bt.dtype).at[:, :output_dim].set(a_bt)

    cd = compute_dtype                                 # weights in compute dtype
    sensor = (s_w0.astype(cd), s_b0, s_w1.astype(cd), s_b1, s_wt.astype(cd), s_bt)
    actuator = (a_w0.astype(cd), a_b0, a_w1.astype(cd), a_b1, a_wt.astype(cd), a_bt)
    return {"sensor": sensor, "actuator": actuator, "w_m2m": w_pad.astype(cd)}


# ---------------------------------------------------------------------------
# DynGRU forward.  Note: the recurrent carry is kept in f32 but cast to the
# compute dtype for the MXU dot each step; use compute_dtype=jnp.float32 at
# init for bit-exact f32 over long sequences.
# ---------------------------------------------------------------------------
def dyn_gru_forward(x_seq, params, mem_sz, output_dim, time_block=128):
    del mem_sz  # real memory lanes live in [0, mem_sz) of the padded width
    B, L, _ = x_seq.shape
    mp = params["w_m2m"].shape[0]                      # padded memory width
    cd = params["w_m2m"].dtype
    h_seq = sensor_gru(x_seq, params["sensor"], params["w_m2m"], mp,
                       out_dtype=cd, time_block=time_block)      # (B, L, MP)
    out = mlp_apply(h_seq.reshape(B * L, mp), params["actuator"],
                    out_dtype=jnp.float32)                        # (B*L, out_p)
    return out[:, :output_dim].reshape(B, L, output_dim)


if __name__ == "__main__":
    B, L = 2, 8
    INPUT_DIM = 4
    MEM_SZ = 32
    OUTPUT_DIM = 8
    HIDDEN = [32, 32]

    key = jax.random.PRNGKey(0)
    k_params, k_x = jax.random.split(key)
    params = init_dyn_gru_params(k_params, INPUT_DIM, MEM_SZ, OUTPUT_DIM, HIDDEN)
    x_seq = jax.random.normal(k_x, (B, L, INPUT_DIM), jnp.float32)

    fwd = jax.jit(functools.partial(dyn_gru_forward, mem_sz=MEM_SZ,
                                    output_dim=OUTPUT_DIM))
    out = fwd(x_seq, params)
    jax.block_until_ready(out)
    assert out.shape == (B, L, OUTPUT_DIM)
    print("KERNEL_OK")
</pallas_src>

<mosaic_0001>
module attributes {stable_mosaic.version = 11 : i64} {
  func.func @_mlp_kernel(%arg0: i32, %arg1: memref<16x128xbf16, #tpu.memory_space<vmem>>, %arg2: memref<128x32xbf16, #tpu.memory_space<vmem>>, %arg3: memref<1x32xf32, #tpu.memory_space<vmem>>, %arg4: memref<32x32xbf16, #tpu.memory_space<vmem>>, %arg5: memref<1x32xf32, #tpu.memory_space<vmem>>, %arg6: memref<32x128xbf16, #tpu.memory_space<vmem>>, %arg7: memref<1x128xf32, #tpu.memory_space<vmem>>, %arg8: memref<16x128xf32, #tpu.memory_space<vmem>>) attributes {dimension_semantics = [#tpu.dimension_semantics<parallel>], iteration_bounds = array<i64: 1>, scalar_prefetch = 0 : i64, scratch_operands = 0 : i64, tpu.core_type = #tpu.core_type<tc>, window_params = [{transform_indices = @transform_0, window_bounds = array<i64: 16, 128>}, {pipeline_mode = #tpu.pipeline_mode<synchronous>, transform_indices = @transform_1, window_bounds = array<i64: 128, 32>}, {pipeline_mode = #tpu.pipeline_mode<synchronous>, transform_indices = @transform_2, window_bounds = array<i64: 1, 32>}, {pipeline_mode = #tpu.pipeline_mode<synchronous>, transform_indices = @transform_3, window_bounds = array<i64: 32, 32>}, {pipeline_mode = #tpu.pipeline_mode<synchronous>, transform_indices = @transform_4, window_bounds = array<i64: 1, 32>}, {pipeline_mode = #tpu.pipeline_mode<synchronous>, transform_indices = @transform_5, window_bounds = array<i64: 32, 128>}, {pipeline_mode = #tpu.pipeline_mode<synchronous>, transform_indices = @transform_6, window_bounds = array<i64: 1, 128>}, {transform_indices = @transform_7, window_bounds = array<i64: 16, 128>}]} {
    %c0 = arith.constant 0 : index
    %c0_0 = arith.constant 0 : index
    %0 = vector.load %arg1[%c0, %c0_0] : memref<16x128xbf16, #tpu.memory_space<vmem>>, vector<16x128xbf16>
    %c0_1 = arith.constant 0 : index
    %c0_2 = arith.constant 0 : index
    %1 = vector.load %arg2[%c0_1, %c0_2] : memref<128x32xbf16, #tpu.memory_space<vmem>>, vector<128x32xbf16>
    %cst = arith.constant dense<0.000000e+00> : vector<16x32xf32>
    %2 = tpu.matmul %0, %1, %cst {dimension_numbers = #tpu.dot_dimension_numbers<[1], [0], [0], [1], [0, 0, 1, 1], [], []>} : vector<16x128xbf16>, vector<128x32xbf16>, vector<16x32xf32> -> vector<16x32xf32>
    %c0_3 = arith.constant 0 : index
    %c0_4 = arith.constant 0 : index
    %3 = vector.load %arg3[%c0_3, %c0_4] : memref<1x32xf32, #tpu.memory_space<vmem>>, vector<1x32xf32>
    %4 = vector.broadcast %3 : vector<1x32xf32> to vector<16x32xf32>
    %5 = arith.addf %2, %4 : vector<16x32xf32>
    %cst_5 = arith.constant 0.000000e+00 : f32
    %6 = vector.broadcast %cst_5 : f32 to vector<16x32xf32>
    %7 = arith.maximumf %5, %6 : vector<16x32xf32>
    %8 = arith.truncf %7 : vector<16x32xf32> to vector<16x32xbf16>
    %c0_6 = arith.constant 0 : index
    %c0_7 = arith.constant 0 : index
    %9 = vector.load %arg4[%c0_6, %c0_7] : memref<32x32xbf16, #tpu.memory_space<vmem>>, vector<32x32xbf16>
    %cst_8 = arith.constant dense<0.000000e+00> : vector<16x32xf32>
    %10 = tpu.matmul %8, %9, %cst_8 {dimension_numbers = #tpu.dot_dimension_numbers<[1], [0], [0], [1], [0, 0, 1, 1], [], []>} : vector<16x32xbf16>, vector<32x32xbf16>, vector<16x32xf32> -> vector<16x32xf32>
    %c0_9 = arith.constant 0 : index
    %c0_10 = arith.constant 0 : index
    %11 = vector.load %arg5[%c0_9, %c0_10] : memref<1x32xf32, #tpu.memory_space<vmem>>, vector<1x32xf32>
    %12 = vector.broadcast %11 : vector<1x32xf32> to vector<16x32xf32>
    %13 = arith.addf %10, %12 : vector<16x32xf32>
    %cst_11 = arith.constant 0.000000e+00 : f32
    %14 = vector.broadcast %cst_11 : f32 to vector<16x32xf32>
    %15 = arith.maximumf %13, %14 : vector<16x32xf32>
    %16 = arith.truncf %15 : vector<16x32xf32> to vector<16x32xbf16>
    %c0_12 = arith.constant 0 : index
    %c0_13 = arith.constant 0 : index
    %17 = vector.load %arg6[%c0_12, %c0_13] : memref<32x128xbf16, #tpu.memory_space<vmem>>, vector<32x128xbf16>
    %cst_14 = arith.constant dense<0.000000e+00> : vector<16x128xf32>
    %18 = tpu.matmul %16, %17, %cst_14 {dimension_numbers = #tpu.dot_dimension_numbers<[1], [0], [0], [1], [0, 0, 1, 1], [], []>} : vector<16x32xbf16>, vector<32x128xbf16>, vector<16x128xf32> -> vector<16x128xf32>
    %c0_15 = arith.constant 0 : index
    %c0_16 = arith.constant 0 : index
    %19 = vector.load %arg7[%c0_15, %c0_16] : memref<1x128xf32, #tpu.memory_space<vmem>>, vector<1x128xf32>
    %20 = vector.broadcast %19 : vector<1x128xf32> to vector<16x128xf32>
    %21 = arith.addf %18, %20 : vector<16x128xf32>
    %c0_17 = arith.constant 0 : index
    %c0_18 = arith.constant 0 : index
    %22 = vector.load %arg8[%c0_17, %c0_18] : memref<16x128xf32, #tpu.memory_space<vmem>>, vector<16x128xf32>
    tpu.vector_store %arg8[%c0_17, %c0_18], %21 {strides = array<i32>} : memref<16x128xf32, #tpu.memory_space<vmem>>, vector<16x128xf32>,
    return
  }
  func.func @transform_0(%arg0: i32) -> (i32, i32) {
    %c0_i32 = arith.constant 0 : i32
    %c0_i32_0 = arith.constant 0 : i32
    return %arg0, %c0_i32 : i32, i32
  }
  func.func @transform_1(%arg0: i32) -> (i32, i32) {
    %c0_i32 = arith.constant 0 : i32
    %c0_i32_0 = arith.constant 0 : i32
    %c0_i32_1 = arith.constant 0 : i32
    return %c0_i32, %c0_i32_0 : i32, i32
  }
  func.func @transform_2(%arg0: i32) -> (i32, i32) {
    %c0_i32 = arith.constant 0 : i32
    %c0_i32_0 = arith.constant 0 : i32
    %c0_i32_1 = arith.constant 0 : i32
    return %c0_i32, %c0_i32_0 : i32, i32
  }
  func.func @transform_3(%arg0: i32) -> (i32, i32) {
    %c0_i32 = arith.constant 0 : i32
    %c0_i32_0 = arith.constant 0 : i32
    %c0_i32_1 = arith.constant 0 : i32
    return %c0_i32, %c0_i32_0 : i32, i32
  }
  func.func @transform_4(%arg0: i32) -> (i32, i32) {
    %c0_i32 = arith.constant 0 : i32
    %c0_i32_0 = arith.constant 0 : i32
    %c0_i32_1 = arith.constant 0 : i32
    return %c0_i32, %c0_i32_0 : i32, i32
  }
  func.func @transform_5(%arg0: i32) -> (i32, i32) {
    %c0_i32 = arith.constant 0 : i32
    %c0_i32_0 = arith.constant 0 : i32
    %c0_i32_1 = arith.constant 0 : i32
    return %c0_i32, %c0_i32_0 : i32, i32
  }
  func.func @transform_6(%arg0: i32) -> (i32, i32) {
    %c0_i32 = arith.constant 0 : i32
    %c0_i32_0 = arith.constant 0 : i32
    %c0_i32_1 = arith.constant 0 : i32
    return %c0_i32, %c0_i32_0 : i32, i32
  }
  func.func @transform_7(%arg0: i32) -> (i32, i32) {
    %c0_i32 = arith.constant 0 : i32
    %c0_i32_0 = arith.constant 0 : i32
    return %arg0, %c0_i32 : i32, i32
  }
}

module attributes {stable_mosaic.version = 11 : i64} {
  func.func @_sensor_gru_kernel(%arg0: i32, %arg1: i32, %arg2: memref<2x8x4xf32, #tpu.memory_space<vmem>>, %arg3: memref<4x32xbf16, #tpu.memory_space<vmem>>, %arg4: memref<1x32xf32, #tpu.memory_space<vmem>>, %arg5: memref<32x32xbf16, #tpu.memory_space<vmem>>, %arg6: memref<1x32xf32, #tpu.memory_space<vmem>>, %arg7: memref<32x384xbf16, #tpu.memory_space<vmem>>, %arg8: memref<1x384xf32, #tpu.memory_space<vmem>>, %arg9: memref<128x384xbf16, #tpu.memory_space<vmem>>, %arg10: memref<2x8x128xbf16, #tpu.memory_space<vmem>>, %arg11: memref<2x128xf32, #tpu.memory_space<vmem>>, %arg12: memref<2x8x384xf32, #tpu.memory_space<vmem>>) attributes {dimension_semantics = [#tpu.dimension_semantics<parallel>, #tpu.dimension_semantics<arbitrary>], iteration_bounds = array<i64: 1, 1>, scalar_prefetch = 0 : i64, scratch_operands = 2 : i64, tpu.core_type = #tpu.core_type<tc>, window_params = [{transform_indices = @transform_0, window_bounds = array<i64: 2, 8, 4>}, {pipeline_mode = #tpu.pipeline_mode<synchronous>, transform_indices = @transform_1, window_bounds = array<i64: 4, 32>}, {pipeline_mode = #tpu.pipeline_mode<synchronous>, transform_indices = @transform_2, window_bounds = array<i64: 1, 32>}, {pipeline_mode = #tpu.pipeline_mode<synchronous>, transform_indices = @transform_3, window_bounds = array<i64: 32, 32>}, {pipeline_mode = #tpu.pipeline_mode<synchronous>, transform_indices = @transform_4, window_bounds = array<i64: 1, 32>}, {pipeline_mode = #tpu.pipeline_mode<synchronous>, transform_indices = @transform_5, window_bounds = array<i64: 32, 384>}, {pipeline_mode = #tpu.pipeline_mode<synchronous>, transform_indices = @transform_6, window_bounds = array<i64: 1, 384>}, {pipeline_mode = #tpu.pipeline_mode<synchronous>, transform_indices = @transform_7, window_bounds = array<i64: 128, 384>}, {transform_indices = @transform_8, window_bounds = array<i64: 2, 8, 128>}]} {
    %c0_i32 = arith.constant 0 : i32
    %0 = arith.cmpi eq, %arg1, %c0_i32 : i32
    %1 = arith.extui %0 : i1 to i32
    %c0_i32_0 = arith.constant 0 : i32
    %2 = arith.cmpi ne, %1, %c0_i32_0 : i32
    scf.if %2 {
      %cst_115 = arith.constant 0.000000e+00 : f32
      %311 = vector.broadcast %cst_115 : f32 to vector<2x128xf32>
      %c0_116 = arith.constant 0 : index
      %c0_117 = arith.constant 0 : index
      %312 = vector.load %arg11[%c0_116, %c0_117] : memref<2x128xf32, #tpu.memory_space<vmem>>, vector<2x128xf32>
      tpu.vector_store %arg11[%c0_116, %c0_117], %311 {strides = array<i32>} : memref<2x128xf32, #tpu.memory_space<vmem>>, vector<2x128xf32>,
    } else {
    }
    %c0 = arith.constant 0 : index
    %c0_1 = arith.constant 0 : index
    %c0_2 = arith.constant 0 : index
    %3 = vector.load %arg2[%c0, %c0_1, %c0_2] : memref<2x8x4xf32, #tpu.memory_space<vmem>>, vector<2x8x4xf32>
    %4 = vector.shape_cast %3 : vector<2x8x4xf32> to vector<16x4xf32>
    %5 = arith.truncf %4 : vector<16x4xf32> to vector<16x4xbf16>
    %c0_3 = arith.constant 0 : index
    %c0_4 = arith.constant 0 : index
    %6 = vector.load %arg3[%c0_3, %c0_4] : memref<4x32xbf16, #tpu.memory_space<vmem>>, vector<4x32xbf16>
    %cst = arith.constant dense<0.000000e+00> : vector<16x32xf32>
    %7 = tpu.matmul %5, %6, %cst {dimension_numbers = #tpu.dot_dimension_numbers<[1], [0], [0], [1], [0, 0, 1, 1], [], []>} : vector<16x4xbf16>, vector<4x32xbf16>, vector<16x32xf32> -> vector<16x32xf32>
    %c0_5 = arith.constant 0 : index
    %c0_6 = arith.constant 0 : index
    %8 = vector.load %arg4[%c0_5, %c0_6] : memref<1x32xf32, #tpu.memory_space<vmem>>, vector<1x32xf32>
    %9 = vector.broadcast %8 : vector<1x32xf32> to vector<16x32xf32>
    %10 = arith.addf %7, %9 : vector<16x32xf32>
    %cst_7 = arith.constant 0.000000e+00 : f32
    %11 = vector.broadcast %cst_7 : f32 to vector<16x32xf32>
    %12 = arith.maximumf %10, %11 : vector<16x32xf32>
    %13 = arith.truncf %12 : vector<16x32xf32> to vector<16x32xbf16>
    %c0_8 = arith.constant 0 : index
    %c0_9 = arith.constant 0 : index
    %14 = vector.load %arg5[%c0_8, %c0_9] : memref<32x32xbf16, #tpu.memory_space<vmem>>, vector<32x32xbf16>
    %cst_10 = arith.constant dense<0.000000e+00> : vector<16x32xf32>
    %15 = tpu.matmul %13, %14, %cst_10 {dimension_numbers = #tpu.dot_dimension_numbers<[1], [0], [0], [1], [0, 0, 1, 1], [], []>} : vector<16x32xbf16>, vector<32x32xbf16>, vector<16x32xf32> -> vector<16x32xf32>
    %c0_11 = arith.constant 0 : index
    %c0_12 = arith.constant 0 : index
    %16 = vector.load %arg6[%c0_11, %c0_12] : memref<1x32xf32, #tpu.memory_space<vmem>>, vector<1x32xf32>
    %17 = vector.broadcast %16 : vector<1x32xf32> to vector<16x32xf32>
    %18 = arith.addf %15, %17 : vector<16x32xf32>
    %cst_13 = arith.constant 0.000000e+00 : f32
    %19 = vector.broadcast %cst_13 : f32 to vector<16x32xf32>
    %20 = arith.maximumf %18, %19 : vector<16x32xf32>
    %21 = arith.truncf %20 : vector<16x32xf32> to vector<16x32xbf16>
    %c0_14 = arith.constant 0 : index
    %c0_15 = arith.constant 0 : index
    %22 = vector.load %arg7[%c0_14, %c0_15] : memref<32x384xbf16, #tpu.memory_space<vmem>>, vector<32x384xbf16>
    %cst_16 = arith.constant dense<0.000000e+00> : vector<16x384xf32>
    %23 = tpu.matmul %21, %22, %cst_16 {dimension_numbers = #tpu.dot_dimension_numbers<[1], [0], [0], [1], [0, 0, 1, 1], [], []>} : vector<16x32xbf16>, vector<32x384xbf16>, vector<16x384xf32> -> vector<16x384xf32>
    %c0_17 = arith.constant 0 : index
    %c0_18 = arith.constant 0 : index
    %24 = vector.load %arg8[%c0_17, %c0_18] : memref<1x384xf32, #tpu.memory_space<vmem>>, vector<1x384xf32>
    %25 = vector.broadcast %24 : vector<1x384xf32> to vector<16x384xf32>
    %26 = arith.addf %23, %25 : vector<16x384xf32>
    %27 = vector.shape_cast %26 : vector<16x384xf32> to vector<2x8x384xf32>
    %c0_19 = arith.constant 0 : index
    %c0_20 = arith.constant 0 : index
    %c0_21 = arith.constant 0 : index
    %28 = vector.load %arg12[%c0_19, %c0_20, %c0_21] : memref<2x8x384xf32, #tpu.memory_space<vmem>>, vector<2x8x384xf32>
    tpu.vector_store %arg12[%c0_19, %c0_20, %c0_21], %27 {strides = array<i32>} : memref<2x8x384xf32, #tpu.memory_space<vmem>>, vector<2x8x384xf32>,
    %c0_22 = arith.constant 0 : index
    %c0_23 = arith.constant 0 : index
    %29 = vector.load %arg11[%c0_22, %c0_23] : memref<2x128xf32, #tpu.memory_space<vmem>>, vector<2x128xf32>
    %c0_24 = arith.constant 0 : index
    %c0_25 = arith.constant 0 : index
    %c0_26 = arith.constant 0 : index
    %30 = vector.load %arg12[%c0_24, %c0_25, %c0_26] : memref<2x8x384xf32, #tpu.memory_space<vmem>>, vector<2x1x384xf32>
    %31 = vector.shape_cast %30 : vector<2x1x384xf32> to vector<2x384xf32>
    %32 = arith.truncf %29 : vector<2x128xf32> to vector<2x128xbf16>
    %c0_27 = arith.constant 0 : index
    %c0_28 = arith.constant 0 : index
    %33 = vector.load %arg9[%c0_27, %c0_28] : memref<128x384xbf16, #tpu.memory_space<vmem>>, vector<128x384xbf16>
    %cst_29 = arith.constant dense<0.000000e+00> : vector<2x384xf32>
    %34 = tpu.matmul %32, %33, %cst_29 {dimension_numbers = #tpu.dot_dimension_numbers<[1], [0], [0], [1], [0, 0, 1, 1], [], []>} : vector<2x128xbf16>, vector<128x384xbf16>, vector<2x384xf32> -> vector<2x384xf32>
    %35 = vector.extract_strided_slice %31 {offsets = [0, 0], sizes = [2, 128], strides = [1, 1]} : vector<2x384xf32> to vector<2x128xf32>
    %36 = vector.extract_strided_slice %31 {offsets = [0, 128], sizes = [2, 128], strides = [1, 1]} : vector<2x384xf32> to vector<2x128xf32>
    %37 = vector.extract_strided_slice %31 {offsets = [0, 256], sizes = [2, 128], strides = [1, 1]} : vector<2x384xf32> to vector<2x128xf32>
    %38 = vector.extract_strided_slice %34 {offsets = [0, 0], sizes = [2, 128], strides = [1, 1]} : vector<2x384xf32> to vector<2x128xf32>
    %39 = vector.extract_strided_slice %34 {offsets = [0, 128], sizes = [2, 128], strides = [1, 1]} : vector<2x384xf32> to vector<2x128xf32>
    %40 = vector.extract_strided_slice %34 {offsets = [0, 256], sizes = [2, 128], strides = [1, 1]} : vector<2x384xf32> to vector<2x128xf32>
    %41 = arith.addf %35, %38 : vector<2x128xf32>
    %42 = arith.negf %41 : vector<2x128xf32>
    %43 = math.exp %42 : vector<2x128xf32>
    %cst_30 = arith.constant 1.000000e+00 : f32
    %44 = vector.broadcast %cst_30 : f32 to vector<2x128xf32>
    %45 = arith.addf %44, %43 : vector<2x128xf32>
    %46 = arith.divf %44, %45 : vector<2x128xf32>
    %47 = arith.addf %36, %39 : vector<2x128xf32>
    %48 = arith.negf %47 : vector<2x128xf32>
    %49 = math.exp %48 : vector<2x128xf32>
    %cst_31 = arith.constant 1.000000e+00 : f32
    %50 = vector.broadcast %cst_31 : f32 to vector<2x128xf32>
    %51 = arith.addf %50, %49 : vector<2x128xf32>
    %52 = arith.divf %50, %51 : vector<2x128xf32>
    %cst_32 = arith.constant 1.000000e+00 : f32
    %53 = vector.broadcast %cst_32 : f32 to vector<2x128xf32>
    %54 = arith.subf %53, %52 : vector<2x128xf32>
    %55 = arith.mulf %54, %29 : vector<2x128xf32>
    %56 = arith.mulf %46, %40 : vector<2x128xf32>
    %57 = arith.addf %37, %56 : vector<2x128xf32>
    %58 = math.tanh %57 : vector<2x128xf32>
    %59 = arith.mulf %52, %58 : vector<2x128xf32>
    %60 = arith.addf %55, %59 : vector<2x128xf32>
    %61 = arith.truncf %60 : vector<2x128xf32> to vector<2x128xbf16>
    %c0_33 = arith.constant 0 : index
    %c0_34 = arith.constant 0 : index
    %c0_35 = arith.constant 0 : index
    %62 = vector.load %arg10[%c0_33, %c0_34, %c0_35] : memref<2x8x128xbf16, #tpu.memory_space<vmem>>, vector<2x1x128xbf16>
    %63 = vector.shape_cast %62 : vector<2x1x128xbf16> to vector<2x128xbf16>
    %64 = vector.shape_cast %61 : vector<2x128xbf16> to vector<2x1x128xbf16>
    tpu.vector_store %arg10[%c0_33, %c0_34, %c0_35], %64 {strides = array<i32>} : memref<2x8x128xbf16, #tpu.memory_space<vmem>>, vector<2x1x128xbf16>,
    %c0_36 = arith.constant 0 : index
    %c1 = arith.constant 1 : index
    %c0_37 = arith.constant 0 : index
    %65 = vector.load %arg12[%c0_36, %c1, %c0_37] : memref<2x8x384xf32, #tpu.memory_space<vmem>>, vector<2x1x384xf32>
    %66 = vector.shape_cast %65 : vector<2x1x384xf32> to vector<2x384xf32>
    %67 = arith.truncf %60 : vector<2x128xf32> to vector<2x128xbf16>
    %c0_38 = arith.constant 0 : index
    %c0_39 = arith.constant 0 : index
    %68 = vector.load %arg9[%c0_38, %c0_39] : memref<128x384xbf16, #tpu.memory_space<vmem>>, vector<128x384xbf16>
    %cst_40 = arith.constant dense<0.000000e+00> : vector<2x384xf32>
    %69 = tpu.matmul %67, %68, %cst_40 {dimension_numbers = #tpu.dot_dimension_numbers<[1], [0], [0], [1], [0, 0, 1, 1], [], []>} : vector<2x128xbf16>, vector<128x384xbf16>, vector<2x384xf32> -> vector<2x384xf32>
    %70 = vector.extract_strided_slice %66 {offsets = [0, 0], sizes = [2, 128], strides = [1, 1]} : vector<2x384xf32> to vector<2x128xf32>
    %71 = vector.extract_strided_slice %66 {offsets = [0, 128], sizes = [2, 128], strides = [1, 1]} : vector<2x384xf32> to vector<2x128xf32>
    %72 = vector.extract_strided_slice %66 {offsets = [0, 256], sizes = [2, 128], strides = [1, 1]} : vector<2x384xf32> to vector<2x128xf32>
    %73 = vector.extract_strided_slice %69 {offsets = [0, 0], sizes = [2, 128], strides = [1, 1]} : vector<2x384xf32> to vector<2x128xf32>
    %74 = vector.extract_strided_slice %69 {offsets = [0, 128], sizes = [2, 128], strides = [1, 1]} : vector<2x384xf32> to vector<2x128xf32>
    %75 = vector.extract_strided_slice %69 {offsets = [0, 256], sizes = [2, 128], strides = [1, 1]} : vector<2x384xf32> to vector<2x128xf32>
    %76 = arith.addf %70, %73 : vector<2x128xf32>
    %77 = arith.negf %76 : vector<2x128xf32>
    %78 = math.exp %77 : vector<2x128xf32>
    %cst_41 = arith.constant 1.000000e+00 : f32
    %79 = vector.broadcast %cst_41 : f32 to vector<2x128xf32>
    %80 = arith.addf %79, %78 : vector<2x128xf32>
    %81 = arith.divf %79, %80 : vector<2x128xf32>
    %82 = arith.addf %71, %74 : vector<2x128xf32>
    %83 = arith.negf %82 : vector<2x128xf32>
    %84 = math.exp %83 : vector<2x128xf32>
    %cst_42 = arith.constant 1.000000e+00 : f32
    %85 = vector.broadcast %cst_42 : f32 to vector<2x128xf32>
    %86 = arith.addf %85, %84 : vector<2x128xf32>
    %87 = arith.divf %85, %86 : vector<2x128xf32>
    %cst_43 = arith.constant 1.000000e+00 : f32
    %88 = vector.broadcast %cst_43 : f32 to vector<2x128xf32>
    %89 = arith.subf %88, %87 : vector<2x128xf32>
    %90 = arith.mulf %89, %60 : vector<2x128xf32>
    %91 = arith.mulf %81, %75 : vector<2x128xf32>
    %92 = arith.addf %72, %91 : vector<2x128xf32>
    %93 = math.tanh %92 : vector<2x128xf32>
    %94 = arith.mulf %87, %93 : vector<2x128xf32>
    %95 = arith.addf %90, %94 : vector<2x128xf32>
    %96 = arith.truncf %95 : vector<2x128xf32> to vector<2x128xbf16>
    %c0_44 = arith.constant 0 : index
    %c1_45 = arith.constant 1 : index
    %c0_46 = arith.constant 0 : index
    %97 = vector.load %arg10[%c0_44, %c1_45, %c0_46] : memref<2x8x128xbf16, #tpu.memory_space<vmem>>, vector<2x1x128xbf16>
    %98 = vector.shape_cast %97 : vector<2x1x128xbf16> to vector<2x128xbf16>
    %99 = vector.shape_cast %96 : vector<2x128xbf16> to vector<2x1x128xbf16>
    tpu.vector_store %arg10[%c0_44, %c1_45, %c0_46], %99 {strides = array<i32>} : memref<2x8x128xbf16, #tpu.memory_space<vmem>>, vector<2x1x128xbf16>,
    %c0_47 = arith.constant 0 : index
    %c2 = arith.constant 2 : index
    %c0_48 = arith.constant 0 : index
    %100 = vector.load %arg12[%c0_47, %c2, %c0_48] : memref<2x8x384xf32, #tpu.memory_space<vmem>>, vector<2x1x384xf32>
    %101 = vector.shape_cast %100 : vector<2x1x384xf32> to vector<2x384xf32>
    %102 = arith.truncf %95 : vector<2x128xf32> to vector<2x128xbf16>
    %c0_49 = arith.constant 0 : index
    %c0_50 = arith.constant 0 : index
    %103 = vector.load %arg9[%c0_49, %c0_50] : memref<128x384xbf16, #tpu.memory_space<vmem>>, vector<128x384xbf16>
    %cst_51 = arith.constant dense<0.000000e+00> : vector<2x384xf32>
    %104 = tpu.matmul %102, %103, %cst_51 {dimension_numbers = #tpu.dot_dimension_numbers<[1], [0], [0], [1], [0, 0, 1, 1], [], []>} : vector<2x128xbf16>, vector<128x384xbf16>, vector<2x384xf32> -> vector<2x384xf32>
    %105 = vector.extract_strided_slice %101 {offsets = [0, 0], sizes = [2, 128], strides = [1, 1]} : vector<2x384xf32> to vector<2x128xf32>
    %106 = vector.extract_strided_slice %101 {offsets = [0, 128], sizes = [2, 128], strides = [1, 1]} : vector<2x384xf32> to vector<2x128xf32>
    %107 = vector.extract_strided_slice %101 {offsets = [0, 256], sizes = [2, 128], strides = [1, 1]} : vector<2x384xf32> to vector<2x128xf32>
    %108 = vector.extract_strided_slice %104 {offsets = [0, 0], sizes = [2, 128], strides = [1, 1]} : vector<2x384xf32> to vector<2x128xf32>
    %109 = vector.extract_strided_slice %104 {offsets = [0, 128], sizes = [2, 128], strides = [1, 1]} : vector<2x384xf32> to vector<2x128xf32>
    %110 = vector.extract_strided_slice %104 {offsets = [0, 256], sizes = [2, 128], strides = [1, 1]} : vector<2x384xf32> to vector<2x128xf32>
    %111 = arith.addf %105, %108 : vector<2x128xf32>
    %112 = arith.negf %111 : vector<2x128xf32>
    %113 = math.exp %112 : vector<2x128xf32>
    %cst_52 = arith.constant 1.000000e+00 : f32
    %114 = vector.broadcast %cst_52 : f32 to vector<2x128xf32>
    %115 = arith.addf %114, %113 : vector<2x128xf32>
    %116 = arith.divf %114, %115 : vector<2x128xf32>
    %117 = arith.addf %106, %109 : vector<2x128xf32>
    %118 = arith.negf %117 : vector<2x128xf32>
    %119 = math.exp %118 : vector<2x128xf32>
    %cst_53 = arith.constant 1.000000e+00 : f32
    %120 = vector.broadcast %cst_53 : f32 to vector<2x128xf32>
    %121 = arith.addf %120, %119 : vector<2x128xf32>
    %122 = arith.divf %120, %121 : vector<2x128xf32>
    %cst_54 = arith.constant 1.000000e+00 : f32
    %123 = vector.broadcast %cst_54 : f32 to vector<2x128xf32>
    %124 = arith.subf %123, %122 : vector<2x128xf32>
    %125 = arith.mulf %124, %95 : vector<2x128xf32>
    %126 = arith.mulf %116, %110 : vector<2x128xf32>
    %127 = arith.addf %107, %126 : vector<2x128xf32>
    %128 = math.tanh %127 : vector<2x128xf32>
    %129 = arith.mulf %122, %128 : vector<2x128xf32>
    %130 = arith.addf %125, %129 : vector<2x128xf32>
    %131 = arith.truncf %130 : vector<2x128xf32> to vector<2x128xbf16>
    %c0_55 = arith.constant 0 : index
    %c2_56 = arith.constant 2 : index
    %c0_57 = arith.constant 0 : index
    %132 = vector.load %arg10[%c0_55, %c2_56, %c0_57] : memref<2x8x128xbf16, #tpu.memory_space<vmem>>, vector<2x1x128xbf16>
    %133 = vector.shape_cast %132 : vector<2x1x128xbf16> to vector<2x128xbf16>
    %134 = vector.shape_cast %131 : vector<2x128xbf16> to vector<2x1x128xbf16>
    tpu.vector_store %arg10[%c0_55, %c2_56, %c0_57], %134 {strides = array<i32>} : memref<2x8x128xbf16, #tpu.memory_space<vmem>>, vector<2x1x128xbf16>,
    %c0_58 = arith.constant 0 : index
    %c3 = arith.constant 3 : index
    %c0_59 = arith.constant 0 : index
    %135 = vector.load %arg12[%c0_58, %c3, %c0_59] : memref<2x8x384xf32, #tpu.memory_space<vmem>>, vector<2x1x384xf32>
    %136 = vector.shape_cast %135 : vector<2x1x384xf32> to vector<2x384xf32>
    %137 = arith.truncf %130 : vector<2x128xf32> to vector<2x128xbf16>
    %c0_60 = arith.constant 0 : index
    %c0_61 = arith.constant 0 : index
    %138 = vector.load %arg9[%c0_60, %c0_61] : memref<128x384xbf16, #tpu.memory_space<vmem>>, vector<128x384xbf16>
    %cst_62 = arith.constant dense<0.000000e+00> : vector<2x384xf32>
    %139 = tpu.matmul %137, %138, %cst_62 {dimension_numbers = #tpu.dot_dimension_numbers<[1], [0], [0], [1], [0, 0, 1, 1], [], []>} : vector<2x128xbf16>, vector<128x384xbf16>, vector<2x384xf32> -> vector<2x384xf32>
    %140 = vector.extract_strided_slice %136 {offsets = [0, 0], sizes = [2, 128], strides = [1, 1]} : vector<2x384xf32> to vector<2x128xf32>
    %141 = vector.extract_strided_slice %136 {offsets = [0, 128], sizes = [2, 128], strides = [1, 1]} : vector<2x384xf32> to vector<2x128xf32>
    %142 = vector.extract_strided_slice %136 {offsets = [0, 256], sizes = [2, 128], strides = [1, 1]} : vector<2x384xf32> to vector<2x128xf32>
    %143 = vector.extract_strided_slice %139 {offsets = [0, 0], sizes = [2, 128], strides = [1, 1]} : vector<2x384xf32> to vector<2x128xf32>
    %144 = vector.extract_strided_slice %139 {offsets = [0, 128], sizes = [2, 128], strides = [1, 1]} : vector<2x384xf32> to vector<2x128xf32>
    %145 = vector.extract_strided_slice %139 {offsets = [0, 256], sizes = [2, 128], strides = [1, 1]} : vector<2x384xf32> to vector<2x128xf32>
    %146 = arith.addf %140, %143 : vector<2x128xf32>
    %147 = arith.negf %146 : vector<2x128xf32>
    %148 = math.exp %147 : vector<2x128xf32>
    %cst_63 = arith.constant 1.000000e+00 : f32
    %149 = vector.broadcast %cst_63 : f32 to vector<2x128xf32>
    %150 = arith.addf %149, %148 : vector<2x128xf32>
    %151 = arith.divf %149, %150 : vector<2x128xf32>
    %152 = arith.addf %141, %144 : vector<2x128xf32>
    %153 = arith.negf %152 : vector<2x128xf32>
    %154 = math.exp %153 : vector<2x128xf32>
    %cst_64 = arith.constant 1.000000e+00 : f32
    %155 = vector.broadcast %cst_64 : f32 to vector<2x128xf32>
    %156 = arith.addf %155, %154 : vector<2x128xf32>
    %157 = arith.divf %155, %156 : vector<2x128xf32>
    %cst_65 = arith.constant 1.000000e+00 : f32
    %158 = vector.broadcast %cst_65 : f32 to vector<2x128xf32>
    %159 = arith.subf %158, %157 : vector<2x128xf32>
    %160 = arith.mulf %159, %130 : vector<2x128xf32>
    %161 = arith.mulf %151, %145 : vector<2x128xf32>
    %162 = arith.addf %142, %161 : vector<2x128xf32>
    %163 = math.tanh %162 : vector<2x128xf32>
    %164 = arith.mulf %157, %163 : vector<2x128xf32>
    %165 = arith.addf %160, %164 : vector<2x128xf32>
    %166 = arith.truncf %165 : vector<2x128xf32> to vector<2x128xbf16>
    %c0_66 = arith.constant 0 : index
    %c3_67 = arith.constant 3 : index
    %c0_68 = arith.constant 0 : index
    %167 = vector.load %arg10[%c0_66, %c3_67, %c0_68] : memref<2x8x128xbf16, #tpu.memory_space<vmem>>, vector<2x1x128xbf16>
    %168 = vector.shape_cast %167 : vector<2x1x128xbf16> to vector<2x128xbf16>
    %169 = vector.shape_cast %166 : vector<2x128xbf16> to vector<2x1x128xbf16>
    tpu.vector_store %arg10[%c0_66, %c3_67, %c0_68], %169 {strides = array<i32>} : memref<2x8x128xbf16, #tpu.memory_space<vmem>>, vector<2x1x128xbf16>,
    %c0_69 = arith.constant 0 : index
    %c4 = arith.constant 4 : index
    %c0_70 = arith.constant 0 : index
    %170 = vector.load %arg12[%c0_69, %c4, %c0_70] : memref<2x8x384xf32, #tpu.memory_space<vmem>>, vector<2x1x384xf32>
    %171 = vector.shape_cast %170 : vector<2x1x384xf32> to vector<2x384xf32>
    %172 = arith.truncf %165 : vector<2x128xf32> to vector<2x128xbf16>
    %c0_71 = arith.constant 0 : index
    %c0_72 = arith.constant 0 : index
    %173 = vector.load %arg9[%c0_71, %c0_72] : memref<128x384xbf16, #tpu.memory_space<vmem>>, vector<128x384xbf16>
    %cst_73 = arith.constant dense<0.000000e+00> : vector<2x384xf32>
    %174 = tpu.matmul %172, %173, %cst_73 {dimension_numbers = #tpu.dot_dimension_numbers<[1], [0], [0], [1], [0, 0, 1, 1], [], []>} : vector<2x128xbf16>, vector<128x384xbf16>, vector<2x384xf32> -> vector<2x384xf32>
    %175 = vector.extract_strided_slice %171 {offsets = [0, 0], sizes = [2, 128], strides = [1, 1]} : vector<2x384xf32> to vector<2x128xf32>
    %176 = vector.extract_strided_slice %171 {offsets = [0, 128], sizes = [2, 128], strides = [1, 1]} : vector<2x384xf32> to vector<2x128xf32>
    %177 = vector.extract_strided_slice %171 {offsets = [0, 256], sizes = [2, 128], strides = [1, 1]} : vector<2x384xf32> to vector<2x128xf32>
    %178 = vector.extract_strided_slice %174 {offsets = [0, 0], sizes = [2, 128], strides = [1, 1]} : vector<2x384xf32> to vector<2x128xf32>
    %179 = vector.extract_strided_slice %174 {offsets = [0, 128], sizes = [2, 128], strides = [1, 1]} : vector<2x384xf32> to vector<2x128xf32>
    %180 = vector.extract_strided_slice %174 {offsets = [0, 256], sizes = [2, 128], strides = [1, 1]} : vector<2x384xf32> to vector<2x128xf32>
    %181 = arith.addf %175, %178 : vector<2x128xf32>
    %182 = arith.negf %181 : vector<2x128xf32>
    %183 = math.exp %182 : vector<2x128xf32>
    %cst_74 = arith.constant 1.000000e+00 : f32
    %184 = vector.broadcast %cst_74 : f32 to vector<2x128xf32>
    %185 = arith.addf %184, %183 : vector<2x128xf32>
    %186 = arith.divf %184, %185 : vector<2x128xf32>
    %187 = arith.addf %176, %179 : vector<2x128xf32>
    %188 = arith.negf %187 : vector<2x128xf32>
    %189 = math.exp %188 : vector<2x128xf32>
    %cst_75 = arith.constant 1.000000e+00 : f32
    %190 = vector.broadcast %cst_75 : f32 to vector<2x128xf32>
    %191 = arith.addf %190, %189 : vector<2x128xf32>
    %192 = arith.divf %190, %191 : vector<2x128xf32>
    %cst_76 = arith.constant 1.000000e+00 : f32
    %193 = vector.broadcast %cst_76 : f32 to vector<2x128xf32>
    %194 = arith.subf %193, %192 : vector<2x128xf32>
    %195 = arith.mulf %194, %165 : vector<2x128xf32>
    %196 = arith.mulf %186, %180 : vector<2x128xf32>
    %197 = arith.addf %177, %196 : vector<2x128xf32>
    %198 = math.tanh %197 : vector<2x128xf32>
    %199 = arith.mulf %192, %198 : vector<2x128xf32>
    %200 = arith.addf %195, %199 : vector<2x128xf32>
    %201 = arith.truncf %200 : vector<2x128xf32> to vector<2x128xbf16>
    %c0_77 = arith.constant 0 : index
    %c4_78 = arith.constant 4 : index
    %c0_79 = arith.constant 0 : index
    %202 = vector.load %arg10[%c0_77, %c4_78, %c0_79] : memref<2x8x128xbf16, #tpu.memory_space<vmem>>, vector<2x1x128xbf16>
    %203 = vector.shape_cast %202 : vector<2x1x128xbf16> to vector<2x128xbf16>
    %204 = vector.shape_cast %201 : vector<2x128xbf16> to vector<2x1x128xbf16>
    tpu.vector_store %arg10[%c0_77, %c4_78, %c0_79], %204 {strides = array<i32>} : memref<2x8x128xbf16, #tpu.memory_space<vmem>>, vector<2x1x128xbf16>,
    %c0_80 = arith.constant 0 : index
    %c5 = arith.constant 5 : index
    %c0_81 = arith.constant 0 : index
    %205 = vector.load %arg12[%c0_80, %c5, %c0_81] : memref<2x8x384xf32, #tpu.memory_space<vmem>>, vector<2x1x384xf32>
    %206 = vector.shape_cast %205 : vector<2x1x384xf32> to vector<2x384xf32>
    %207 = arith.truncf %200 : vector<2x128xf32> to vector<2x128xbf16>
    %c0_82 = arith.constant 0 : index
    %c0_83 = arith.constant 0 : index
    %208 = vector.load %arg9[%c0_82, %c0_83] : memref<128x384xbf16, #tpu.memory_space<vmem>>, vector<128x384xbf16>
    %cst_84 = arith.constant dense<0.000000e+00> : vector<2x384xf32>
    %209 = tpu.matmul %207, %208, %cst_84 {dimension_numbers = #tpu.dot_dimension_numbers<[1], [0], [0], [1], [0, 0, 1, 1], [], []>} : vector<2x128xbf16>, vector<128x384xbf16>, vector<2x384xf32> -> vector<2x384xf32>
    %210 = vector.extract_strided_slice %206 {offsets = [0, 0], sizes = [2, 128], strides = [1, 1]} : vector<2x384xf32> to vector<2x128xf32>
    %211 = vector.extract_strided_slice %206 {offsets = [0, 128], sizes = [2, 128], strides = [1, 1]} : vector<2x384xf32> to vector<2x128xf32>
    %212 = vector.extract_strided_slice %206 {offsets = [0, 256], sizes = [2, 128], strides = [1, 1]} : vector<2x384xf32> to vector<2x128xf32>
    %213 = vector.extract_strided_slice %209 {offsets = [0, 0], sizes = [2, 128], strides = [1, 1]} : vector<2x384xf32> to vector<2x128xf32>
    %214 = vector.extract_strided_slice %209 {offsets = [0, 128], sizes = [2, 128], strides = [1, 1]} : vector<2x384xf32> to vector<2x128xf32>
    %215 = vector.extract_strided_slice %209 {offsets = [0, 256], sizes = [2, 128], strides = [1, 1]} : vector<2x384xf32> to vector<2x128xf32>
    %216 = arith.addf %210, %213 : vector<2x128xf32>
    %217 = arith.negf %216 : vector<2x128xf32>
    %218 = math.exp %217 : vector<2x128xf32>
    %cst_85 = arith.constant 1.000000e+00 : f32
    %219 = vector.broadcast %cst_85 : f32 to vector<2x128xf32>
    %220 = arith.addf %219, %218 : vector<2x128xf32>
    %221 = arith.divf %219, %220 : vector<2x128xf32>
    %222 = arith.addf %211, %214 : vector<2x128xf32>
    %223 = arith.negf %222 : vector<2x128xf32>
    %224 = math.exp %223 : vector<2x128xf32>
    %cst_86 = arith.constant 1.000000e+00 : f32
    %225 = vector.broadcast %cst_86 : f32 to vector<2x128xf32>
    %226 = arith.addf %225, %224 : vector<2x128xf32>
    %227 = arith.divf %225, %226 : vector<2x128xf32>
    %cst_87 = arith.constant 1.000000e+00 : f32
    %228 = vector.broadcast %cst_87 : f32 to vector<2x128xf32>
    %229 = arith.subf %228, %227 : vector<2x128xf32>
    %230 = arith.mulf %229, %200 : vector<2x128xf32>
    %231 = arith.mulf %221, %215 : vector<2x128xf32>
    %232 = arith.addf %212, %231 : vector<2x128xf32>
    %233 = math.tanh %232 : vector<2x128xf32>
    %234 = arith.mulf %227, %233 : vector<2x128xf32>
    %235 = arith.addf %230, %234 : vector<2x128xf32>
    %236 = arith.truncf %235 : vector<2x128xf32> to vector<2x128xbf16>
    %c0_88 = arith.constant 0 : index
    %c5_89 = arith.constant 5 : index
    %c0_90 = arith.constant 0 : index
    %237 = vector.load %arg10[%c0_88, %c5_89, %c0_90] : memref<2x8x128xbf16, #tpu.memory_space<vmem>>, vector<2x1x128xbf16>
    %238 = vector.shape_cast %237 : vector<2x1x128xbf16> to vector<2x128xbf16>
    %239 = vector.shape_cast %236 : vector<2x128xbf16> to vector<2x1x128xbf16>
    tpu.vector_store %arg10[%c0_88, %c5_89, %c0_90], %239 {strides = array<i32>} : memref<2x8x128xbf16, #tpu.memory_space<vmem>>, vector<2x1x128xbf16>,
    %c0_91 = arith.constant 0 : index
    %c6 = arith.constant 6 : index
    %c0_92 = arith.constant 0 : index
    %240 = vector.load %arg12[%c0_91, %c6, %c0_92] : memref<2x8x384xf32, #tpu.memory_space<vmem>>, vector<2x1x384xf32>
    %241 = vector.shape_cast %240 : vector<2x1x384xf32> to vector<2x384xf32>
    %242 = arith.truncf %235 : vector<2x128xf32> to vector<2x128xbf16>
    %c0_93 = arith.constant 0 : index
    %c0_94 = arith.constant 0 : index
    %243 = vector.load %arg9[%c0_93, %c0_94] : memref<128x384xbf16, #tpu.memory_space<vmem>>, vector<128x384xbf16>
    %cst_95 = arith.constant dense<0.000000e+00> : vector<2x384xf32>
    %244 = tpu.matmul %242, %243, %cst_95 {dimension_numbers = #tpu.dot_dimension_numbers<[1], [0], [0], [1], [0, 0, 1, 1], [], []>} : vector<2x128xbf16>, vector<128x384xbf16>, vector<2x384xf32> -> vector<2x384xf32>
    %245 = vector.extract_strided_slice %241 {offsets = [0, 0], sizes = [2, 128], strides = [1, 1]} : vector<2x384xf32> to vector<2x128xf32>
    %246 = vector.extract_strided_slice %241 {offsets = [0, 128], sizes = [2, 128], strides = [1, 1]} : vector<2x384xf32> to vector<2x128xf32>
    %247 = vector.extract_strided_slice %241 {offsets = [0, 256], sizes = [2, 128], strides = [1, 1]} : vector<2x384xf32> to vector<2x128xf32>
    %248 = vector.extract_strided_slice %244 {offsets = [0, 0], sizes = [2, 128], strides = [1, 1]} : vector<2x384xf32> to vector<2x128xf32>
    %249 = vector.extract_strided_slice %244 {offsets = [0, 128], sizes = [2, 128], strides = [1, 1]} : vector<2x384xf32> to vector<2x128xf32>
    %250 = vector.extract_strided_slice %244 {offsets = [0, 256], sizes = [2, 128], strides = [1, 1]} : vector<2x384xf32> to vector<2x128xf32>
    %251 = arith.addf %245, %248 : vector<2x128xf32>
    %252 = arith.negf %251 : vector<2x128xf32>
    %253 = math.exp %252 : vector<2x128xf32>
    %cst_96 = arith.constant 1.000000e+00 : f32
    %254 = vector.broadcast %cst_96 : f32 to vector<2x128xf32>
    %255 = arith.addf %254, %253 : vector<2x128xf32>
    %256 = arith.divf %254, %255 : vector<2x128xf32>
    %257 = arith.addf %246, %249 : vector<2x128xf32>
    %258 = arith.negf %257 : vector<2x128xf32>
    %259 = math.exp %258 : vector<2x128xf32>
    %cst_97 = arith.constant 1.000000e+00 : f32
    %260 = vector.broadcast %cst_97 : f32 to vector<2x128xf32>
    %261 = arith.addf %260, %259 : vector<2x128xf32>
    %262 = arith.divf %260, %261 : vector<2x128xf32>
    %cst_98 = arith.constant 1.000000e+00 : f32
    %263 = vector.broadcast %cst_98 : f32 to vector<2x128xf32>
    %264 = arith.subf %263, %262 : vector<2x128xf32>
    %265 = arith.mulf %264, %235 : vector<2x128xf32>
    %266 = arith.mulf %256, %250 : vector<2x128xf32>
    %267 = arith.addf %247, %266 : vector<2x128xf32>
    %268 = math.tanh %267 : vector<2x128xf32>
    %269 = arith.mulf %262, %268 : vector<2x128xf32>
    %270 = arith.addf %265, %269 : vector<2x128xf32>
    %271 = arith.truncf %270 : vector<2x128xf32> to vector<2x128xbf16>
    %c0_99 = arith.constant 0 : index
    %c6_100 = arith.constant 6 : index
    %c0_101 = arith.constant 0 : index
    %272 = vector.load %arg10[%c0_99, %c6_100, %c0_101] : memref<2x8x128xbf16, #tpu.memory_space<vmem>>, vector<2x1x128xbf16>
    %273 = vector.shape_cast %272 : vector<2x1x128xbf16> to vector<2x128xbf16>
    %274 = vector.shape_cast %271 : vector<2x128xbf16> to vector<2x1x128xbf16>
    tpu.vector_store %arg10[%c0_99, %c6_100, %c0_101], %274 {strides = array<i32>} : memref<2x8x128xbf16, #tpu.memory_space<vmem>>, vector<2x1x128xbf16>,
    %c0_102 = arith.constant 0 : index
    %c7 = arith.constant 7 : index
    %c0_103 = arith.constant 0 : index
    %275 = vector.load %arg12[%c0_102, %c7, %c0_103] : memref<2x8x384xf32, #tpu.memory_space<vmem>>, vector<2x1x384xf32>
    %276 = vector.shape_cast %275 : vector<2x1x384xf32> to vector<2x384xf32>
    %277 = arith.truncf %270 : vector<2x128xf32> to vector<2x128xbf16>
    %c0_104 = arith.constant 0 : index
    %c0_105 = arith.constant 0 : index
    %278 = vector.load %arg9[%c0_104, %c0_105] : memref<128x384xbf16, #tpu.memory_space<vmem>>, vector<128x384xbf16>
    %cst_106 = arith.constant dense<0.000000e+00> : vector<2x384xf32>
    %279 = tpu.matmul %277, %278, %cst_106 {dimension_numbers = #tpu.dot_dimension_numbers<[1], [0], [0], [1], [0, 0, 1, 1], [], []>} : vector<2x128xbf16>, vector<128x384xbf16>, vector<2x384xf32> -> vector<2x384xf32>
    %280 = vector.extract_strided_slice %276 {offsets = [0, 0], sizes = [2, 128], strides = [1, 1]} : vector<2x384xf32> to vector<2x128xf32>
    %281 = vector.extract_strided_slice %276 {offsets = [0, 128], sizes = [2, 128], strides = [1, 1]} : vector<2x384xf32> to vector<2x128xf32>
    %282 = vector.extract_strided_slice %276 {offsets = [0, 256], sizes = [2, 128], strides = [1, 1]} : vector<2x384xf32> to vector<2x128xf32>
    %283 = vector.extract_strided_slice %279 {offsets = [0, 0], sizes = [2, 128], strides = [1, 1]} : vector<2x384xf32> to vector<2x128xf32>
    %284 = vector.extract_strided_slice %279 {offsets = [0, 128], sizes = [2, 128], strides = [1, 1]} : vector<2x384xf32> to vector<2x128xf32>
    %285 = vector.extract_strided_slice %279 {offsets = [0, 256], sizes = [2, 128], strides = [1, 1]} : vector<2x384xf32> to vector<2x128xf32>
    %286 = arith.addf %280, %283 : vector<2x128xf32>
    %287 = arith.negf %286 : vector<2x128xf32>
    %288 = math.exp %287 : vector<2x128xf32>
    %cst_107 = arith.constant 1.000000e+00 : f32
    %289 = vector.broadcast %cst_107 : f32 to vector<2x128xf32>
    %290 = arith.addf %289, %288 : vector<2x128xf32>
    %291 = arith.divf %289, %290 : vector<2x128xf32>
    %292 = arith.addf %281, %284 : vector<2x128xf32>
    %293 = arith.negf %292 : vector<2x128xf32>
    %294 = math.exp %293 : vector<2x128xf32>
    %cst_108 = arith.constant 1.000000e+00 : f32
    %295 = vector.broadcast %cst_108 : f32 to vector<2x128xf32>
    %296 = arith.addf %295, %294 : vector<2x128xf32>
    %297 = arith.divf %295, %296 : vector<2x128xf32>
    %cst_109 = arith.constant 1.000000e+00 : f32
    %298 = vector.broadcast %cst_109 : f32 to vector<2x128xf32>
    %299 = arith.subf %298, %297 : vector<2x128xf32>
    %300 = arith.mulf %299, %270 : vector<2x128xf32>
    %301 = arith.mulf %291, %285 : vector<2x128xf32>
    %302 = arith.addf %282, %301 : vector<2x128xf32>
    %303 = math.tanh %302 : vector<2x128xf32>
    %304 = arith.mulf %297, %303 : vector<2x128xf32>
    %305 = arith.addf %300, %304 : vector<2x128xf32>
    %306 = arith.truncf %305 : vector<2x128xf32> to vector<2x128xbf16>
    %c0_110 = arith.constant 0 : index
    %c7_111 = arith.constant 7 : index
    %c0_112 = arith.constant 0 : index
    %307 = vector.load %arg10[%c0_110, %c7_111, %c0_112] : memref<2x8x128xbf16, #tpu.memory_space<vmem>>, vector<2x1x128xbf16>
    %308 = vector.shape_cast %307 : vector<2x1x128xbf16> to vector<2x128xbf16>
    %309 = vector.shape_cast %306 : vector<2x128xbf16> to vector<2x1x128xbf16>
    tpu.vector_store %arg10[%c0_110, %c7_111, %c0_112], %309 {strides = array<i32>} : memref<2x8x128xbf16, #tpu.memory_space<vmem>>, vector<2x1x128xbf16>,
    %c0_113 = arith.constant 0 : index
    %c0_114 = arith.constant 0 : index
    %310 = vector.load %arg11[%c0_113, %c0_114] : memref<2x128xf32, #tpu.memory_space<vmem>>, vector<2x128xf32>
    tpu.vector_store %arg11[%c0_113, %c0_114], %305 {strides = array<i32>} : memref<2x128xf32, #tpu.memory_space<vmem>>, vector<2x128xf32>,
    return
  }
  func.func @transform_0(%arg0: i32, %arg1: i32) -> (i32, i32, i32) {
    %c0_i32 = arith.constant 0 : i32
    %c0_i32_0 = arith.constant 0 : i32
    return %arg0, %arg1, %c0_i32 : i32, i32, i32
  }
  func.func @transform_1(%arg0: i32, %arg1: i32) -> (i32, i32) {
    %c0_i32 = arith.constant 0 : i32
    %c0_i32_0 = arith.constant 0 : i32
    %c0_i32_1 = arith.constant 0 : i32
    return %c0_i32, %c0_i32_0 : i32, i32
  }
  func.func @transform_2(%arg0: i32, %arg1: i32) -> (i32, i32) {
    %c0_i32 = arith.constant 0 : i32
    %c0_i32_0 = arith.constant 0 : i32
    %c0_i32_1 = arith.constant 0 : i32
    return %c0_i32, %c0_i32_0 : i32, i32
  }
  func.func @transform_3(%arg0: i32, %arg1: i32) -> (i32, i32) {
    %c0_i32 = arith.constant 0 : i32
    %c0_i32_0 = arith.constant 0 : i32
    %c0_i32_1 = arith.constant 0 : i32
    return %c0_i32, %c0_i32_0 : i32, i32
  }
  func.func @transform_4(%arg0: i32, %arg1: i32) -> (i32, i32) {
    %c0_i32 = arith.constant 0 : i32
    %c0_i32_0 = arith.constant 0 : i32
    %c0_i32_1 = arith.constant 0 : i32
    return %c0_i32, %c0_i32_0 : i32, i32
  }
  func.func @transform_5(%arg0: i32, %arg1: i32) -> (i32, i32) {
    %c0_i32 = arith.constant 0 : i32
    %c0_i32_0 = arith.constant 0 : i32
    %c0_i32_1 = arith.constant 0 : i32
    return %c0_i32, %c0_i32_0 : i32, i32
  }
  func.func @transform_6(%arg0: i32, %arg1: i32) -> (i32, i32) {
    %c0_i32 = arith.constant 0 : i32
    %c0_i32_0 = arith.constant 0 : i32
    %c0_i32_1 = arith.constant 0 : i32
    return %c0_i32, %c0_i32_0 : i32, i32
  }
  func.func @transform_7(%arg0: i32, %arg1: i32) -> (i32, i32) {
    %c0_i32 = arith.constant 0 : i32
    %c0_i32_0 = arith.constant 0 : i32
    %c0_i32_1 = arith.constant 0 : i32
    return %c0_i32, %c0_i32_0 : i32, i32
  }
  func.func @transform_8(%arg0: i32, %arg1: i32) -> (i32, i32, i32) {
    %c0_i32 = arith.constant 0 : i32
    %c0_i32_0 = arith.constant 0 : i32
    return %arg0, %arg1, %c0_i32 : i32, i32, i32
  }
}

</mosaic_0001>

<bundles_post_ra>
// kernel: dyn_gru_forward.3
= control target key start
LH: loop header
LB: loop body
LE: loop exit
PB: predicated region body
PF: predicated region fallthrough
CT: control target
= control target key end

     0   :  { %vm140_vm0 = vcmask 261120   ;;  %s370_s1 = inlined_call_operand.vmem [shape: bf16[128,32], index: 1, kind: input, shape index: {}]   ;;  %s371_s2 = inlined_call_operand.vmem [shape: f32[1,32], index: 2, kind: input, shape index: {}]   ;;  %s372_s0 = inlined_call_operand.vmem [shape: bf16[16,128], index: 0, kind: input, shape index: {}]   ;;  %s373_s4 = inlined_call_operand.vmem [shape: f32[1,32], index: 4, kind: input, shape index: {}]   ;;  %s374_s3 = inlined_call_operand.vmem [shape: bf16[32,32], index: 3, kind: input, shape index: {}]   ;;  %s375_s6 = inlined_call_operand.vmem [shape: f32[1,128], index: 6, kind: input, shape index: {}]   ;;  %s376_s5 = inlined_call_operand.vmem [shape: bf16[32,128], index: 5, kind: input, shape index: {}]   ;;  %s377_s7 = inlined_call_operand.vmem [shape: f32[16,128], index: 7, kind: output, shape index: {}]  }
   0x1   :  { %v266_v0 = vld [vmem:[%s370_s1 + $0x38] sm:$0xff]  ;;  %v265_v1 = vld [vmem:[%s370_s1 + $0x30] sm:$0xff]  ;;  %v264_v2 = vld [vmem:[%s370_s1 + $0x28] sm:$0xff] }
   0x2   :  { %103 = vmatpush.bf16.msra.mxu0 %v266_v0  ;;  %v263_v3 = vld [vmem:[%s370_s1 + $0x20] sm:$0xff]  ;;  %v262_v4 = vld [vmem:[%s370_s1 + $0x18] sm:$0xff]  ;;  %v261_v5 = vld [vmem:[%s370_s1 + $0x10] sm:$0xff] }
   0x3   :  { %v260_v6 = vld [vmem:[%s370_s1 + $0x8] sm:$0xff]  ;;  %v259_v7 = vld [vmem:[%s370_s1] sm:$0xff] }
   0x4   :  { %v258_v8 = vld [vmem:[%s372_s0] sm:$0xff]  ;;  %v268_v9 = vld [vmem:[%s374_s3 + $0x8] sm:$0xff] }
   0x5   :  { %150 = vmatpush.bf16.msra.mxu1 %v268_v9  ;;  %v267_v10 = vld [vmem:[%s374_s3] sm:$0xff]  ;;  %v270_v19 = vld [vmem:[%s376_s5 + $0x8] sm:$0xff] }
   0x6   :  { %104 = vmatpush.bf16.msra.mxu0 %v265_v1  ;;  %v271_v12 = vld [vmem:[%s371_s2] ss:$0 sm:$0xff]  ;;  %190 = vmatpush.bf16.msra.mxu2 %v270_v19 }
   0x7   :  { %v269_v20 = vld [vmem:[%s376_s5] sm:$0xff] }
   0x8   :  { %v272_v22 = vld [vmem:[%s373_s4] ss:$0 sm:$0xff] }
   0x9   :  { %151 = vmatpush.bf16.msra.mxu1 %v267_v10  ;;  %v273_v29 = vld [vmem:[%s375_s6] ss:$0 sm:$0xff] }
   0xa   :  { %105 = vmatpush.bf16.msra.mxu0 %v264_v2  ;;  %191 = vmatpush.bf16.msra.mxu2 %v269_v20 }
   0xe   :  { %106 = vmatpush.bf16.msra.mxu0 %v263_v3 }
  0x12   :  { %107 = vmatpush.bf16.msra.mxu0 %v262_v4 }
  0x16   :  { %108 = vmatpush.bf16.msra.mxu0 %v261_v5 }
  0x1a   :  { %109 = vmatpush.bf16.msra.mxu0 %v260_v6 }
  0x1e   :  { %110 = vmatpush.bf16.msra.mxu0 %v259_v7 }
  0x21   :  { %111 = vmatmul.bf16.vlgmr.msra.gmra.mxu0 %v258_v8 }
  0x9e   :  { %v112_v11 = vpop.f32.mrf.mxu0 }
  0x9f   :  { %v113_v13 = vadd.f32 %v271_v12, %v112_v11 }
  0xa1   :  { %v117_v16 = vmax.f32 %v113_v13, 0.0 }
  0xa6   :  { %v114_v14 = vpop.f32.mrf.mxu0 }
  0xa7   :  { %v115_v15 = vadd.f32 %v271_v12, %v114_v14 }
  0xa9   :  { %v118_v17 = vmax.f32 %v115_v15, 0.0 }
  0xab   :  { %v119_v18 = vpack.c.bf16 %v118_v17, %v117_v16 }
  0xad   :  { %248 = vmatmul.msk.bf16.vlgmr.msra.gmra.mxu1 %vm140_vm0, %v119_v18 }
 0x12a   :  { %v153_v21 = vpop.f32.mrf.mxu1 }
 0x12b   :  { %v154_v23 = vadd.f32 %v272_v22, %v153_v21 }
 0x12d   :  { %v158_v26 = vmax.f32 %v154_v23, 0.0 }
 0x132   :  { %v155_v24 = vpop.f32.mrf.mxu1 }
 0x133   :  { %v156_v25 = vadd.f32 %v272_v22, %v155_v24 }
 0x135   :  { %v159_v27 = vmax.f32 %v156_v25, 0.0 }
 0x137   :  { %v160_v28 = vpack.c.bf16 %v159_v27, %v158_v26 }
 0x139   :  { %257 = vmatmul.msk.bf16.vlgmr.msra.gmra.mxu2 %vm140_vm0, %v160_v28 }
 0x1bc   :  { %v193_v30 = vpop.f32.mrf.mxu2 }
 0x1bd   :  { %v194_v31 = vadd.f32 %v273_v29, %v193_v30 }
 0x1bf   :  { %198 = vst [vmem:[%s377_s7] sm:$0xff] %v194_v31 }
 0x1c4   :  { %v195_v32 = vpop.f32.mrf.mxu2 }
 0x1c5   :  { %v196_v33 = vadd.f32 %v273_v29, %v195_v32 }
 0x1c7   :  { %199 = vst [vmem:[%s377_s7 + $0x8] sm:$0xff] %v196_v33 }

// kernel: dyn_gru_forward.2
= control target key start
LH: loop header
LB: loop body
LE: loop exit
PB: predicated region body
PF: predicated region fallthrough
CT: control target
= control target key end

     0   :  { %13 = vsyncpa [#allocation5], 0  ;;  %s5519_s0 = inlined_call_operand.vmem [shape: f32[2,8,4], index: 0, kind: input, shape index: {}]   ;;  %s5520_s1 = inlined_call_operand.hbm [shape: bf16[4,32], index: 1, kind: input, shape index: {}]   ;;  %s5521_s2 = inlined_call_operand.hbm [shape: f32[1,32], index: 2, kind: input, shape index: {}]   ;;  %s5522_s3 = inlined_call_operand.vmem [shape: bf16[32,32], index: 3, kind: input, shape index: {}]   ;;  %s5523_s4 = inlined_call_operand.hbm [shape: f32[1,32], index: 4, kind: input, shape index: {}]   ;;  %s5524_s5 = inlined_call_operand.hbm [shape: bf16[32,384], index: 5, kind: input, shape index: {}]   ;;  %s5525_s6 = inlined_call_operand.vmem [shape: f32[1,384], index: 6, kind: input, shape index: {}]   ;;  %s5526_s7 = inlined_call_operand.hbm [shape: bf16[128,384], index: 7, kind: input, shape index: {}]   ;;  %s5527_s8 = inlined_call_operand.vmem [shape: bf16[2,8,128], index: 8, kind: output, shape index: {}]  }
   0x1   :  { %14 = vsyncpa [#allocation7], 0  ;;  %s34_s29 = sshll.u32 %s5521_s2, 4  ;;  %s35_s29 = int_to_ptr.hbm [resolvable:$true] %s34_s29 }
   0x2   :  { %15 = vsyncpa [#allocation10], 0  ;;  %s4393_s30 = smov [#allocation6]   ;;  %s57_s12 = sshll.u32 %s5524_s5, 4  ;;  %s58_s12 = int_to_ptr.hbm [resolvable:$true] %s57_s12 }
   0x3   :  { %s36_s9 = sshll.u32 %s4393_s30, 4  ;;  %s4394_s13 = smov [#allocation9]   ;;  %s37_s9 = int_to_ptr.vmem [resolvable:$true] %s36_s9 }
   0x4   :  { %39 = dma.hbm_to_vmem [thread:$0]  %s35_s29, 16, %s37_s9, [#allocation7]  }
   0x5   :  { %s59_s14 = sshll.u32 %s4394_s13, 4  ;;  %s4395_s15 = smov 192   ;;  %s60_s14 = int_to_ptr.vmem [resolvable:$true] %s59_s14 }
   0x6   :  { %s4396_s16 = smov 12   ;;  %s23_s2 = sshll.u32 %s5520_s1, 4  ;;  %s24_s2 = int_to_ptr.hbm [resolvable:$true] %s23_s2 }
   0x7   :  { %65 = dma.hbm_to_vmem [thread:$0]  %s58_s12, 768, %s60_s14, [#allocation10], %s4395_s15, %s4395_s15, %s4396_s16  }
   0x8   :  { %s4397_s19 = smov [#allocation4]   ;;  %s47_s5 = sshll.u32 %s5523_s4, 4  ;;  %s48_s5 = int_to_ptr.hbm [resolvable:$true] %s47_s5 }
   0x9   :  { %s25_s20 = sshll.u32 %s4397_s19, 4  ;;  %s4398_s23 = smov [#allocation8]   ;;  %s26_s20 = int_to_ptr.vmem [resolvable:$true] %s25_s20 }
   0xa   :  { %28 = dma.hbm_to_vmem [thread:$0]  %s24_s2, 32, %s26_s20, [#allocation5]  }
   0xb   :  { %s49_s24 = sshll.u32 %s4398_s23, 4  ;;  %s72_s27 = sshll.u32 %s5526_s7, 4  ;;  %s50_s24 = int_to_ptr.vmem [resolvable:$true] %s49_s24  ;;  %s73_s27 = int_to_ptr.hbm [resolvable:$true] %s72_s27 }
   0xc   :  { %52 = dma.hbm_to_vmem [thread:$0]  %s48_s5, 16, %s50_s24, [#allocation7]  }
   0xd   :  { %s4399_s1 = smov [#allocation11]  }
   0xe   :  { %s74_s28 = sshll.u32 %s4399_s1, 4  ;;  %s75_s28 = int_to_ptr.vmem [resolvable:$true] %s74_s28 }
   0xf   :  { %80 = dma.hbm_to_vmem [thread:$0]  %s73_s27, 3072, %s75_s28, [#allocation10], %s4395_s15, %s4395_s15, %s4396_s16  }
  0x10   :  { %4387 = dma.done.wait [#allocation5], 32  }
  0x11   :  { %4388 = vsyncadd [#allocation5], 4294967264 }
  0x12   :  { %4389 = dma.done.wait [#allocation7], 32  }
  0x13   :  { %4390 = vsyncadd [#allocation7], 4294967264 }
  0x14   :  { %4391 = dma.done.wait [#allocation10], 3840  }
  0x15   :  { %4392 = vsyncadd [#allocation10], 4294963456  ;;  %vm119_vm0 = vcmask 1041408   ;;  %v110_v0 = vld [vmem:[#allocation4] sm:$0x3]  ;;  %v107_v1 = vld [vmem:[%s5519_s0] sm:$0xff] }
  0x16   :  { %v108_v2 = vld [vmem:[%s5519_s0 + $0x8] sm:$0xff]  ;;  %v121_v3 = vsel %vm119_vm0, %v110_v0, 0  ;;  %vm115_vm1 = vcmask 31744   ;;  %v3897_v6 = vld [vmem:[%s5522_s3] sm:$0xff]  ;;  %v3070_v7 = vld [vmem:[#allocation9 + $0x18] sm:$0xf] }
  0x17   :  { %v109_v4 = vpack.c.bf16 %v108_v2, %v107_v1  ;;  %130 = vmatpush.bf16.msra.mxu0 %v121_v3  ;;  %v3898_v5 = vld [vmem:[%s5522_s3 + $0x8] sm:$0xff]  ;;  %v3903_v8 = vld [vmem:[#allocation9 + $0x20] sm:$0xf0]  ;;  %v3169_v9 = vld [vmem:[#allocation11 + $0xa8] sm:$0xf]  ;;  %vm160_vm2 = vcmask 261120  }
  0x18   :  { %170 = vmatpush.bf16.msra.mxu1 %v3898_v5  ;;  %v3071_v10 = vor.u32 %v3903_v8, %v3070_v7  ;;  %v3927_v11 = vld [vmem:[#allocation11 + $0xb0] sm:$0xf0]  ;;  %v3058_v12 = vld [vmem:[#allocation9] sm:$0xf]  ;;  %v3900_v13 = vld [vmem:[#allocation9 + $0x8] sm:$0xf0] }
  0x19   :  { %v3170_v14 = vor.u32 %v3927_v11, %v3169_v9  ;;  %v3059_v15 = vor.u32 %v3900_v13, %v3058_v12  ;;  %v4105_v17 = vld [vmem:[#allocation6] ss:$0 sm:$0xff]  ;;  %v3171_v25 = vld [vmem:[#allocation11 + $0xb4] sm:$0xf0]  ;;  %v3157_v27 = vld [vmem:[#allocation11 + $0x90] sm:$0xf] }
  0x1a   :  { %3046 = vmatmul.msk.bf16.vlgmr.msra.gmra.mxu0 %vm115_vm1, %v109_v4  ;;  %238 = vmatpush.bf16.msra.mxu2 %v3071_v10  ;;  %v3926_v24 = vld [vmem:[#allocation11 + $0xac] sm:$0xf]  ;;  %v3924_v28 = vld [vmem:[#allocation11 + $0x98] sm:$0xf0]  ;;  %v3923_v30 = vld [vmem:[#allocation11 + $0x94] sm:$0xf] }
  0x1b   :  { %v3174_v26 = vor.u32 %v3926_v24, %v3171_v25  ;;  %v3158_v29 = vor.u32 %v3924_v28, %v3157_v27  ;;  %v3159_v31 = vld [vmem:[#allocation11 + $0x9c] sm:$0xf0]  ;;  %v3078_v33 = vld [vmem:[#allocation9 + $0x20] sm:$0xf]  ;;  %v3904_v34 = vld [vmem:[#allocation9 + $0x28] sm:$0xf0] }
  0x1c   :  { %171 = vmatpush.bf16.msra.mxu1 %v3897_v6  ;;  %v3162_v32 = vor.u32 %v3923_v30, %v3159_v31  ;;  %v3145_v35 = vld [vmem:[#allocation11 + $0x78] sm:$0xf]  ;;  %v3079_v36 = vor.u32 %v3904_v34, %v3078_v33  ;;  %v3921_v37 = vld [vmem:[#allocation11 + $0x80] sm:$0xf0]  ;;  %v3902_v39 = vld [vmem:[#allocation9 + $0x1c] sm:$0xf] }
  0x1d   :  { %v3146_v38 = vor.u32 %v3921_v37, %v3145_v35  ;;  %v3072_v40 = vld [vmem:[#allocation9 + $0x24] sm:$0xf0]  ;;  %v3920_v41 = vld [vmem:[#allocation11 + $0x7c] sm:$0xf]  ;;  %v3147_v43 = vld [vmem:[#allocation11 + $0x84] sm:$0xf0] }
  0x1e   :  { %239 = vmatpush.bf16.msra.mxu2 %v3059_v15  ;;  %266 = vmatpush.bf16.msrb.mxu0 %v3079_v36  ;;  %v3075_v42 = vor.u32 %v3902_v39, %v3072_v40  ;;  %v3150_v44 = vor.u32 %v3920_v41, %v3147_v43  ;;  %v3133_v45 = vld [vmem:[#allocation11 + $0x60] sm:$0xf]  ;;  %v3918_v46 = vld [vmem:[#allocation11 + $0x68] sm:$0xf0]  ;;  %v3899_v48 = vld [vmem:[#allocation9 + $0x4] sm:$0xf] }
  0x1f   :  { %v3134_v47 = vor.u32 %v3918_v46, %v3133_v45  ;;  %v3060_v49 = vld [vmem:[#allocation9 + $0xc] sm:$0xf0]  ;;  %v3066_v50 = vld [vmem:[#allocation9 + $0x8] sm:$0xf]  ;;  %v3901_v52 = vld [vmem:[#allocation9 + $0x10] sm:$0xf0] }
  0x20   :  { %445 = vmatpush.bf16.msrb.mxu1 %v3170_v14  ;;  %252 = vmatpush.bf16.msra.mxu3 %v3075_v42  ;;  %v3063_v51 = vor.u32 %v3899_v48, %v3060_v49  ;;  %v3917_v53 = vld [vmem:[#allocation11 + $0x64] sm:$0xf]  ;;  %v3135_v54 = vld [vmem:[#allocation11 + $0x6c] sm:$0xf0]  ;;  %v3067_v55 = vor.u32 %v3901_v52, %v3066_v50  ;;  %v3121_v57 = vld [vmem:[#allocation11 + $0x48] sm:$0xf] }
  0x21   :  { %v3138_v56 = vor.u32 %v3917_v53, %v3135_v54  ;;  %v3915_v58 = vld [vmem:[#allocation11 + $0x50] sm:$0xf0]  ;;  %v3914_v60 = vld [vmem:[#allocation11 + $0x4c] sm:$0xf]  ;;  %v3123_v61 = vld [vmem:[#allocation11 + $0x54] sm:$0xf0] }
  0x22   :  { %458 = vmatpush.bf16.msrb.mxu2 %v3174_v26  ;;  %v3122_v59 = vor.u32 %v3915_v58, %v3121_v57  ;;  %267 = vmatpush.bf16.msrb.mxu0 %v3067_v55  ;;  %v3126_v62 = vor.u32 %v3914_v60, %v3123_v61  ;;  %v3109_v63 = vld [vmem:[#allocation11 + $0x30] sm:$0xf]  ;;  %v3912_v0 = vld [vmem:[#allocation11 + $0x38] sm:$0xf0]  ;;  %v3911_v1 = vld [vmem:[#allocation11 + $0x34] sm:$0xf] }
  0x23   :  { %v3110_v2 = vor.u32 %v3912_v0, %v3109_v63  ;;  %v3111_v3 = vld [vmem:[#allocation11 + $0x3c] sm:$0xf0]  ;;  %v3097_v4 = vld [vmem:[#allocation11 + $0x18] sm:$0xf]  ;;  %v3909_v5 = vld [vmem:[#allocation11 + $0x20] sm:$0xf0] }
  0x24   :  { %446 = vmatpush.bf16.msrb.mxu1 %v3158_v29  ;;  %253 = vmatpush.bf16.msra.mxu3 %v3063_v51  ;;  %v3114_v6 = vor.u32 %v3911_v1, %v3111_v3  ;;  %v3177_v7 = vld [vmem:[#allocation11 + $0xb0] sm:$0xf]  ;;  %v3928_v8 = vld [vmem:[#allocation11 + $0xb8] sm:$0xf0]  ;;  %v3098_v10 = vor.u32 %v3909_v5, %v3097_v4  ;;  %v3099_v12 = vld [vmem:[#allocation11 + $0x24] sm:$0xf0] }
  0x25   :  { %v3908_v9 = vld [vmem:[#allocation11 + $0x1c] sm:$0xf]  ;;  %v3178_v11 = vor.u32 %v3928_v8, %v3177_v7  ;;  %v3085_v13 = vld [vmem:[#allocation11] sm:$0xf]  ;;  %v3906_v14 = vld [vmem:[#allocation11 + $0x8] sm:$0xf0] }
  0x26   :  { %459 = vmatpush.bf16.msrb.mxu2 %v3162_v32  ;;  %v3165_v15 = vld [vmem:[#allocation11 + $0x98] sm:$0xf]  ;;  %v3086_v24 = vor.u32 %v3906_v14, %v3085_v13  ;;  %v3141_v29 = vld [vmem:[#allocation11 + $0x68] sm:$0xf]  ;;  %v3919_v30 = vld [vmem:[#allocation11 + $0x70] sm:$0xf0] }
  0x27   :  { %v3129_v31 = vld [vmem:[#allocation11 + $0x50] sm:$0xf]  ;;  %v3142_v33 = vor.u32 %v3919_v30, %v3141_v29  ;;  %v3916_v34 = vld [vmem:[#allocation11 + $0x58] sm:$0xf0]  ;;  %v4106_v36 = vld [vmem:[#allocation8] ss:$0 sm:$0xff] }
  0x28   :  { %447 = vmatpush.bf16.msrb.mxu1 %v3146_v38  ;;  %471 = vmatpush.bf16.msrb.mxu3 %v3178_v11  ;;  %v3130_v35 = vor.u32 %v3916_v34, %v3129_v31  ;;  %v3117_v37 = vld [vmem:[#allocation11 + $0x38] sm:$0xf]  ;;  %v3913_v38 = vld [vmem:[#allocation11 + $0x40] sm:$0xf0]  ;;  %v3105_v41 = vld [vmem:[#allocation11 + $0x20] sm:$0xf] }
  0x29   :  { %v3118_v39 = vor.u32 %v3913_v38, %v3117_v37  ;;  %v3910_v42 = vld [vmem:[#allocation11 + $0x28] sm:$0xf0]  ;;  %v3093_v48 = vld [vmem:[#allocation11 + $0x8] sm:$0xf]  ;;  %v3907_v49 = vld [vmem:[#allocation11 + $0x10] sm:$0xf0] }
  0x2a   :  { %460 = vmatpush.bf16.msrb.mxu2 %v3150_v44  ;;  %v3106_v45 = vor.u32 %v3910_v42, %v3105_v41  ;;  %v3094_v51 = vor.u32 %v3907_v49, %v3093_v48  ;;  %v189_v54 = vld [vmem:[%s5525_s6] sm:$0x7]  ;;  %v3271_v7 = vld [vmem:[#allocation11 + $0xa8] sm:$0xf]  ;;  %v3950_v11 = vld [vmem:[#allocation11 + $0xac] sm:$0xf] }
  0x2b   :  { %v193_v55 = vperm.slane %v189_v54, 2  ;;  %v191_v58 = vperm.slane %v189_v54, 0  ;;  %v3279_v13 = vld [vmem:[#allocation11 + $0xb0] sm:$0xf]  ;;  %v3949_v29 = vld [vmem:[#allocation11 + $0xa0] sm:$0xf0] }
  0x2c   :  { %448 = vmatpush.bf16.msrb.mxu1 %v3134_v47  ;;  %v3247_v38 = vld [vmem:[#allocation11 + $0x78] sm:$0xf]  ;;  %v3944_v41 = vld [vmem:[#allocation11 + $0x7c] sm:$0xf]  ;;  %v3249_v42 = vld [vmem:[#allocation11 + $0x84] sm:$0xf0] }
  0x2d   :  { %v3946_v48 = vld [vmem:[#allocation11 + $0x88] sm:$0xf0] }
  0x2e   :  { %461 = vmatpush.bf16.msrb.mxu2 %v3138_v56 }
  0x30   :  { %449 = vmatpush.bf16.msrb.mxu1 %v3122_v59  ;;  %v192_v59 = vperm.slane %v189_v54, 1 }
  0x32   :  { %462 = vmatpush.bf16.msrb.mxu2 %v3126_v62 }
  0x34   :  { %450 = vmatpush.bf16.msrb.mxu1 %v3110_v2 }
  0x36   :  { %463 = vmatpush.bf16.msrb.mxu2 %v3114_v6 }
  0x38   :  { %451 = vmatpush.bf16.msrb.mxu1 %v3098_v10 }
  0x3c   :  { %452 = vmatpush.bf16.msrb.mxu1 %v3086_v24 }
  0x97   :  { %v132_v16 = vpop.f32.mrf.mxu0 }
  0x98   :  { %v133_v18 = vadd.f32 %v4105_v17, %v132_v16  ;;  %v3925_v16 = vld [vmem:[#allocation11 + $0xa0] sm:$0xf0] }
  0x9a   :  { %v137_v21 = vmax.f32 %v133_v18, 0.0  ;;  %v3166_v18 = vor.u32 %v3925_v16, %v3165_v15 }
  0x9c   :  { %472 = vmatpush.bf16.msrb.mxu3 %v3166_v18  ;;  %v3952_v18 = vld [vmem:[#allocation11 + $0xb8] sm:$0xf0] }
  0x9f   :  { %v134_v19 = vpop.f32.mrf.mxu0 }
  0xa0   :  { %v135_v20 = vadd.f32 %v4105_v17, %v134_v19  ;;  %v3102_v17 = vor.u32 %v3908_v9, %v3099_v12  ;;  %v3905_v19 = vld [vmem:[#allocation11 + $0x4] sm:$0xf]  ;;  %v3951_v9 = vld [vmem:[#allocation11 + $0xb0] sm:$0xf0]  ;;  %v3273_v12 = vld [vmem:[#allocation11 + $0xb4] sm:$0xf0] }
  0xa1   :  { %v3272_v10 = vor.u32 %v3951_v9, %v3271_v7  ;;  %v3940_v9 = vld [vmem:[#allocation11 + $0x58] sm:$0xf0] }
  0xa2   :  { %v138_v22 = vmax.f32 %v135_v20, 0.0  ;;  %v3087_v20 = vld [vmem:[#allocation11 + $0xc] sm:$0xf0]  ;;  %464 = vmatpush.bf16.msrb.mxu2 %v3102_v17  ;;  %v3276_v17 = vor.u32 %v3950_v11, %v3273_v12 }
  0xa3   :  { %v3090_v25 = vor.u32 %v3905_v19, %v3087_v20  ;;  %788 = vmatpush.bf16.msra.mxu0 %v3272_v10  ;;  %v3280_v19 = vor.u32 %v3952_v18, %v3279_v13  ;;  %v3259_v20 = vld [vmem:[#allocation11 + $0x90] sm:$0xf]  ;;  %v3935_v18 = vld [vmem:[#allocation11 + $0x34] sm:$0xf] }
  0xa4   :  { %v139_v23 = vpack.c.bf16 %v138_v22, %v137_v21  ;;  %v4400_v21 = vmov 0.0   ;;  %v3153_v22 = vld [vmem:[#allocation11 + $0x80] sm:$0xf] }
  0xa5   :  { %106 = vst [vmem:[#allocation2] sm:$0x3] %v4400_v21  ;;  %v3948_v21 = vld [vmem:[#allocation11 + $0x98] sm:$0xf0] }
  0xa6   :  { %3055 = vmatmul.msk.bf16.vlgmr.msra.gmra.mxu1 %vm160_vm2, %v139_v23  ;;  %v3922_v23 = vld [vmem:[#allocation11 + $0x88] sm:$0xf0]  ;;  %465 = vmatpush.bf16.msrb.mxu2 %v3090_v25  ;;  %v3260_v25 = vor.u32 %v3948_v21, %v3259_v20 }
  0xa7   :  { %v3154_v26 = vor.u32 %v3922_v23, %v3153_v22  ;;  %v3947_v22 = vld [vmem:[#allocation11 + $0x94] sm:$0xf]  ;;  %801 = vmatpush.bf16.msra.mxu1 %v3276_v17 }
  0xa8   :  { %789 = vmatpush.bf16.msra.mxu0 %v3260_v25 }
  0xa9   :  { %473 = vmatpush.bf16.msrb.mxu3 %v3154_v26  ;;  %v3261_v26 = vld [vmem:[#allocation11 + $0x9c] sm:$0xf0] }
  0xaa   :  { %v3264_v31 = vor.u32 %v3947_v22, %v3261_v26  ;;  %v3219_v22 = vld [vmem:[#allocation11 + $0x38] sm:$0xf] }
  0xac   :  { %v4474_v27 = vld [vmem:[#allocation2] sm:$0x3]  ;;  %802 = vmatpush.bf16.msra.mxu1 %v3264_v31  ;;  %v3933_v31 = vld [vmem:[#allocation11 + $0x20] sm:$0xf0] }
  0xad   :  { %v284_v28 = vpack.c.bf16 %v4474_v27, %v4474_v27  ;;  %474 = vmatpush.bf16.msrb.mxu3 %v3142_v33 }
  0xb1   :  { %475 = vmatpush.bf16.msrb.mxu3 %v3130_v35 }
  0xb5   :  { %476 = vmatpush.bf16.msrb.mxu3 %v3118_v39  ;;  %v3945_v39 = vld [vmem:[#allocation11 + $0x80] sm:$0xf0] }
  0xb6   :  { %453 = vmatmul.bf16.vlgmr.msrb.gmra.mxu1 %v284_v28 }
  0xb9   :  { %477 = vmatpush.bf16.msrb.mxu3 %v3106_v45 }
  0xbd   :  { %478 = vmatpush.bf16.msrb.mxu3 %v3094_v51  ;;  %v3235_v51 = vld [vmem:[#allocation11 + $0x60] sm:$0xf] }
 0x123   :  { %v173_v32 = vpop.f32.mrf.mxu1 }
 0x124   :  { %v174_v40 = vadd.f32 %v4106_v36, %v173_v32 }
 0x126   :  { %v178_v46 = vmax.f32 %v174_v40, 0.0  ;;  %v3248_v40 = vor.u32 %v3945_v39, %v3247_v38  ;;  %v3201_v38 = vld [vmem:[#allocation11 + $0x24] sm:$0xf0] }
 0x128   :  { %790 = vmatpush.bf16.msra.mxu0 %v3248_v40 }
 0x12b   :  { %v175_v43 = vpop.f32.mrf.mxu1 }
 0x12c   :  { %v176_v44 = vadd.f32 %v4106_v36, %v175_v43  ;;  %v3255_v43 = vld [vmem:[#allocation11 + $0x80] sm:$0xf] }
 0x12e   :  { %v179_v47 = vmax.f32 %v176_v44, 0.0 }
 0x130   :  { %v180_v50 = vpack.c.bf16 %v179_v47, %v178_v46  ;;  %v3252_v47 = vor.u32 %v3944_v41, %v3249_v42  ;;  %v3207_v42 = vld [vmem:[#allocation11 + $0x20] sm:$0xf] }
 0x132   :  { %3080 = vmatmul.msk.bf16.vlgmr.msra.gmra.mxu2 %vm160_vm2, %v180_v50  ;;  %3081 = vmatmul.msk.bf16.vlgmr.msra.gmra.mxu3 %vm160_vm2, %v180_v50 }
 0x133   :  { %3082 = vmatmul.msk.bf16.vlgmr.msrb.gmra.mxu0 %vm160_vm2, %v180_v50  ;;  %v454_v52 = vpop.f32.mrf.mxu1  ;;  %814 = vmatpush.bf16.msra.mxu2 %v3280_v19  ;;  %v3256_v50 = vor.u32 %v3946_v48, %v3255_v43  ;;  %v3213_v19 = vld [vmem:[#allocation11 + $0x3c] sm:$0xf0]  ;;  %v3934_v43 = vld [vmem:[#allocation11 + $0x28] sm:$0xf0]  ;;  %vm602_vm2 = vcmask 1040384  }
 0x134   :  { %v485_v14 = vrot.slane %v454_v52, 1  ;;  %803 = vmatpush.bf16.msra.mxu1 %v3252_v47  ;;  %v3187_v47 = vld [vmem:[#allocation11] sm:$0xf]  ;;  %v3930_v48 = vld [vmem:[#allocation11 + $0x8] sm:$0xf0] }
 0x13b   :  { %v456_v53 = vpop.f32.mrf.mxu1 }
 0x142   :  { %466 = vmatmul.bf16.vlgmr.msrb.gmra.mxu2 %v284_v28  ;;  %479 = vmatmul.bf16.vlgmr.msrb.gmra.mxu3 %v284_v28  ;;  %v3267_v28 = vld [vmem:[#allocation11 + $0x98] sm:$0xf] }
 0x143   :  { %v3268_v33 = vor.u32 %v3949_v29, %v3267_v28  ;;  %v3216_v28 = vor.u32 %v3935_v18, %v3213_v19  ;;  %v3937_v29 = vld [vmem:[#allocation11 + $0x40] sm:$0xf0] }
 0x145   :  { %815 = vmatpush.bf16.msra.mxu2 %v3268_v33 }
 0x149   :  { %816 = vmatpush.bf16.msra.mxu2 %v3256_v50 }
 0x1b0   :  { %v269_v56 = vpop.f32.mrf.mxu0 }
 0x1b1   :  { %v270_v57 = vadd.f32 %v269_v56, %v193_v55 }
 0x1b3   :  { %276 = vst [vmem:[#allocation3 + $0x10] sm:$0xff] %v270_v57  ;;  %v3941_v57 = vld [vmem:[#allocation11 + $0x64] sm:$0xf] }
 0x1b5   :  { %v241_v60 = vpop.f32.mrf.mxu2  ;;  %v255_v61 = vpop.f32.mrf.mxu3 }
 0x1b6   :  { %v242_v62 = vadd.f32 %v241_v60, %v191_v58  ;;  %v256_v63 = vadd.f32 %v255_v61, %v192_v59  ;;  %v3943_v61 = vld [vmem:[#allocation11 + $0x70] sm:$0xf0] }
 0x1b8   :  { %274 = vst [vmem:[#allocation3] sm:$0xff] %v242_v62  ;;  %v271_v0 = vpop.f32.mrf.mxu0 }
 0x1b9   :  { %275 = vst [vmem:[#allocation3 + $0x8] sm:$0xff] %v256_v63  ;;  %v272_v1 = vadd.f32 %v271_v0, %v193_v55  ;;  %v3223_v0 = vld [vmem:[#allocation11 + $0x48] sm:$0xf] }
 0x1bb   :  { %279 = vst [vmem:[#allocation3 + $0x28] sm:$0xff] %v272_v1  ;;  %v3939_v1 = vld [vmem:[#allocation11 + $0x50] sm:$0xf0] }
 0x1bd   :  { %v243_v2 = vpop.f32.mrf.mxu2  ;;  %v257_v3 = vpop.f32.mrf.mxu3 }
 0x1be   :  { %v244_v4 = vadd.f32 %v243_v2, %v191_v58  ;;  %v258_v5 = vadd.f32 %v257_v3, %v192_v59  ;;  %v3237_v58 = vld [vmem:[#allocation11 + $0x6c] sm:$0xf0]  ;;  %v3243_v59 = vld [vmem:[#allocation11 + $0x68] sm:$0xf]  ;;  %v3224_v3 = vor.u32 %v3939_v1, %v3223_v0 }
 0x1bf   :  { %v3240_v60 = vor.u32 %v3941_v57, %v3237_v58  ;;  %v3244_v63 = vor.u32 %v3943_v61, %v3243_v59  ;;  %v3195_v59 = vld [vmem:[#allocation11 + $0x8] sm:$0xf] }
 0x1c0   :  { %277 = vst [vmem:[#allocation3 + $0x18] sm:$0xff] %v244_v4  ;;  %v4484_v6 = vld [vmem:[#allocation3] ss:$8 sm:$0x7]  ;;  %v3938_v4 = vld [vmem:[#allocation11 + $0x4c] sm:$0xf] }
 0x1c1   :  { %278 = vst [vmem:[#allocation3 + $0x20] sm:$0xff] %v258_v5  ;;  %v487_v8 = vadd.f32 %v454_v52, %v4484_v6  ;;  %v529_v16 = vrot.slane %v4484_v6, 1  ;;  %v3942_v52 = vld [vmem:[#allocation11 + $0x68] sm:$0xf0]  ;;  %804 = vmatpush.bf16.msra.mxu1 %v3240_v60  ;;  %v3225_v5 = vld [vmem:[#allocation11 + $0x54] sm:$0xf0]  ;;  %817 = vmatpush.bf16.msra.mxu2 %v3244_v63 }
 0x1c2   :  { %v3236_v56 = vor.u32 %v3942_v52, %v3235_v51  ;;  %v3228_v7 = vor.u32 %v3938_v4, %v3225_v5  ;;  %v3931_v60 = vld [vmem:[#allocation11 + $0x10] sm:$0xf0] }
 0x1c3   :  { %v3179_v15 = vmul.f32 -1.442695, %v487_v8  ;;  %v3231_v8 = vld [vmem:[#allocation11 + $0x50] sm:$0xf]  ;;  %v3196_v4 = vor.u32 %v3931_v60, %v3195_v59 }
 0x1c4   :  { %791 = vmatpush.bf16.msra.mxu0 %v3236_v56  ;;  %v3232_v13 = vor.u32 %v3940_v9, %v3231_v8 }
 0x1c5   :  { %4107 = vpow2.f32 %v3179_v15  ;;  %v467_v23 = vpop.f32.mrf.mxu2  ;;  %v4488_v24 = vpop.f32.mrf.mxu3  ;;  %v3936_v15 = vld [vmem:[#allocation11 + $0x38] sm:$0xf0]  ;;  %805 = vmatpush.bf16.msra.mxu1 %v3228_v7 }
 0x1c6   :  { %v536_v30 = vadd.f32 %v529_v16, %v467_v23  ;;  %v534_v32 = vrot.slane %v467_v23, 1  ;;  %818 = vmatpush.bf16.msra.mxu2 %v3232_v13 }
 0x1c8   :  { %v4490_v34 = vld [vmem:[#allocation3 + $0x18] ss:$8 sm:$0x7]  ;;  %v3181_v35 = vmul.f32 -1.442695, %v536_v30  ;;  %792 = vmatpush.bf16.msra.mxu0 %v3224_v3 }
 0x1c9   :  { %v488_v36 = vadd.f32 %v485_v14, %v4490_v34  ;;  %v530_v37 = vrot.slane %v4490_v34, 1  ;;  %v3211_v14 = vld [vmem:[#allocation11 + $0x30] sm:$0xf]  ;;  %v3199_v30 = vld [vmem:[#allocation11 + $0x18] sm:$0xf]  ;;  %806 = vmatpush.bf16.msra.mxu1 %v3216_v28 }
 0x1ca   :  { %4109 = vpow2.f32 %v3181_v35  ;;  %v3212_v26 = vor.u32 %v3936_v15, %v3211_v14  ;;  %v3200_v41 = vor.u32 %v3933_v31, %v3199_v30  ;;  %v584_v15 = vrot.slane %v4488_v24, 1 }
 0x1cb   :  { %v4108_v44 = vpop.eup %4107  ;;  %v3180_v45 = vmul.f32 -1.442695, %v488_v36  ;;  %v537_v46 = vadd.f32 %v534_v32, %v530_v37  ;;  %v3932_v32 = vld [vmem:[#allocation11 + $0x1c] sm:$0xf]  ;;  %v588_v36 = vrot.slane %v4484_v6, 2  ;;  %v3220_v37 = vor.u32 %v3937_v29, %v3219_v22 }
 0x1cc   :  { %v4494_v49 = vadd.f32 1.0, %v4108_v44  ;;  %793 = vmatpush.bf16.msra.mxu0 %v3212_v26  ;;  %v3204_v6 = vor.u32 %v3932_v32, %v3201_v38  ;;  %v589_v26 = vrot.slane %v4490_v34, 2  ;;  %v605_v34 = vld [vmem:[%s5527_s8] sm:$0x1] }
 0x1cd   :  { %4111 = vpow2.f32 %v3180_v45  ;;  %v3182_v53 = vmul.f32 -1.442695, %v537_v46  ;;  %v469_v54 = vpop.f32.mrf.mxu2  ;;  %v482_v55 = vpop.f32.mrf.mxu3  ;;  %819 = vmatpush.bf16.msra.mxu2 %v3220_v37  ;;  %v3208_v46 = vor.u32 %v3934_v43, %v3207_v42  ;;  %v579_v37 = vrot.slane %v4474_v27, 1 }
 0x1ce   :  { %4113 = vrcp.f32 %v4494_v49  ;;  %v506_v21 = vand.u32 2147483647, %v4494_v49  ;;  %v508_v25 = vand.u32 2147483648, %v4494_v49  ;;  %vm502_vm4 = vweird.f32 %v4494_v49  ;;  %v3929_v54 = vld [vmem:[#allocation11 + $0x4] sm:$0xf]  ;;  %807 = vmatpush.bf16.msra.mxu1 %v3204_v6 }
 0x1cf   :  { %4115 = vpow2.f32 %v3182_v53  ;;  %v3188_v53 = vor.u32 %v3930_v48, %v3187_v47  ;;  %v3189_v55 = vld [vmem:[#allocation11 + $0xc] sm:$0xf0] }
 0x1d0   :  { %v4110_v62 = vpop.eup %4109  ;;  %vm4520_vm5 = vcmp.eq.f32.partialorder %v506_v21, 8.507059e+37  ;;  %v509_v45 = vor.u32 1.1754944e-38, %v508_v25  ;;  %794 = vmatpush.bf16.msra.mxu0 %v3200_v41  ;;  %v3192_v58 = vor.u32 %v3929_v54, %v3189_v55  ;;  %v4584_v54 = vld [vmem:[#allocation3 + $0x1] ss:$8 sm:$0x7] }
 0x1d1   :  { %v4497_v2 = vadd.f32 1.0, %v4110_v62  ;;  %820 = vmatpush.bf16.msra.mxu2 %v3208_v46  ;;  %v4586_v55 = vld [vmem:[#allocation3 + $0x19] ss:$8 sm:$0x7] }
 0x1d2   :  { %808 = vmatpush.bf16.msra.mxu1 %v3192_v58  ;;  %v873_v59 = vrot.slane %v4586_v55, 1 }
 0x1d3   :  { %v4112_v10 = vpop.eup %4111  ;;  %4117 = vrcp.f32 %v4497_v2  ;;  %v557_v52 = vand.u32 2147483648, %v4497_v2  ;;  %vm551_vm7 = vweird.f32 %v4497_v2  ;;  %v555_v63 = vand.u32 2147483647, %v4497_v2 }
 0x1d4   :  { %v4500_v11 = vpop.eup %4113  ;;  %v4502_v12 = vadd.f32 1.0, %v4112_v10  ;;  %795 = vmatpush.bf16.msra.mxu0 %v3188_v53 }
 0x1d5   :  { %v4116_v16 = vpop.eup %4115  ;;  %v498_v17 = vmul.f32 %v4500_v11, %v4494_v49  ;;  %vm503_vm3 = vweird.f32 %v4500_v11  ;;  %v558_v9 = vor.u32 1.1754944e-38, %v557_v52  ;;  %vm556_vm12 = vcmp.eq.f32.partialorder %v555_v63, 8.507059e+37  ;;  %821 = vmatpush.bf16.msra.mxu2 %v3196_v4 }
 0x1d6   :  { %4119 = vrcp.f32 %v4502_v12  ;;  %v4507_v20 = vadd.f32 1.0, %v4116_v16  ;;  %vm504_vm6 = vmor %vm502_vm4, %vm503_vm3  ;;  %v521_v5 = vand.u32 2147483647, %v4502_v12  ;;  %v523_v7 = vand.u32 2147483648, %v4502_v12 }
 0x1d7   :  { %v499_v23 = vsub.f32 1.0, %v498_v17  ;;  %vm517_vm11 = vweird.f32 %v4502_v12  ;;  %vm603_vm4 = vsmask.f32 256 }
 0x1d8   :  { %4121 = vrcp.f32 %v4507_v20  ;;  %v524_v19 = vor.u32 1.1754944e-38, %v523_v7  ;;  %vm522_vm15 = vcmp.eq.f32.partialorder %v521_v5, 8.507059e+37  ;;  %vm566_vm0 = vweird.f32 %v4507_v20 }
 0x1d9   :  { %v4512_v33 = vpop.eup %4117  ;;  %v500_v35 = vmul.f32 %v4500_v11, %v499_v23  ;;  %v570_v23 = vand.u32 2147483647, %v4507_v20 }
 0x1da   :  { %v547_v39 = vmul.f32 %v4512_v33, %v4497_v2  ;;  %vm552_vm8 = vweird.f32 %v4512_v33  ;;  %v572_v2 = vand.u32 2147483648, %v4507_v20 }
 0x1db   :  { %v501_v44 = vadd.f32 %v4500_v11, %v500_v35  ;;  %vm553_vm10 = vmor %vm551_vm7, %vm552_vm8  ;;  %vm571_vm3 = vcmp.eq.f32.partialorder %v570_v23, 8.507059e+37  ;;  %v3974_v23 = vld [vmem:[#allocation11 + $0xac] sm:$0xf] }
 0x1dc   :  { %v4120_v50 = vpop.eup %4119  ;;  %v548_v51 = vsub.f32 1.0, %v547_v39  ;;  %v573_v30 = vor.u32 1.1754944e-38, %v572_v2 }
 0x1dd   :  { %v505_v56 = vsel %vm504_vm6, %v4500_v11, %v501_v44  ;;  %v513_v57 = vmul.f32 %v4120_v50, %v4502_v12  ;;  %vm518_vm9 = vweird.f32 %v4120_v50  ;;  %vm656_vm6 = vcmask 1041409  }
 0x1de   :  { %v4122_v61 = vpop.eup %4121  ;;  %v549_v62 = vmul.f32 %v4512_v33, %v548_v51  ;;  %v510_v49 = vsel %vm4520_vm5, %v509_v45, %v505_v56  ;;  %vm519_vm13 = vmor %vm517_vm11, %vm518_vm9  ;;  %v872_v56 = vrot.slane %v4584_v54, 1 }
 0x1df   :  { %v562_v0 = vmul.f32 %v4122_v61, %v4507_v20  ;;  %v514_v1 = vsub.f32 1.0, %v513_v57  ;;  %v586_v3 = vmul.f32 %v510_v49, %v4488_v24  ;;  %vm567_vm14 = vweird.f32 %v4122_v61  ;;  %vm4556_vm5 = vmand %vm602_vm2, %vm603_vm4 }
 0x1e0   :  { %v550_v8 = vadd.f32 %v4512_v33, %v549_v62  ;;  %vm568_vm1 = vmor %vm566_vm0, %vm567_vm14 }
 0x1e1   :  { %v563_v10 = vsub.f32 1.0, %v562_v0  ;;  %v515_v11 = vmul.f32 %v4120_v50, %v514_v1  ;;  %v592_v13 = vadd.f32 %v588_v36, %v586_v3 }
 0x1e2   :  { %v554_v14 = vsel %vm553_vm10, %v4512_v33, %v550_v8 }
 0x1e3   :  { %v564_v16 = vmul.f32 %v4122_v61, %v563_v10  ;;  %v516_v17 = vadd.f32 %v4120_v50, %v515_v11  ;;  %v559_v18 = vsel %vm556_vm12, %v558_v9, %v554_v14  ;;  %4123 = vtanh.f32 %v592_v13 }
 0x1e4   :  { %v576_v25 = vsub.f32 1.0, %v559_v18 }
 0x1e5   :  { %v520_v21 = vsel %vm519_vm13, %v4120_v50, %v516_v17  ;;  %v565_v22 = vadd.f32 %v4122_v61, %v564_v16 }
 0x1e6   :  { %v525_v12 = vsel %vm522_vm15, %v524_v19, %v520_v21  ;;  %v581_v32 = vmul.f32 %v576_v25, %v4474_v27  ;;  %v608_v27 = vld [vmem:[%s5527_s8 + $0x4] sm:$0x1]  ;;  %v3373_v21 = vld [vmem:[#allocation11 + $0xa8] sm:$0xf]  ;;  %v3375_v25 = vld [vmem:[#allocation11 + $0xb4] sm:$0xf0] }
 0x1e7   :  { %v587_v24 = vmul.f32 %v584_v15, %v525_v12  ;;  %v569_v28 = vsel %vm568_vm1, %v4122_v61, %v565_v22  ;;  %v3975_v12 = vld [vmem:[#allocation11 + $0xb0] sm:$0xf0] }
 0x1e8   :  { %v574_v35 = vsel %vm571_vm3, %v573_v30, %v569_v28 }
 0x1e9   :  { %v4124_v29 = vpop.eup %4123  ;;  %v593_v31 = vadd.f32 %v589_v26, %v587_v24  ;;  %v577_v38 = vsub.f32 1.0, %v574_v35  ;;  %v3381_v24 = vld [vmem:[#allocation11 + $0xb0] sm:$0xf]  ;;  %v3976_v26 = vld [vmem:[#allocation11 + $0xb8] sm:$0xf0] }
 0x1ea   :  { %v596_v33 = vmul.f32 %v4124_v29, %v559_v18  ;;  %v928_v29 = vrot.slane %v4584_v54, 2 }
 0x1eb   :  { %4125 = vtanh.f32 %v593_v31  ;;  %v582_v42 = vmul.f32 %v579_v37, %v577_v38  ;;  %v3378_v38 = vor.u32 %v3974_v23, %v3375_v25 }
 0x1ec   :  { %v4553_v36 = vadd.f32 %v596_v33, %v581_v32  ;;  %v929_v32 = vrot.slane %v4586_v55, 2  ;;  %v3374_v33 = vor.u32 %v3975_v12, %v3373_v21  ;;  %v3965_v12 = vld [vmem:[#allocation11 + $0x64] sm:$0xf] }
 0x1ed   :  { %1147 = vmatpush.bf16.msrb.mxu0 %v3378_v38 }
 0x1ee   :  { %v600_v39 = vpack.c.bf16 %v4553_v36, %v4553_v36  ;;  %1134 = vmatpush.bf16.msra.mxu3 %v3374_v33 }
 0x1f0   :  { %v606_v40 = vsel %vm4556_vm5, %v600_v39, %v605_v34  ;;  %v649_v46 = vunpack.c.l.b16 %v600_v39  ;;  %v3382_v39 = vor.u32 %v3976_v26, %v3381_v24  ;;  %v3339_v24 = vld [vmem:[#allocation11 + $0x6c] sm:$0xf0]  ;;  %v3967_v26 = vld [vmem:[#allocation11 + $0x70] sm:$0xf0] }
 0x1f1   :  { %v4126_v41 = vpop.eup %4125  ;;  %607 = vst [vmem:[%s5527_s8] sm:$0x1] %v606_v40  ;;  %v3972_v40 = vld [vmem:[#allocation11 + $0x98] sm:$0xf0] }
 0x1f2   :  { %v597_v43 = vmul.f32 %v4126_v41, %v574_v35  ;;  %v3183_v50 = vunpack.i.l.s16 %v649_v46  ;;  %v3361_v35 = vld [vmem:[#allocation11 + $0x90] sm:$0xf]  ;;  %v3971_v41 = vld [vmem:[#allocation11 + $0x94] sm:$0xf]  ;;  %v3363_v46 = vld [vmem:[#allocation11 + $0x9c] sm:$0xf0]  ;;  %1160 = vmatpush.bf16.msrb.mxu1 %v3382_v39 }
 0x1f4   :  { %v4571_v44 = vadd.f32 %v597_v43, %v582_v42 }
 0x1f6   :  { %v601_v45 = vpack.c.bf16 %v4571_v44, %v4571_v44 }
 0x1f8   :  { %v609_v6 = vsel %vm4556_vm5, %v601_v45, %v608_v27  ;;  %v650_v47 = vunpack.c.l.b16 %v601_v45 }
 0x1f9   :  { %610 = vst [vmem:[%s5527_s8 + $0x4] sm:$0x1] %v609_v6  ;;  %v3362_v6 = vor.u32 %v3972_v40, %v3361_v35 }
 0x1fa   :  { %v3184_v48 = vunpack.i.l.s16 %v650_v47  ;;  %v3369_v47 = vld [vmem:[#allocation11 + $0x98] sm:$0xf] }
 0x1fb   :  { %1135 = vmatpush.bf16.msra.mxu3 %v3362_v6 }
 0x1fc   :  { %v655_v51 = vrot.slane %v3184_v48, 7 }
 0x1fe   :  { %v657_v52 = vsel %vm656_vm6, %v655_v51, %v3183_v50 }
 0x1ff   :  { %v658_v53 = vpack.c.b16 %v657_v52, %v657_v52 }
 0x201   :  { %796 = vmatmul.bf16.vlgmr.msra.gmra.mxu0 %v658_v53  ;;  %809 = vmatmul.bf16.vlgmr.msra.gmra.mxu1 %v658_v53 }
 0x202   :  { %822 = vmatmul.bf16.vlgmr.msra.gmra.mxu2 %v658_v53  ;;  %v3366_v53 = vor.u32 %v3971_v41, %v3363_v46  ;;  %v3342_v41 = vor.u32 %v3965_v12, %v3339_v24  ;;  %v3953_v24 = vld [vmem:[#allocation11 + $0x4] sm:$0xf] }
 0x204   :  { %1148 = vmatpush.bf16.msrb.mxu0 %v3366_v53  ;;  %v3327_v53 = vld [vmem:[#allocation11 + $0x54] sm:$0xf0] }
 0x27e   :  { %v797_v57 = vpop.f32.mrf.mxu0  ;;  %v810_v58 = vpop.f32.mrf.mxu1 }
 0x27f   :  { %v828_v60 = vrot.slane %v797_v57, 1  ;;  %v830_v61 = vadd.f32 %v797_v57, %v4584_v54  ;;  %v877_v62 = vrot.slane %v810_v58, 1  ;;  %v879_v49 = vadd.f32 %v872_v56, %v810_v58  ;;  %v3973_v56 = vld [vmem:[#allocation11 + $0xa0] sm:$0xf0]  ;;  %v3349_v57 = vld [vmem:[#allocation11 + $0x78] sm:$0xf] }
 0x280   :  { %v3321_v54 = vld [vmem:[#allocation11 + $0x38] sm:$0xf] }
 0x281   :  { %v831_v63 = vadd.f32 %v828_v60, %v4586_v55  ;;  %v3281_v0 = vmul.f32 -1.442695, %v830_v61  ;;  %v880_v1 = vadd.f32 %v877_v62, %v873_v59  ;;  %v3283_v3 = vmul.f32 -1.442695, %v879_v49  ;;  %v3969_v62 = vld [vmem:[#allocation11 + $0x80] sm:$0xf0] }
 0x282   :  { %v3370_v61 = vor.u32 %v3973_v56, %v3369_v47  ;;  %v3968_v49 = vld [vmem:[#allocation11 + $0x7c] sm:$0xf]  ;;  %v3325_v47 = vld [vmem:[#allocation11 + $0x48] sm:$0xf]  ;;  %v3333_v56 = vld [vmem:[#allocation11 + $0x50] sm:$0xf] }
 0x283   :  { %4127 = vpow2.f32 %v3281_v0  ;;  %v3282_v4 = vmul.f32 -1.442695, %v831_v63  ;;  %v3284_v5 = vmul.f32 -1.442695, %v880_v1  ;;  %v3309_v55 = vld [vmem:[#allocation11 + $0x20] sm:$0xf] }
 0x284   :  { %4129 = vpow2.f32 %v3283_v3  ;;  %v3351_v3 = vld [vmem:[#allocation11 + $0x84] sm:$0xf0]  ;;  %1161 = vmatpush.bf16.msrb.mxu1 %v3370_v61 }
 0x285   :  { %4131 = vpow2.f32 %v3282_v4  ;;  %v4592_v7 = vpop.f32.mrf.mxu2  ;;  %v3357_v4 = vld [vmem:[#allocation11 + $0x80] sm:$0xf] }
 0x286   :  { %4133 = vpow2.f32 %v3284_v5  ;;  %v799_v8 = vpop.f32.mrf.mxu0  ;;  %v812_v9 = vpop.f32.mrf.mxu1  ;;  %v924_v31 = vrot.slane %v4592_v7, 1 }
 0x287   :  { %v3350_v9 = vor.u32 %v3969_v62, %v3349_v57 }
 0x289   :  { %v4128_v10 = vpop.eup %4127  ;;  %1136 = vmatpush.bf16.msra.mxu3 %v3350_v9  ;;  %v3957_v9 = vld [vmem:[#allocation11 + $0x20] sm:$0xf0] }
 0x28a   :  { %v4130_v11 = vpop.eup %4129  ;;  %v4594_v13 = vadd.f32 1.0, %v4128_v10  ;;  %v3970_v10 = vld [vmem:[#allocation11 + $0x88] sm:$0xf0] }
 0x28b   :  { %v4132_v14 = vpop.eup %4131  ;;  %v4596_v15 = vadd.f32 1.0, %v4130_v11  ;;  %v3337_v11 = vld [vmem:[#allocation11 + $0x60] sm:$0xf]  ;;  %v3358_v21 = vor.u32 %v3970_v10, %v3357_v4  ;;  %v3956_v10 = vld [vmem:[#allocation11 + $0x1c] sm:$0xf] }
 0x28c   :  { %v4134_v16 = vpop.eup %4133  ;;  %v4598_v17 = vadd.f32 1.0, %v4132_v14  ;;  %4135 = vrcp.f32 %v4594_v13  ;;  %v849_v19 = vand.u32 2147483647, %v4594_v13  ;;  %v851_v22 = vand.u32 2147483648, %v4594_v13 }
 0x28d   :  { %v4601_v18 = vadd.f32 1.0, %v4134_v16  ;;  %4137 = vrcp.f32 %v4596_v15  ;;  %v825_v2 = vpop.f32.mrf.mxu2  ;;  %v900_v28 = vand.u32 2147483648, %v4596_v15  ;;  %vm845_vm7 = vweird.f32 %v4594_v13  ;;  %1162 = vmatpush.bf16.msrb.mxu1 %v3358_v21  ;;  %v3289_v21 = vld [vmem:[#allocation11] sm:$0xf] }
 0x28e   :  { %4139 = vrcp.f32 %v4598_v17  ;;  %v864_v30 = vand.u32 2147483647, %v4598_v17  ;;  %v4616_v37 = vor.u32 1.1754944e-38, %v851_v22  ;;  %vm4623_vm8 = vcmp.eq.f32.partialorder %v849_v19, 8.507059e+37  ;;  %v3966_v22 = vld [vmem:[#allocation11 + $0x68] sm:$0xf0] }
 0x28f   :  { %4141 = vrcp.f32 %v4601_v18  ;;  %v915_v34 = vand.u32 2147483648, %v4601_v18  ;;  %v898_v45 = vand.u32 2147483647, %v4596_v15  ;;  %v866_v51 = vand.u32 2147483648, %v4598_v17 }
 0x290   :  { %v4633_v52 = vor.u32 1.1754944e-38, %v900_v28  ;;  %vm4642_vm10 = vcmp.eq.f32.partialorder %v864_v30, 8.507059e+37  ;;  %v3354_v2 = vor.u32 %v3968_v49, %v3351_v3  ;;  %vm894_vm14 = vweird.f32 %v4596_v15  ;;  %v3313_v49 = vld [vmem:[#allocation11 + $0x30] sm:$0xf] }
 0x291   :  { %vm860_vm15 = vweird.f32 %v4598_v17  ;;  %v867_v30 = vor.u32 1.1754944e-38, %v866_v51  ;;  %v3338_v38 = vor.u32 %v3966_v22, %v3337_v11  ;;  %v3962_v51 = vld [vmem:[#allocation11 + $0x4c] sm:$0xf]  ;;  %vm909_vm4 = vweird.f32 %v4601_v18  ;;  %v3303_v11 = vld [vmem:[#allocation11 + $0x24] sm:$0xf0] }
 0x292   :  { %v4613_v20 = vpop.eup %4135  ;;  %1149 = vmatpush.bf16.msrb.mxu0 %v3354_v2  ;;  %vm899_vm5 = vcmp.eq.f32.partialorder %v898_v45, 8.507059e+37  ;;  %v3306_v12 = vor.u32 %v3956_v10, %v3303_v11  ;;  %v3998_v10 = vld [vmem:[#allocation11 + $0xac] sm:$0xf]  ;;  %v3477_v11 = vld [vmem:[#allocation11 + $0xb4] sm:$0xf0] }
 0x293   :  { %v4618_v42 = vpop.eup %4137  ;;  %v841_v43 = vmul.f32 %v4613_v20, %v4594_v13  ;;  %vm846_vm9 = vweird.f32 %v4613_v20  ;;  %v3345_v13 = vld [vmem:[#allocation11 + $0x68] sm:$0xf]  ;;  %1137 = vmatpush.bf16.msra.mxu3 %v3338_v38 }
 0x294   :  { %v4628_v48 = vpop.eup %4139  ;;  %v890_v50 = vmul.f32 %v4618_v42, %v4596_v15  ;;  %vm895_vm11 = vweird.f32 %v4618_v42  ;;  %vm4654_vm13 = vmor %vm845_vm7, %vm846_vm9  ;;  %vm950_vm9 = vsmask.f32 7938 }
 0x295   :  { %v4635_v58 = vpop.eup %4141  ;;  %v842_v59 = vsub.f32 1.0, %v841_v43  ;;  %v856_v60 = vmul.f32 %v4628_v48, %v4598_v17  ;;  %vm861_vm12 = vweird.f32 %v4628_v48  ;;  %vm4666_vm0 = vmor %vm894_vm14, %vm895_vm11  ;;  %v3346_v43 = vor.u32 %v3967_v26, %v3345_v13  ;;  %v3291_v13 = vld [vmem:[#allocation11 + $0xc] sm:$0xf0] }
 0x296   :  { %v891_v63 = vsub.f32 1.0, %v890_v50  ;;  %v905_v0 = vmul.f32 %v4635_v58, %v4601_v18  ;;  %vm4676_vm1 = vmor %vm860_vm15, %vm861_vm12  ;;  %vm910_vm3 = vweird.f32 %v4635_v58  ;;  %v3963_v50 = vld [vmem:[#allocation11 + $0x50] sm:$0xf0]  ;;  %1150 = vmatpush.bf16.msrb.mxu0 %v3342_v41 }
 0x297   :  { %v843_v5 = vmul.f32 %v4613_v20, %v842_v59  ;;  %v857_v8 = vsub.f32 1.0, %v856_v60  ;;  %v913_v59 = vand.u32 2147483647, %v4601_v18  ;;  %v916_v60 = vor.u32 1.1754944e-38, %v915_v34  ;;  %vm4703_vm7 = vmor %vm909_vm4, %vm910_vm3  ;;  %1163 = vmatpush.bf16.msrb.mxu1 %v3346_v43 }
 0x298   :  { %v892_v14 = vmul.f32 %v4618_v42, %v891_v63  ;;  %v906_v16 = vsub.f32 1.0, %v905_v0  ;;  %v3326_v45 = vor.u32 %v3963_v50, %v3325_v47  ;;  %v3330_v34 = vor.u32 %v3962_v51, %v3327_v53  ;;  %v3960_v63 = vld [vmem:[#allocation11 + $0x38] sm:$0xf0]  ;;  %v3959_v0 = vld [vmem:[#allocation11 + $0x34] sm:$0xf] }
 0x299   :  { %v844_v23 = vadd.f32 %v4613_v20, %v843_v5  ;;  %v858_v25 = vmul.f32 %v4628_v48, %v857_v8  ;;  %v3301_v8 = vld [vmem:[#allocation11 + $0x18] sm:$0xf]  ;;  %v955_v51 = vld [vmem:[%s5527_s8 + $0x4] sm:$0x1] }
 0x29a   :  { %v907_v28 = vmul.f32 %v4635_v58, %v906_v16  ;;  %v893_v33 = vadd.f32 %v4618_v42, %v892_v14  ;;  %1138 = vmatpush.bf16.msra.mxu3 %v3326_v45  ;;  %1151 = vmatpush.bf16.msrb.mxu0 %v3330_v34  ;;  %v3302_v2 = vor.u32 %v3957_v9, %v3301_v8 }
 0x29b   :  { %v848_v39 = vsel %vm4654_vm13, %v4613_v20, %v844_v23  ;;  %v859_v17 = vadd.f32 %v4628_v48, %v858_v25  ;;  %v3954_v25 = vld [vmem:[#allocation11 + $0x8] sm:$0xf0] }
 0x29c   :  { %v853_v6 = vsel %vm4623_vm8, %v4616_v37, %v848_v39  ;;  %v897_v46 = vsel %vm4666_vm0, %v4618_v42, %v893_v33  ;;  %v908_v20 = vadd.f32 %v4635_v58, %v907_v28  ;;  %v3964_v42 = vld [vmem:[#allocation11 + $0x58] sm:$0xf0]  ;;  %vm914_vm8 = vcmp.eq.f32.partialorder %v913_v59, 8.507059e+37  ;;  %v3297_v28 = vld [vmem:[#allocation11 + $0x8] sm:$0xf] }
 0x29d   :  { %v863_v27 = vsel %vm4676_vm1, %v4628_v48, %v859_v17  ;;  %v926_v37 = vmul.f32 %v853_v6, %v4592_v7  ;;  %v902_v61 = vsel %vm899_vm5, %v4633_v52, %v897_v46  ;;  %v3334_v52 = vor.u32 %v3964_v42, %v3333_v56  ;;  %v952_v6 = vld [vmem:[%s5527_s8] sm:$0x1]  ;;  %v4740_v59 = vld [vmem:[#allocation3 + $0x2] ss:$8 sm:$0x7] }
 0x29e   :  { %v868_v57 = vsel %vm4642_vm10, %v867_v30, %v863_v27  ;;  %v912_v18 = vsel %vm4703_vm7, %v4635_v58, %v908_v20  ;;  %v919_v3 = vsub.f32 1.0, %v902_v61  ;;  %v3314_v58 = vor.u32 %v3960_v63, %v3313_v49  ;;  %v3955_v30 = vld [vmem:[#allocation11 + $0x10] sm:$0xf0]  ;;  %vm951_vm10 = vmand %vm602_vm2, %vm950_vm9 }
 0x29f   :  { %v927_v62 = vmul.f32 %v924_v31, %v868_v57  ;;  %v932_v15 = vadd.f32 %v928_v29, %v926_v37  ;;  %v3315_v31 = vld [vmem:[#allocation11 + $0x3c] sm:$0xf0]  ;;  %v3961_v29 = vld [vmem:[#allocation11 + $0x40] sm:$0xf0]  ;;  %v917_v1 = vsel %vm914_vm8, %v916_v60, %v912_v18  ;;  %1164 = vmatpush.bf16.msrb.mxu1 %v3334_v52  ;;  %v3294_v39 = vor.u32 %v3953_v24, %v3291_v13  ;;  %v3471_v13 = vld [vmem:[#allocation11 + $0x98] sm:$0xf] }
 0x2a0   :  { %v3318_v4 = vor.u32 %v3959_v0, %v3315_v31  ;;  %v3322_v5 = vor.u32 %v3961_v29, %v3321_v54  ;;  %v920_v14 = vsub.f32 1.0, %v917_v1  ;;  %v921_v19 = vmul.f32 %v919_v3, %v4553_v36  ;;  %1139 = vmatpush.bf16.msra.mxu3 %v3314_v58  ;;  %v4742_v60 = vld [vmem:[#allocation3 + $0x1a] ss:$8 sm:$0x7]  ;;  %v3465_v24 = vld [vmem:[#allocation11 + $0x9c] sm:$0xf0] }
 0x2a1   :  { %v933_v7 = vadd.f32 %v929_v32, %v927_v62  ;;  %4143 = vtanh.f32 %v932_v15  ;;  %v3958_v32 = vld [vmem:[#allocation11 + $0x28] sm:$0xf0]  ;;  %v3290_v36 = vor.u32 %v3954_v25, %v3289_v21  ;;  %v3298_v40 = vor.u32 %v3955_v30, %v3297_v28  ;;  %v3995_v25 = vld [vmem:[#allocation11 + $0x94] sm:$0xf]  ;;  %v3997_v30 = vld [vmem:[#allocation11 + $0xa0] sm:$0xf0] }
 0x2a2   :  { %1152 = vmatpush.bf16.msrb.mxu0 %v3318_v4  ;;  %v3310_v23 = vor.u32 %v3958_v32, %v3309_v55  ;;  %v922_v33 = vmul.f32 %v920_v14, %v4571_v44  ;;  %v1219_v62 = vrot.slane %v4742_v60, 1  ;;  %v3475_v4 = vld [vmem:[#allocation11 + $0xa8] sm:$0xf]  ;;  %v3480_v32 = vor.u32 %v3998_v10, %v3477_v11  ;;  %v3483_v14 = vld [vmem:[#allocation11 + $0xb0] sm:$0xf] }
 0x2a3   :  { %4145 = vtanh.f32 %v933_v7  ;;  %1165 = vmatpush.bf16.msrb.mxu1 %v3322_v5  ;;  %v3999_v5 = vld [vmem:[#allocation11 + $0xb0] sm:$0xf0]  ;;  %v3468_v28 = vor.u32 %v3995_v25, %v3465_v24  ;;  %v3988_v10 = vld [vmem:[#allocation11 + $0x58] sm:$0xf0]  ;;  %v3415_v11 = vld [vmem:[#allocation11 + $0x30] sm:$0xf] }
 0x2a4   :  { %1140 = vmatpush.bf16.msra.mxu3 %v3302_v2  ;;  %v3476_v9 = vor.u32 %v3999_v5, %v3475_v4  ;;  %v3429_v4 = vld [vmem:[#allocation11 + $0x54] sm:$0xf0]  ;;  %v3435_v5 = vld [vmem:[#allocation11 + $0x50] sm:$0xf] }
 0x2a6   :  { %1153 = vmatpush.bf16.msrb.mxu0 %v3306_v12  ;;  %1477 = vmatpush.bf16.msrb.mxu2 %v3476_v9 }
 0x2a7   :  { %v4144_v16 = vpop.eup %4143  ;;  %1166 = vmatpush.bf16.msrb.mxu1 %v3310_v23 }
 0x2a8   :  { %v936_v22 = vmul.f32 %v4144_v16, %v902_v61  ;;  %1141 = vmatpush.bf16.msra.mxu3 %v3290_v36  ;;  %v1218_v61 = vrot.slane %v4740_v59, 1  ;;  %v4000_v16 = vld [vmem:[#allocation11 + $0xb8] sm:$0xf0]  ;;  %v3472_v36 = vor.u32 %v3997_v30, %v3471_v13  ;;  %v3423_v30 = vld [vmem:[#allocation11 + $0x38] sm:$0xf] }
 0x2a9   :  { %v4146_v26 = vpop.eup %4145  ;;  %v3484_v12 = vor.u32 %v4000_v16, %v3483_v14 }
 0x2aa   :  { %v937_v35 = vmul.f32 %v4146_v26, %v917_v1  ;;  %v4718_v38 = vadd.f32 %v936_v22, %v921_v19  ;;  %1154 = vmatpush.bf16.msrb.mxu0 %v3294_v39  ;;  %v3463_v19 = vld [vmem:[#allocation11 + $0x90] sm:$0xf]  ;;  %v3996_v22 = vld [vmem:[#allocation11 + $0x98] sm:$0xf0]  ;;  %v3993_v39 = vld [vmem:[#allocation11 + $0x80] sm:$0xf0] }
 0x2ab   :  { %1167 = vmatpush.bf16.msrb.mxu1 %v3298_v40  ;;  %v3464_v23 = vor.u32 %v3996_v22, %v3463_v19  ;;  %v3992_v40 = vld [vmem:[#allocation11 + $0x7c] sm:$0xf]  ;;  %v3417_v22 = vld [vmem:[#allocation11 + $0x3c] sm:$0xf0] }
 0x2ac   :  { %v4720_v17 = vadd.f32 %v937_v35, %v922_v33  ;;  %v940_v41 = vpack.c.bf16 %v4718_v38, %v4718_v38  ;;  %1490 = vmatpush.bf16.msrb.mxu3 %v3480_v32  ;;  %v3451_v33 = vld [vmem:[#allocation11 + $0x78] sm:$0xf] }
 0x2ad   :  { %1478 = vmatpush.bf16.msrb.mxu2 %v3464_v23 }
 0x2ae   :  { %v941_v44 = vpack.c.bf16 %v4720_v17, %v4720_v17  ;;  %v943_v43 = vshll.u32 %v940_v41, 16  ;;  %v996_v47 = vunpack.c.l.b16 %v940_v41  ;;  %1503 = vmatpush.bf16.msra.mxu0 %v3484_v12 }
 0x2b0   :  { %v946_v46 = vshll.u32 %v941_v44, 16  ;;  %v953_v20 = vsel %vm951_vm10, %v943_v43, %v952_v6  ;;  %v997_v50 = vunpack.c.l.b16 %v941_v44  ;;  %v3285_v53 = vunpack.i.l.s16 %v996_v47  ;;  %1491 = vmatpush.bf16.msrb.mxu3 %v3468_v28  ;;  %v3453_v43 = vld [vmem:[#allocation11 + $0x84] sm:$0xf0] }
 0x2b1   :  { %954 = vst [vmem:[%s5527_s8] sm:$0x1] %v953_v20  ;;  %v3452_v44 = vor.u32 %v3993_v39, %v3451_v33  ;;  %v3459_v20 = vld [vmem:[#allocation11 + $0x80] sm:$0xf]  ;;  %v3985_v33 = vld [vmem:[#allocation11 + $0x40] sm:$0xf0] }
 0x2b2   :  { %v956_v27 = vsel %vm951_vm10, %v946_v46, %v955_v51  ;;  %v3286_v37 = vunpack.i.l.s16 %v997_v50  ;;  %1504 = vmatpush.bf16.msra.mxu0 %v3472_v36  ;;  %v3456_v50 = vor.u32 %v3992_v40, %v3453_v43  ;;  %v3994_v51 = vld [vmem:[#allocation11 + $0x88] sm:$0xf0] }
 0x2b3   :  { %957 = vst [vmem:[%s5527_s8 + $0x4] sm:$0x1] %v956_v27  ;;  %v3439_v27 = vld [vmem:[#allocation11 + $0x60] sm:$0xf]  ;;  %1479 = vmatpush.bf16.msrb.mxu2 %v3452_v44  ;;  %v3981_v44 = vld [vmem:[#allocation11 + $0x20] sm:$0xf0] }
 0x2b4   :  { %v1002_v56 = vrot.slane %v3286_v37, 7  ;;  %v3990_v37 = vld [vmem:[#allocation11 + $0x68] sm:$0xf0]  ;;  %1492 = vmatpush.bf16.msrb.mxu3 %v3456_v50  ;;  %v3980_v50 = vld [vmem:[#allocation11 + $0x1c] sm:$0xf] }
 0x2b6   :  { %v1003_v42 = vsel %vm656_vm6, %v1002_v56, %v3285_v53  ;;  %v3989_v56 = vld [vmem:[#allocation11 + $0x64] sm:$0xf] }
 0x2b7   :  { %v1004_v57 = vpack.c.b16 %v1003_v42, %v1003_v42  ;;  %v1274_v42 = vrot.slane %v4740_v59, 2 }
 0x2b9   :  { %1142 = vmatmul.bf16.vlgmr.msra.gmra.mxu3 %v1004_v57  ;;  %1155 = vmatmul.bf16.vlgmr.msrb.gmra.mxu0 %v1004_v57 }
 0x2ba   :  { %1168 = vmatmul.bf16.vlgmr.msrb.gmra.mxu1 %v1004_v57  ;;  %v1275_v57 = vrot.slane %v4742_v60, 2 }
 0x336   :  { %v1156_v48 = vpop.f32.mrf.mxu0 }
 0x337   :  { %v1223_v15 = vrot.slane %v1156_v48, 1  ;;  %v1225_v45 = vadd.f32 %v1218_v61, %v1156_v48  ;;  %v4746_v18 = vpop.f32.mrf.mxu1  ;;  %v3441_v61 = vld [vmem:[#allocation11 + $0x6c] sm:$0xf0]  ;;  %v3447_v48 = vld [vmem:[#allocation11 + $0x68] sm:$0xf] }
 0x339   :  { %v1226_v34 = vadd.f32 %v1223_v15, %v1219_v62  ;;  %v3385_v52 = vmul.f32 -1.442695, %v1225_v45  ;;  %v3460_v45 = vor.u32 %v3994_v51, %v3459_v20  ;;  %v3405_v51 = vld [vmem:[#allocation11 + $0x24] sm:$0xf0] }
 0x33b   :  { %4147 = vpow2.f32 %v3385_v52  ;;  %v3386_v49 = vmul.f32 -1.442695, %v1226_v34  ;;  %v3440_v34 = vor.u32 %v3990_v37, %v3439_v27  ;;  %v3991_v52 = vld [vmem:[#allocation11 + $0x70] sm:$0xf0]  ;;  %1505 = vmatpush.bf16.msra.mxu0 %v3460_v45  ;;  %v3424_v45 = vor.u32 %v3985_v33, %v3423_v30 }
 0x33c   :  { %v1143_v63 = vpop.f32.mrf.mxu3 }
 0x33d   :  { %4149 = vpow2.f32 %v3386_v49  ;;  %v1174_v0 = vrot.slane %v1143_v63, 1  ;;  %v1176_v7 = vadd.f32 %v1143_v63, %v4740_v59  ;;  %v3427_v49 = vld [vmem:[#allocation11 + $0x48] sm:$0xf]  ;;  %1480 = vmatpush.bf16.msrb.mxu2 %v3440_v34 }
 0x33e   :  { %v1158_v31 = vpop.f32.mrf.mxu0 }
 0x33f   :  { %v1177_v54 = vadd.f32 %v1174_v0, %v4742_v60  ;;  %v3383_v29 = vmul.f32 -1.442695, %v1176_v7  ;;  %v1171_v1 = vpop.f32.mrf.mxu1  ;;  %v1270_v0 = vrot.slane %v4746_v18, 1  ;;  %v3444_v7 = vor.u32 %v3989_v56, %v3441_v61  ;;  %v3987_v31 = vld [vmem:[#allocation11 + $0x50] sm:$0xf0] }
 0x341   :  { %v4148_v3 = vpop.eup %4147  ;;  %4151 = vpow2.f32 %v3383_v29  ;;  %v3384_v58 = vmul.f32 -1.442695, %v1177_v54  ;;  %v3986_v54 = vld [vmem:[#allocation11 + $0x4c] sm:$0xf]  ;;  %1493 = vmatpush.bf16.msrb.mxu3 %v3444_v7  ;;  %v3408_v7 = vor.u32 %v3980_v50, %v3405_v51 }
 0x342   :  { %v4750_v8 = vadd.f32 1.0, %v4148_v3  ;;  %v3448_v3 = vor.u32 %v3991_v52, %v3447_v48  ;;  %v3432_v19 = vor.u32 %v3986_v54, %v3429_v4  ;;  %v3411_v52 = vld [vmem:[#allocation11 + $0x20] sm:$0xf]  ;;  %v3977_v4 = vld [vmem:[#allocation11 + $0x4] sm:$0xf] }
 0x343   :  { %v4150_v55 = vpop.eup %4149  ;;  %4153 = vpow2.f32 %v3384_v58  ;;  %v3428_v58 = vor.u32 %v3987_v31, %v3427_v49  ;;  %v3982_v31 = vld [vmem:[#allocation11 + $0x28] sm:$0xf0]  ;;  %v3391_v54 = vld [vmem:[#allocation11] sm:$0xf] }
 0x344   :  { %v4752_v2 = vadd.f32 1.0, %v4150_v55  ;;  %4155 = vrcp.f32 %v4750_v8  ;;  %v1145_v21 = vpop.f32.mrf.mxu3  ;;  %v1244_v62 = vand.u32 2147483647, %v4750_v8  ;;  %v3984_v55 = vld [vmem:[#allocation11 + $0x38] sm:$0xf0]  ;;  %vm1240_vm2 = vweird.f32 %v4750_v8  ;;  %1506 = vmatpush.bf16.msra.mxu0 %v3448_v3 }
 0x345   :  { %v1246_v14 = vand.u32 2147483648, %v4750_v8  ;;  %v3983_v21 = vld [vmem:[#allocation11 + $0x34] sm:$0xf]  ;;  %1481 = vmatpush.bf16.msrb.mxu2 %v3428_v58  ;;  %v3416_v28 = vor.u32 %v3984_v55, %v3415_v11  ;;  %1494 = vmatpush.bf16.msrb.mxu3 %v3432_v19 }
 0x346   :  { %4157 = vrcp.f32 %v4752_v2  ;;  %vm1255_vm12 = vweird.f32 %v4752_v2  ;;  %v3420_v40 = vor.u32 %v3983_v21, %v3417_v22  ;;  %v1261_v20 = vand.u32 2147483648, %v4752_v2 }
 0x347   :  { %v4152_v26 = vpop.eup %4151  ;;  %v1259_v11 = vand.u32 2147483647, %v4752_v2  ;;  %v1247_v21 = vor.u32 1.1754944e-38, %v1246_v14  ;;  %vm1245_vm10 = vcmp.eq.f32.partialorder %v1244_v62, 8.507059e+37 }
 0x348   :  { %v4756_v35 = vadd.f32 1.0, %v4152_v26  ;;  %v3436_v26 = vor.u32 %v3988_v10, %v3435_v5  ;;  %v3393_v5 = vld [vmem:[#allocation11 + $0xc] sm:$0xf0]  ;;  %v1262_v14 = vor.u32 1.1754944e-38, %v1261_v20 }
 0x349   :  { %v4154_v41 = vpop.eup %4153  ;;  %1482 = vmatpush.bf16.msrb.mxu2 %v3416_v28  ;;  %1495 = vmatpush.bf16.msrb.mxu3 %v3420_v40 }
 0x34a   :  { %v4758_v6 = vpop.eup %4155  ;;  %v4760_v46 = vadd.f32 1.0, %v4154_v41  ;;  %4159 = vrcp.f32 %v4756_v35  ;;  %v1195_v1 = vand.u32 2147483647, %v4756_v35  ;;  %v1197_v25 = vand.u32 2147483648, %v4756_v35  ;;  %v3403_v41 = vld [vmem:[#allocation11 + $0x18] sm:$0xf]  ;;  %1507 = vmatpush.bf16.msra.mxu0 %v3436_v26 }
 0x34b   :  { %v1236_v47 = vmul.f32 %v4758_v6, %v4750_v8  ;;  %vm1241_vm11 = vweird.f32 %v4758_v6  ;;  %vm1191_vm14 = vweird.f32 %v4756_v35  ;;  %v3404_v34 = vor.u32 %v3981_v44, %v3403_v41 }
 0x34c   :  { %v4765_v53 = vpop.eup %4157  ;;  %4161 = vrcp.f32 %v4760_v46  ;;  %v1210_v13 = vand.u32 2147483647, %v4760_v46  ;;  %vm4801_vm15 = vmor %vm1240_vm2, %vm1241_vm11  ;;  %vm4814_vm3 = vcmp.eq.f32.partialorder %v1195_v1, 8.507059e+37  ;;  %vm1206_vm4 = vweird.f32 %v4760_v46  ;;  %v3978_v1 = vld [vmem:[#allocation11 + $0x8] sm:$0xf0] }
 0x34d   :  { %v1251_v15 = vmul.f32 %v4765_v53, %v4752_v2  ;;  %v1237_v63 = vsub.f32 1.0, %v1236_v47  ;;  %v1212_v47 = vand.u32 2147483648, %v4760_v46  ;;  %vm1256_vm5 = vweird.f32 %v4765_v53  ;;  %1483 = vmatpush.bf16.msrb.mxu2 %v3404_v34  ;;  %1496 = vmatpush.bf16.msrb.mxu3 %v3408_v7 }
 0x34e   :  { %vm1211_vm8 = vcmp.eq.f32.partialorder %v1210_v13, 8.507059e+37  ;;  %1508 = vmatpush.bf16.msra.mxu0 %v3424_v45  ;;  %v3392_v19 = vor.u32 %v3978_v1, %v3391_v54  ;;  %vm4841_vm9 = vmor %vm1255_vm12, %vm1256_vm5  ;;  %vm1260_vm2 = vcmp.eq.f32.partialorder %v1259_v11, 8.507059e+37  ;;  %vm1295_vm11 = vsmask.f32 1280  ;;  %v3579_v11 = vld [vmem:[#allocation11 + $0xb4] sm:$0xf0] }
 0x34f   :  { %v1252_v16 = vsub.f32 1.0, %v1251_v15  ;;  %v1238_v12 = vmul.f32 %v4758_v6, %v1237_v63  ;;  %v1198_v15 = vor.u32 1.1754944e-38, %v1197_v25  ;;  %v3979_v25 = vld [vmem:[#allocation11 + $0x10] sm:$0xf0]  ;;  %vm1296_vm12 = vmand %vm656_vm6, %vm1295_vm11 }
 0x350   :  { %v4774_v29 = vpop.eup %4159 }
 0x351   :  { %v1187_v9 = vmul.f32 %v4774_v29, %v4756_v35  ;;  %vm1192_vm13 = vweird.f32 %v4774_v29  ;;  %v1253_v43 = vmul.f32 %v4765_v53, %v1252_v16  ;;  %v1239_v27 = vadd.f32 %v4758_v6, %v1238_v12  ;;  %1484 = vmatpush.bf16.msrb.mxu2 %v3392_v19  ;;  %v4884_v35 = vld [vmem:[#allocation3 + $0x1b] ss:$8 sm:$0x7] }
 0x352   :  { %v4779_v32 = vpop.eup %4161  ;;  %vm4810_vm1 = vmor %vm1191_vm14, %vm1192_vm13  ;;  %v3412_v16 = vor.u32 %v3982_v31, %v3411_v52  ;;  %v3396_v12 = vor.u32 %v3977_v4, %v3393_v5  ;;  %v3577_v4 = vld [vmem:[#allocation11 + $0xa8] sm:$0xf]  ;;  %v4023_v5 = vld [vmem:[#allocation11 + $0xb0] sm:$0xf0] }
 0x353   :  { %v1188_v23 = vsub.f32 1.0, %v1187_v9  ;;  %v1202_v24 = vmul.f32 %v4779_v32, %v4760_v46  ;;  %vm1207_vm0 = vweird.f32 %v4779_v32  ;;  %v1254_v3 = vadd.f32 %v4765_v53, %v1253_v43  ;;  %v4024_v19 = vld [vmem:[#allocation11 + $0xb8] sm:$0xf0] }
 0x354   :  { %vm1208_vm7 = vmor %vm1206_vm4, %vm1207_vm0  ;;  %v1243_v46 = vsel %vm4801_vm15, %v4758_v6, %v1239_v27  ;;  %1509 = vmatpush.bf16.msra.mxu0 %v3412_v16  ;;  %1497 = vmatpush.bf16.msrb.mxu3 %v3396_v12  ;;  %v3585_v16 = vld [vmem:[#allocation11 + $0xb0] sm:$0xf]  ;;  %v4020_v12 = vld [vmem:[#allocation11 + $0x98] sm:$0xf0] }
 0x355   :  { %v1189_v36 = vmul.f32 %v4774_v29, %v1188_v23  ;;  %v1203_v39 = vsub.f32 1.0, %v1202_v24  ;;  %v3399_v23 = vld [vmem:[#allocation11 + $0x8] sm:$0xf]  ;;  %v1258_v2 = vsel %vm4841_vm9, %v4765_v53, %v1254_v3 }
 0x356   :  { %v3400_v59 = vor.u32 %v3979_v25, %v3399_v23  ;;  %v4019_v23 = vld [vmem:[#allocation11 + $0x94] sm:$0xf]  ;;  %v3567_v25 = vld [vmem:[#allocation11 + $0x9c] sm:$0xf0] }
 0x357   :  { %v1190_v56 = vadd.f32 %v4774_v29, %v1189_v36  ;;  %v1204_v61 = vmul.f32 %v4779_v32, %v1203_v39  ;;  %v1297_v36 = vld [vmem:[%s5527_s8] sm:$0x2] }
 0x358   :  { %1510 = vmatpush.bf16.msra.mxu0 %v3400_v59  ;;  %v3553_v59 = vld [vmem:[#allocation11 + $0x78] sm:$0xf] }
 0x359   :  { %v1194_v49 = vsel %vm4810_vm1, %v4774_v29, %v1190_v56  ;;  %v1205_v63 = vadd.f32 %v4779_v32, %v1204_v61  ;;  %v1213_v29 = vor.u32 1.1754944e-38, %v1212_v47  ;;  %v4882_v61 = vld [vmem:[#allocation3 + $0x3] ss:$8 sm:$0x7] }
 0x35a   :  { %v1199_v58 = vsel %vm4814_vm3, %v1198_v15, %v1194_v49  ;;  %v1561_v45 = vrot.slane %v4882_v61, 1  ;;  %v1562_v49 = vrot.slane %v4884_v35, 1 }
 0x35b   :  { %v1209_v9 = vsel %vm1208_vm7, %v4779_v32, %v1205_v63  ;;  %v1272_v10 = vmul.f32 %v1199_v58, %v4746_v18  ;;  %v1248_v18 = vsel %vm1245_vm10, %v1247_v21, %v1243_v46  ;;  %v3565_v21 = vld [vmem:[#allocation11 + $0x90] sm:$0xf] }
 0x35c   :  { %v1214_v55 = vsel %vm1211_vm8, %v1213_v29, %v1209_v9  ;;  %v3578_v9 = vor.u32 %v4023_v5, %v3577_v4 }
 0x35d   :  { %v1273_v32 = vmul.f32 %v1270_v0, %v1214_v55  ;;  %v1278_v22 = vadd.f32 %v1274_v42, %v1272_v10  ;;  %v1263_v42 = vsel %vm1260_vm2, %v1262_v14, %v1258_v2  ;;  %v1265_v0 = vsub.f32 1.0, %v1248_v18  ;;  %v4022_v10 = vld [vmem:[#allocation11 + $0xac] sm:$0xf] }
 0x35e   :  { %v1266_v8 = vsub.f32 1.0, %v1263_v42  ;;  %v3582_v55 = vor.u32 %v4022_v10, %v3579_v11  ;;  %1825 = vmatpush.bf16.msra.mxu1 %v3578_v9  ;;  %v3566_v2 = vor.u32 %v4020_v12, %v3565_v21  ;;  %v3570_v14 = vor.u32 %v4019_v23, %v3567_v25  ;;  %v3517_v10 = vld [vmem:[#allocation11 + $0x30] sm:$0xf]  ;;  %v4008_v11 = vld [vmem:[#allocation11 + $0x38] sm:$0xf0] }
 0x35f   :  { %v1279_v24 = vadd.f32 %v1275_v57, %v1273_v32  ;;  %4163 = vtanh.f32 %v1278_v22  ;;  %v1267_v13 = vmul.f32 %v1265_v0, %v4718_v38  ;;  %v3586_v22 = vor.u32 %v4024_v19, %v3585_v16  ;;  %v4017_v0 = vld [vmem:[#allocation11 + $0x80] sm:$0xf0] }
 0x360   :  { %v1268_v60 = vmul.f32 %v1266_v8, %v4720_v17  ;;  %v1300_v17 = vld [vmem:[%s5527_s8 + $0x4] sm:$0x2]  ;;  %1838 = vmatpush.bf16.msra.mxu2 %v3582_v55  ;;  %v4016_v8 = vld [vmem:[#allocation11 + $0x7c] sm:$0xf] }
 0x361   :  { %4165 = vtanh.f32 %v1279_v24  ;;  %v3573_v24 = vld [vmem:[#allocation11 + $0x98] sm:$0xf]  ;;  %1851 = vmatpush.bf16.msra.mxu3 %v3586_v22  ;;  %v3519_v22 = vld [vmem:[#allocation11 + $0x3c] sm:$0xf0] }
 0x362   :  { %1826 = vmatpush.bf16.msra.mxu1 %v3566_v2  ;;  %v3525_v2 = vld [vmem:[#allocation11 + $0x38] sm:$0xf] }
 0x364   :  { %1839 = vmatpush.bf16.msra.mxu2 %v3570_v14  ;;  %v4009_v14 = vld [vmem:[#allocation11 + $0x40] sm:$0xf0] }
 0x365   :  { %v4164_v62 = vpop.eup %4163 }
 0x366   :  { %v1282_v53 = vmul.f32 %v4164_v62, %v1248_v18  ;;  %v4021_v18 = vld [vmem:[#allocation11 + $0xa0] sm:$0xf0]  ;;  %v3555_v62 = vld [vmem:[#allocation11 + $0x84] sm:$0xf0] }
 0x367   :  { %v4166_v26 = vpop.eup %4165 }
 0x368   :  { %v1283_v57 = vmul.f32 %v4166_v26, %v1263_v42  ;;  %v4858_v28 = vadd.f32 %v1282_v53, %v1267_v13  ;;  %v3574_v42 = vor.u32 %v4021_v18, %v3573_v24  ;;  %v3561_v53 = vld [vmem:[#allocation11 + $0x80] sm:$0xf]  ;;  %v4018_v26 = vld [vmem:[#allocation11 + $0x88] sm:$0xf0] }
 0x36a   :  { %v4860_v30 = vadd.f32 %v1283_v57, %v1268_v60  ;;  %v1286_v33 = vpack.c.bf16 %v4858_v28, %v4858_v28  ;;  %1852 = vmatpush.bf16.msra.mxu3 %v3574_v42 }
 0x36c   :  { %v1287_v38 = vpack.c.bf16 %v4860_v30, %v4860_v30  ;;  %v1290_v39 = vrot.slane %v1286_v33, 7  ;;  %v1339_v44 = vunpack.c.l.b16 %v1286_v33  ;;  %v3554_v33 = vor.u32 %v4017_v0, %v3553_v59 }
 0x36d   :  { %v3518_v0 = vor.u32 %v4008_v11, %v3517_v10  ;;  %v4003_v10 = vld [vmem:[#allocation11 + $0x10] sm:$0xf0] }
 0x36e   :  { %v1291_v40 = vrot.slane %v1287_v38, 7  ;;  %v1298_v41 = vsel %vm1296_vm12, %v1290_v39, %v1297_v36  ;;  %v1340_v43 = vunpack.c.l.b16 %v1287_v38  ;;  %v3387_v50 = vunpack.i.l.s16 %v1339_v44  ;;  %1827 = vmatpush.bf16.msra.mxu1 %v3554_v33 }
 0x36f   :  { %1299 = vst [vmem:[%s5527_s8] sm:$0x2] %v1298_v41  ;;  %v3558_v39 = vor.u32 %v4016_v8, %v3555_v62 }
 0x370   :  { %v1301_v20 = vsel %vm1296_vm12, %v1291_v40, %v1300_v17  ;;  %v3388_v47 = vunpack.i.l.s16 %v1340_v43  ;;  %v3541_v17 = vld [vmem:[#allocation11 + $0x60] sm:$0xf]  ;;  %v4014_v40 = vld [vmem:[#allocation11 + $0x68] sm:$0xf0]  ;;  %v3562_v43 = vor.u32 %v4018_v26, %v3561_v53  ;;  %v3505_v53 = vld [vmem:[#allocation11 + $0x18] sm:$0xf] }
 0x371   :  { %1302 = vst [vmem:[%s5527_s8 + $0x4] sm:$0x2] %v1301_v20  ;;  %1840 = vmatpush.bf16.msra.mxu2 %v3558_v39  ;;  %v4005_v26 = vld [vmem:[#allocation11 + $0x20] sm:$0xf0]  ;;  %v4004_v39 = vld [vmem:[#allocation11 + $0x1c] sm:$0xf] }
 0x372   :  { %v1345_v51 = vrot.slane %v3388_v47, 7  ;;  %v4013_v47 = vld [vmem:[#allocation11 + $0x64] sm:$0xf]  ;;  %1853 = vmatpush.bf16.msra.mxu3 %v3562_v43 }
 0x374   :  { %v1346_v27 = vsel %vm656_vm6, %v1345_v51, %v3387_v50  ;;  %v3542_v51 = vor.u32 %v4014_v40, %v3541_v17  ;;  %v3507_v17 = vld [vmem:[#allocation11 + $0x24] sm:$0xf0] }
 0x375   :  { %v1347_v37 = vpack.c.b16 %v1346_v27, %v1346_v27  ;;  %v3543_v27 = vld [vmem:[#allocation11 + $0x6c] sm:$0xf0] }
 0x376   :  { %1828 = vmatpush.bf16.msra.mxu1 %v3542_v51 }
 0x377   :  { %1485 = vmatmul.bf16.vlgmr.msrb.gmra.mxu2 %v1347_v37  ;;  %1498 = vmatmul.bf16.vlgmr.msrb.gmra.mxu3 %v1347_v37 }
 0x378   :  { %1511 = vmatmul.bf16.vlgmr.msra.gmra.mxu0 %v1347_v37  ;;  %v3549_v37 = vld [vmem:[#allocation11 + $0x68] sm:$0xf] }
 0x3f5   :  { %v4880_v56 = vpop.f32.mrf.mxu0 }
 0x3fa   :  { %v1486_v48 = vpop.f32.mrf.mxu2  ;;  %v1499_v15 = vpop.f32.mrf.mxu3 }
 0x3fb   :  { %v1517_v34 = vrot.slane %v1486_v48, 1  ;;  %v1519_v52 = vadd.f32 %v1486_v48, %v4882_v61  ;;  %v1566_v63 = vrot.slane %v1499_v15, 1  ;;  %v1568_v7 = vadd.f32 %v1561_v45, %v1499_v15  ;;  %v4015_v48 = vld [vmem:[#allocation11 + $0x70] sm:$0xf0]  ;;  %v3529_v15 = vld [vmem:[#allocation11 + $0x48] sm:$0xf] }
 0x3fc   :  { %v4011_v45 = vld [vmem:[#allocation11 + $0x50] sm:$0xf0] }
 0x3fd   :  { %v1520_v31 = vadd.f32 %v1517_v34, %v4884_v35  ;;  %v3485_v54 = vmul.f32 -1.442695, %v1519_v52  ;;  %v1514_v1 = vpop.f32.mrf.mxu0  ;;  %v1569_v3 = vadd.f32 %v1566_v63, %v1562_v49  ;;  %v3487_v58 = vmul.f32 -1.442695, %v1568_v7  ;;  %v4010_v49 = vld [vmem:[#allocation11 + $0x4c] sm:$0xf] }
 0x3fe   :  { %v1617_v52 = vrot.slane %v4882_v61, 2  ;;  %v3531_v63 = vld [vmem:[#allocation11 + $0x54] sm:$0xf0]  ;;  %v3537_v7 = vld [vmem:[#allocation11 + $0x50] sm:$0xf]  ;;  %v3546_v1 = vor.u32 %v4013_v47, %v3543_v27 }
 0x3ff   :  { %4167 = vpow2.f32 %v3485_v54  ;;  %v3486_v29 = vmul.f32 -1.442695, %v1520_v31  ;;  %v3488_v46 = vmul.f32 -1.442695, %v1569_v3  ;;  %v1613_v54 = vrot.slane %v4880_v56, 1 }
 0x400   :  { %4169 = vpow2.f32 %v3487_v58  ;;  %v3550_v3 = vor.u32 %v4015_v48, %v3549_v37  ;;  %v3530_v58 = vor.u32 %v4011_v45, %v3529_v15  ;;  %1841 = vmatpush.bf16.msra.mxu2 %v3546_v1  ;;  %v3534_v21 = vor.u32 %v4010_v49, %v3531_v63  ;;  %v3513_v47 = vld [vmem:[#allocation11 + $0x20] sm:$0xf] }
 0x401   :  { %4171 = vpow2.f32 %v3486_v29  ;;  %v4012_v29 = vld [vmem:[#allocation11 + $0x58] sm:$0xf0]  ;;  %v3506_v48 = vor.u32 %v4005_v26, %v3505_v53  ;;  %v3493_v63 = vld [vmem:[#allocation11] sm:$0xf] }
 0x402   :  { %4173 = vpow2.f32 %v3488_v46  ;;  %v1488_v6 = vpop.f32.mrf.mxu2  ;;  %v1501_v32 = vpop.f32.mrf.mxu3  ;;  %1854 = vmatpush.bf16.msra.mxu3 %v3550_v3  ;;  %1829 = vmatpush.bf16.msra.mxu1 %v3530_v58  ;;  %v4001_v3 = vld [vmem:[#allocation11 + $0x4] sm:$0xf]  ;;  %v3495_v46 = vld [vmem:[#allocation11 + $0xc] sm:$0xf0] }
 0x403   :  { %v3538_v6 = vor.u32 %v4012_v29, %v3537_v7  ;;  %v4007_v32 = vld [vmem:[#allocation11 + $0x34] sm:$0xf]  ;;  %v4002_v7 = vld [vmem:[#allocation11 + $0x8] sm:$0xf0] }
 0x404   :  { %1842 = vmatpush.bf16.msra.mxu2 %v3534_v21  ;;  %v3522_v33 = vor.u32 %v4007_v32, %v3519_v22  ;;  %v1618_v21 = vrot.slane %v4884_v35, 2 }
 0x405   :  { %v4168_v13 = vpop.eup %4167 }
 0x406   :  { %v4170_v60 = vpop.eup %4169  ;;  %v4890_v57 = vadd.f32 1.0, %v4168_v13  ;;  %1855 = vmatpush.bf16.msra.mxu3 %v3538_v6  ;;  %1830 = vmatpush.bf16.msra.mxu1 %v3518_v0 }
 0x407   :  { %v4172_v36 = vpop.eup %4171  ;;  %v4892_v38 = vadd.f32 1.0, %v4170_v60 }
 0x408   :  { %v4174_v41 = vpop.eup %4173  ;;  %v4894_v44 = vadd.f32 1.0, %v4172_v36  ;;  %4175 = vrcp.f32 %v4890_v57  ;;  %v1538_v50 = vand.u32 2147483647, %v4890_v57  ;;  %v1540_v34 = vand.u32 2147483648, %v4890_v57  ;;  %1843 = vmatpush.bf16.msra.mxu2 %v3522_v33 }
 0x409   :  { %v4897_v20 = vadd.f32 1.0, %v4174_v41  ;;  %4177 = vrcp.f32 %v4892_v38  ;;  %vm1534_vm13 = vweird.f32 %v4890_v57  ;;  %vm1583_vm15 = vweird.f32 %v4892_v38 }
 0x40a   :  { %4179 = vrcp.f32 %v4894_v44  ;;  %vm4913_vm14 = vcmp.eq.f32.partialorder %v1538_v50, 8.507059e+37  ;;  %v1553_v9 = vand.u32 2147483647, %v4894_v44  ;;  %v1541_v16 = vor.u32 1.1754944e-38, %v1540_v34  ;;  %v4006_v50 = vld [vmem:[#allocation11 + $0x28] sm:$0xf0]  ;;  %1831 = vmatpush.bf16.msra.mxu1 %v3506_v48 }
 0x40b   :  { %4181 = vrcp.f32 %v4897_v20  ;;  %vm1549_vm0 = vweird.f32 %v4894_v44  ;;  %v1555_v25 = vand.u32 2147483648, %v4894_v44  ;;  %v1587_v59 = vand.u32 2147483647, %v4892_v38  ;;  %v5013_v48 = vld [vmem:[#allocation3 + $0x1c] ss:$8 sm:$0x7] }
 0x40c   :  { %v1589_v42 = vand.u32 2147483648, %v4892_v38  ;;  %v3526_v36 = vor.u32 %v4009_v14, %v3525_v2  ;;  %vm4944_vm7 = vcmp.eq.f32.partialorder %v1553_v9, 8.507059e+37  ;;  %v1604_v49 = vand.u32 2147483648, %v4897_v20  ;;  %v3501_v9 = vld [vmem:[#allocation11 + $0x8] sm:$0xf] }
 0x40d   :  { %v1556_v27 = vor.u32 1.1754944e-38, %v1555_v25  ;;  %vm1598_vm2 = vweird.f32 %v4897_v20  ;;  %vm1588_vm12 = vcmp.eq.f32.partialorder %v1587_v59, 8.507059e+37 }
 0x40e   :  { %v4905_v31 = vpop.eup %4175  ;;  %1856 = vmatpush.bf16.msra.mxu3 %v3526_v36  ;;  %v1590_v32 = vor.u32 1.1754944e-38, %v1589_v42 }
 0x40f   :  { %v4908_v4 = vpop.eup %4177  ;;  %v1530_v5 = vmul.f32 %v4905_v31, %v4890_v57  ;;  %vm1535_vm1 = vweird.f32 %v4905_v31 }
 0x410   :  { %v4919_v55 = vpop.eup %4179  ;;  %v1579_v19 = vmul.f32 %v4908_v4, %v4892_v38  ;;  %vm1584_vm3 = vweird.f32 %v4908_v4  ;;  %vm1536_vm5 = vmor %vm1534_vm13, %vm1535_vm1  ;;  %v3510_v38 = vor.u32 %v4004_v39, %v3507_v17  ;;  %v1646_v39 = vld [vmem:[%s5527_s8 + $0x4] sm:$0x2] }
 0x411   :  { %v1531_v12 = vsub.f32 1.0, %v1530_v5  ;;  %v1545_v23 = vmul.f32 %v4919_v55, %v4894_v44  ;;  %v4927_v24 = vpop.eup %4181  ;;  %vm1550_vm4 = vweird.f32 %v4919_v55  ;;  %vm4955_vm8 = vmor %vm1583_vm15, %vm1584_vm3 }
 0x412   :  { %v1580_v18 = vsub.f32 1.0, %v1579_v19  ;;  %v1594_v13 = vmul.f32 %v4927_v24, %v4897_v20  ;;  %vm1551_vm9 = vmor %vm1549_vm0, %vm1550_vm4  ;;  %vm1599_vm10 = vweird.f32 %v4927_v24  ;;  %1844 = vmatpush.bf16.msra.mxu2 %v3510_v38 }
 0x413   :  { %v1532_v8 = vmul.f32 %v4905_v31, %v1531_v12  ;;  %v1546_v62 = vsub.f32 1.0, %v1545_v23  ;;  %vm1600_vm11 = vmor %vm1598_vm2, %vm1599_vm10 }
 0x414   :  { %v1581_v60 = vmul.f32 %v4908_v4, %v1580_v18  ;;  %v1595_v43 = vsub.f32 1.0, %v1594_v13 }
 0x415   :  { %v1533_v40 = vadd.f32 %v4905_v31, %v1532_v8  ;;  %v1547_v41 = vmul.f32 %v4919_v55, %v1546_v62 }
 0x416   :  { %v1582_v37 = vadd.f32 %v4908_v4, %v1581_v60  ;;  %v1596_v34 = vmul.f32 %v4927_v24, %v1595_v43 }
 0x417   :  { %v1537_v15 = vsel %vm1536_vm5, %v4905_v31, %v1533_v40  ;;  %v1548_v45 = vadd.f32 %v4919_v55, %v1547_v41  ;;  %v3514_v31 = vor.u32 %v4006_v50, %v3513_v47  ;;  %v5010_v50 = vld [vmem:[#allocation3 + $0x4] ss:$8 sm:$0x7] }
 0x418   :  { %v1542_v1 = vsel %vm4913_vm14, %v1541_v16, %v1537_v15  ;;  %v1597_v5 = vadd.f32 %v4927_v24, %v1596_v34  ;;  %v1586_v11 = vsel %vm4955_vm8, %v4908_v4, %v1582_v37  ;;  %v1602_v16 = vand.u32 2147483647, %v4897_v20 }
 0x419   :  { %v1552_v58 = vsel %vm1551_vm9, %v4919_v55, %v1548_v45  ;;  %v1615_v29 = vmul.f32 %v1542_v1, %v4880_v56  ;;  %v3494_v55 = vor.u32 %v4002_v7, %v3493_v63  ;;  %1857 = vmatpush.bf16.msra.mxu3 %v3514_v31  ;;  %v3498_v20 = vor.u32 %v4001_v3, %v3495_v46 }
 0x41a   :  { %v1557_v44 = vsel %vm4944_vm7, %v1556_v27, %v1552_v58  ;;  %v1601_v22 = vsel %vm1600_vm11, %v4927_v24, %v1597_v5  ;;  %v3502_v4 = vor.u32 %v4003_v10, %v3501_v9  ;;  %v1605_v56 = vor.u32 1.1754944e-38, %v1604_v49 }
 0x41b   :  { %v1616_v19 = vmul.f32 %v1613_v54, %v1557_v44  ;;  %v1621_v6 = vadd.f32 %v1617_v52, %v1615_v29  ;;  %v1591_v54 = vsel %vm1588_vm12, %v1590_v32, %v1586_v11  ;;  %vm1603_vm13 = vcmp.eq.f32.partialorder %v1602_v16, 8.507059e+37  ;;  %1832 = vmatpush.bf16.msra.mxu1 %v3494_v55  ;;  %1845 = vmatpush.bf16.msra.mxu2 %v3498_v20  ;;  %v3679_v11 = vld [vmem:[#allocation11 + $0xa8] sm:$0xf]  ;;  %v4047_v55 = vld [vmem:[#allocation11 + $0xb0] sm:$0xf0] }
 0x41c   :  { %v1606_v61 = vsel %vm1603_vm13, %v1605_v56, %v1601_v22  ;;  %v1608_v35 = vsub.f32 1.0, %v1591_v54  ;;  %vm1641_vm14 = vsmask.f32 7942  ;;  %v1909_v34 = vrot.slane %v5010_v50, 1  ;;  %v4048_v56 = vld [vmem:[#allocation11 + $0xb8] sm:$0xf0] }
 0x41d   :  { %v1622_v12 = vadd.f32 %v1618_v21, %v1616_v19  ;;  %4183 = vtanh.f32 %v1621_v6  ;;  %1858 = vmatpush.bf16.msra.mxu3 %v3502_v4  ;;  %v1609_v52 = vsub.f32 1.0, %v1606_v61  ;;  %vm1642_vm15 = vmand %vm656_vm6, %vm1641_vm14  ;;  %v1910_v63 = vrot.slane %v5013_v48, 1  ;;  %v4046_v19 = vld [vmem:[#allocation11 + $0xac] sm:$0xf]  ;;  %v3681_v6 = vld [vmem:[#allocation11 + $0xb4] sm:$0xf0] }
 0x41e   :  { %v1610_v25 = vmul.f32 %v1608_v35, %v4858_v28  ;;  %v3680_v20 = vor.u32 %v4047_v55, %v3679_v11  ;;  %v3684_v4 = vor.u32 %v4046_v19, %v3681_v6  ;;  %v3645_v11 = vld [vmem:[#allocation11 + $0x6c] sm:$0xf0]  ;;  %v4039_v6 = vld [vmem:[#allocation11 + $0x70] sm:$0xf0] }
 0x41f   :  { %4185 = vtanh.f32 %v1622_v12  ;;  %v1611_v24 = vmul.f32 %v1609_v52, %v4860_v30  ;;  %v1643_v30 = vld [vmem:[%s5527_s8] sm:$0x2] }
 0x420   :  { %v3687_v12 = vld [vmem:[#allocation11 + $0xb0] sm:$0xf]  ;;  %2168 = vmatpush.bf16.msrb.mxu0 %v3680_v20  ;;  %2181 = vmatpush.bf16.msrb.mxu1 %v3684_v4 }
 0x421   :  { %v3688_v35 = vor.u32 %v4048_v56, %v3687_v12  ;;  %v3667_v52 = vld [vmem:[#allocation11 + $0x90] sm:$0xf] }
 0x423   :  { %v4184_v23 = vpop.eup %4183  ;;  %2194 = vmatpush.bf16.msrb.mxu2 %v3688_v35  ;;  %v3633_v35 = vld [vmem:[#allocation11 + $0x54] sm:$0xf0] }
 0x424   :  { %v1625_v2 = vmul.f32 %v4184_v23, %v1591_v54  ;;  %v4044_v23 = vld [vmem:[#allocation11 + $0x98] sm:$0xf0] }
 0x425   :  { %v4186_v14 = vpop.eup %4185 }
 0x426   :  { %v1626_v18 = vmul.f32 %v4186_v14, %v1606_v61  ;;  %v4988_v59 = vadd.f32 %v1625_v2, %v1610_v25  ;;  %v1965_v14 = vrot.slane %v5010_v50, 2 }
 0x428   :  { %v4990_v42 = vadd.f32 %v1626_v18, %v1611_v24  ;;  %v1629_v0 = vpack.c.bf16 %v4988_v59, %v4988_v59  ;;  %v3668_v24 = vor.u32 %v4044_v23, %v3667_v52  ;;  %v4043_v18 = vld [vmem:[#allocation11 + $0x94] sm:$0xf] }
 0x42a   :  { %v1630_v8 = vpack.c.bf16 %v4990_v42, %v4990_v42  ;;  %v1632_v62 = vshll.u32 %v1629_v0, 16  ;;  %v1687_v53 = vunpack.c.l.b16 %v1629_v0  ;;  %v3669_v0 = vld [vmem:[#allocation11 + $0x9c] sm:$0xf0]  ;;  %2169 = vmatpush.bf16.msrb.mxu0 %v3668_v24  ;;  %v3639_v24 = vld [vmem:[#allocation11 + $0x50] sm:$0xf] }
 0x42c   :  { %v1634_v28 = vrot.slane %v1632_v62, 7  ;;  %v1636_v13 = vshll.u32 %v1630_v8, 16  ;;  %v1688_v26 = vunpack.c.l.b16 %v1630_v8  ;;  %v3489_v40 = vunpack.i.l.s16 %v1687_v53  ;;  %v3675_v53 = vld [vmem:[#allocation11 + $0x98] sm:$0xf] }
 0x42e   :  { %v1638_v60 = vrot.slane %v1636_v13, 7  ;;  %v1644_v33 = vsel %vm1642_vm15, %v1634_v28, %v1643_v30  ;;  %v3490_v36 = vunpack.i.l.s16 %v1688_v26  ;;  %v1966_v13 = vrot.slane %v5013_v48, 2 }
 0x42f   :  { %1645 = vst [vmem:[%s5527_s8] sm:$0x2] %v1644_v33  ;;  %v3672_v30 = vor.u32 %v4043_v18, %v3669_v0  ;;  %v3655_v33 = vld [vmem:[#allocation11 + $0x78] sm:$0xf] }
 0x430   :  { %v1647_v17 = vsel %vm1642_vm15, %v1638_v60, %v1646_v39  ;;  %v1693_v41 = vrot.slane %v3490_v36, 7  ;;  %v4045_v60 = vld [vmem:[#allocation11 + $0xa0] sm:$0xf0] }
 0x431   :  { %1648 = vst [vmem:[%s5527_s8 + $0x4] sm:$0x2] %v1647_v17  ;;  %v4041_v36 = vld [vmem:[#allocation11 + $0x80] sm:$0xf0]  ;;  %2182 = vmatpush.bf16.msrb.mxu1 %v3672_v30  ;;  %v4032_v30 = vld [vmem:[#allocation11 + $0x38] sm:$0xf0] }
 0x432   :  { %v1694_v43 = vsel %vm656_vm6, %v1693_v41, %v3489_v40  ;;  %v4040_v41 = vld [vmem:[#allocation11 + $0x7c] sm:$0xf]  ;;  %v4031_v17 = vld [vmem:[#allocation11 + $0x34] sm:$0xf] }
 0x433   :  { %v1695_v47 = vpack.c.b16 %v1694_v43, %v1694_v43  ;;  %v3657_v43 = vld [vmem:[#allocation11 + $0x84] sm:$0xf0] }
 0x435   :  { %1833 = vmatmul.bf16.vlgmr.msra.gmra.mxu1 %v1695_v47  ;;  %1846 = vmatmul.bf16.vlgmr.msra.gmra.mxu2 %v1695_v47 }
 0x436   :  { %1859 = vmatmul.bf16.vlgmr.msra.gmra.mxu3 %v1695_v47 }
 0x4b2   :  { %v1834_v51 = vpop.f32.mrf.mxu1 }
 0x4b3   :  { %v1865_v27 = vrot.slane %v1834_v51, 1  ;;  %v1867_v37 = vadd.f32 %v1834_v51, %v5010_v50 }
 0x4b5   :  { %v1868_v15 = vadd.f32 %v1865_v27, %v5013_v48  ;;  %v3587_v45 = vmul.f32 -1.442695, %v1867_v37 }
 0x4b7   :  { %4187 = vpow2.f32 %v3587_v45  ;;  %v3588_v57 = vmul.f32 -1.442695, %v1868_v15  ;;  %v3663_v15 = vld [vmem:[#allocation11 + $0x80] sm:$0xf]  ;;  %v4042_v45 = vld [vmem:[#allocation11 + $0x88] sm:$0xf0] }
 0x4b8   :  { %v1847_v49 = vpop.f32.mrf.mxu2 }
 0x4b9   :  { %4189 = vpow2.f32 %v3588_v57  ;;  %v1914_v7 = vrot.slane %v1847_v49, 1  ;;  %v1916_v1 = vadd.f32 %v1909_v34, %v1847_v49  ;;  %v5018_v38 = vpop.f32.mrf.mxu3  ;;  %v3676_v34 = vor.u32 %v4045_v60, %v3675_v53 }
 0x4ba   :  { %v1836_v31 = vpop.f32.mrf.mxu1  ;;  %v1961_v28 = vrot.slane %v5018_v38, 1  ;;  %v3656_v49 = vor.u32 %v4041_v36, %v3655_v33 }
 0x4bb   :  { %v1917_v3 = vadd.f32 %v1914_v7, %v1910_v63  ;;  %v3589_v58 = vmul.f32 -1.442695, %v1916_v1  ;;  %v3643_v63 = vld [vmem:[#allocation11 + $0x60] sm:$0xf]  ;;  %v3660_v31 = vor.u32 %v4040_v41, %v3657_v43  ;;  %2195 = vmatpush.bf16.msrb.mxu2 %v3676_v34 }
 0x4bc   :  { %2170 = vmatpush.bf16.msrb.mxu0 %v3656_v49 }
 0x4bd   :  { %v4188_v29 = vpop.eup %4187  ;;  %4191 = vpow2.f32 %v3589_v58  ;;  %v3590_v5 = vmul.f32 -1.442695, %v1917_v3  ;;  %v4038_v3 = vld [vmem:[#allocation11 + $0x68] sm:$0xf0]  ;;  %v4037_v58 = vld [vmem:[#allocation11 + $0x64] sm:$0xf]  ;;  %2183 = vmatpush.bf16.msrb.mxu1 %v3660_v31 }
 0x4be   :  { %v5020_v46 = vadd.f32 1.0, %v4188_v29  ;;  %v3648_v12 = vor.u32 %v4037_v58, %v3645_v11  ;;  %v4029_v31 = vld [vmem:[#allocation11 + $0x20] sm:$0xf0]  ;;  %v3609_v58 = vld [vmem:[#allocation11 + $0x24] sm:$0xf0] }
 0x4bf   :  { %v4190_v9 = vpop.eup %4189  ;;  %4193 = vpow2.f32 %v3590_v5 }
 0x4c0   :  { %v5022_v10 = vadd.f32 1.0, %v4190_v9  ;;  %4195 = vrcp.f32 %v5020_v46  ;;  %v1849_v44 = vpop.f32.mrf.mxu2  ;;  %v1886_v21 = vand.u32 2147483647, %v5020_v46  ;;  %v1888_v61 = vand.u32 2147483648, %v5020_v46 }
 0x4c1   :  { %v1862_v16 = vpop.f32.mrf.mxu3  ;;  %vm1882_vm0 = vweird.f32 %v5020_v46  ;;  %v3664_v9 = vor.u32 %v4042_v45, %v3663_v15  ;;  %v3644_v44 = vor.u32 %v4038_v3, %v3643_v63  ;;  %2184 = vmatpush.bf16.msrb.mxu1 %v3648_v12  ;;  %v4028_v3 = vld [vmem:[#allocation11 + $0x1c] sm:$0xf] }
 0x4c2   :  { %4197 = vrcp.f32 %v5022_v10  ;;  %v1901_v22 = vand.u32 2147483647, %v5022_v10  ;;  %v1903_v2 = vand.u32 2147483648, %v5022_v10  ;;  %vm5046_vm1 = vcmp.eq.f32.partialorder %v1886_v21, 8.507059e+37  ;;  %v3651_v16 = vld [vmem:[#allocation11 + $0x68] sm:$0xf] }
 0x4c3   :  { %v4192_v32 = vpop.eup %4191  ;;  %v1889_v40 = vor.u32 1.1754944e-38, %v1888_v61  ;;  %vm1897_vm3 = vweird.f32 %v5022_v10  ;;  %v3652_v56 = vor.u32 %v4039_v6, %v3651_v16  ;;  %v4034_v61 = vld [vmem:[#allocation11 + $0x4c] sm:$0xf]  ;;  %2196 = vmatpush.bf16.msrb.mxu2 %v3664_v9  ;;  %2171 = vmatpush.bf16.msrb.mxu0 %v3644_v44  ;;  %v3615_v9 = vld [vmem:[#allocation11 + $0x20] sm:$0xf]  ;;  %v3612_v11 = vor.u32 %v4028_v3, %v3609_v58 }
 0x4c4   :  { %v5028_v54 = vadd.f32 1.0, %v4192_v32  ;;  %vm5053_vm4 = vcmp.eq.f32.partialorder %v1901_v22, 8.507059e+37  ;;  %v5057_v37 = vor.u32 1.1754944e-38, %v1903_v2  ;;  %v3631_v32 = vld [vmem:[#allocation11 + $0x48] sm:$0xf]  ;;  %v3636_v53 = vor.u32 %v4034_v61, %v3633_v35 }
 0x4c5   :  { %v4194_v25 = vpop.eup %4193  ;;  %v4035_v22 = vld [vmem:[#allocation11 + $0x50] sm:$0xf0]  ;;  %v4030_v16 = vld [vmem:[#allocation11 + $0x28] sm:$0xf0]  ;;  %v4025_v6 = vld [vmem:[#allocation11 + $0x4] sm:$0xf] }
 0x4c6   :  { %v5033_v8 = vpop.eup %4195  ;;  %v5035_v62 = vadd.f32 1.0, %v4194_v25  ;;  %4199 = vrcp.f32 %v5028_v54  ;;  %vm1931_vm5 = vweird.f32 %v5028_v54  ;;  %v1937_v57 = vand.u32 2147483648, %v5028_v54  ;;  %2185 = vmatpush.bf16.msrb.mxu1 %v3636_v53 }
 0x4c7   :  { %v1878_v26 = vmul.f32 %v5033_v8, %v5020_v46  ;;  %vm1883_vm7 = vweird.f32 %v5033_v8  ;;  %v1935_v5 = vand.u32 2147483647, %v5028_v54  ;;  %v3632_v0 = vor.u32 %v4035_v22, %v3631_v32  ;;  %2197 = vmatpush.bf16.msrb.mxu2 %v3652_v56  ;;  %v3597_v32 = vld [vmem:[#allocation11 + $0xc] sm:$0xf0] }
 0x4c8   :  { %v5042_v39 = vpop.eup %4197  ;;  %4201 = vrcp.f32 %v5035_v62  ;;  %vm1946_vm9 = vweird.f32 %v5035_v62  ;;  %v1952_v4 = vand.u32 2147483648, %v5035_v62  ;;  %vm1884_vm10 = vmor %vm1882_vm0, %vm1883_vm7  ;;  %v3616_v12 = vor.u32 %v4030_v16, %v3615_v9  ;;  %v3781_v16 = vld [vmem:[#allocation11 + $0xa8] sm:$0xf] }
 0x4c9   :  { %v1879_v47 = vsub.f32 1.0, %v1878_v26  ;;  %v1893_v51 = vmul.f32 %v5042_v39, %v5022_v10  ;;  %vm1898_vm8 = vweird.f32 %v5042_v39  ;;  %v3619_v26 = vld [vmem:[#allocation11 + $0x30] sm:$0xf]  ;;  %vm5103_vm13 = vcmp.eq.f32.partialorder %v1935_v5, 8.507059e+37  ;;  %2172 = vmatpush.bf16.msrb.mxu0 %v3632_v0 }
 0x4ca   :  { %vm5088_vm11 = vmor %vm1897_vm3, %vm1898_vm8  ;;  %v1953_v34 = vor.u32 1.1754944e-38, %v1952_v4  ;;  %v3620_v49 = vor.u32 %v4032_v30, %v3619_v26  ;;  %v3600_v35 = vor.u32 %v4025_v6, %v3597_v32  ;;  %vm1986_vm3 = vsmask.f32 2304  ;;  %v1988_v0 = vld [vmem:[%s5527_s8] sm:$0x4] }
 0x4cb   :  { %v1880_v7 = vmul.f32 %v5033_v8, %v1879_v47  ;;  %v1894_v1 = vsub.f32 1.0, %v1893_v51  ;;  %v1938_v47 = vor.u32 1.1754944e-38, %v1937_v57  ;;  %v1950_v51 = vand.u32 2147483647, %v5035_v62  ;;  %v3783_v6 = vld [vmem:[#allocation11 + $0xb4] sm:$0xf0] }
 0x4cc   :  { %v5063_v29 = vpop.eup %4199  ;;  %v3789_v32 = vld [vmem:[#allocation11 + $0xb0] sm:$0xf] }
 0x4cd   :  { %v1927_v55 = vmul.f32 %v5063_v29, %v5028_v54  ;;  %v1881_v19 = vadd.f32 %v5033_v8, %v1880_v7  ;;  %v1895_v21 = vmul.f32 %v5042_v39, %v1894_v1  ;;  %vm1932_vm2 = vweird.f32 %v5063_v29  ;;  %v3607_v7 = vld [vmem:[#allocation11 + $0x18] sm:$0xf]  ;;  %2173 = vmatpush.bf16.msrb.mxu0 %v3620_v49 }
 0x4ce   :  { %v5072_v20 = vpop.eup %4201  ;;  %vm5114_vm14 = vmor %vm1931_vm5, %vm1932_vm2  ;;  %vm1951_vm0 = vcmp.eq.f32.partialorder %v1950_v51, 8.507059e+37  ;;  %v3608_v44 = vor.u32 %v4029_v31, %v3607_v7  ;;  %v5167_v51 = vld [vmem:[#allocation3 + $0x1d] ss:$8 sm:$0x7] }
 0x4cf   :  { %v1928_v52 = vsub.f32 1.0, %v1927_v55  ;;  %v1942_v23 = vmul.f32 %v5072_v20, %v5035_v62  ;;  %v1885_v25 = vsel %vm1884_vm10, %v5033_v8, %v1881_v19  ;;  %v1896_v2 = vadd.f32 %v5042_v39, %v1895_v21  ;;  %v4036_v8 = vld [vmem:[#allocation11 + $0x58] sm:$0xf0]  ;;  %v3627_v62 = vld [vmem:[#allocation11 + $0x38] sm:$0xf] }
 0x4d0   :  { %v1890_v18 = vsel %vm5046_vm1, %v1889_v40, %v1885_v25  ;;  %vm1947_vm12 = vweird.f32 %v5072_v20  ;;  %v3621_v40 = vld [vmem:[#allocation11 + $0x3c] sm:$0xf0]  ;;  %v3640_v54 = vor.u32 %v4036_v8, %v3639_v24  ;;  %v4026_v19 = vld [vmem:[#allocation11 + $0x8] sm:$0xf0]  ;;  %vm1985_vm1 = vcmask 1042434  }
 0x4d1   :  { %v1929_v60 = vmul.f32 %v5063_v29, %v1928_v52  ;;  %v1943_v33 = vsub.f32 1.0, %v1942_v23  ;;  %v1900_v10 = vsel %vm5088_vm11, %v5042_v39, %v1896_v2  ;;  %v1963_v36 = vmul.f32 %v1890_v18, %v5018_v38  ;;  %vm5126_vm15 = vmor %vm1946_vm9, %vm1947_vm12  ;;  %v3595_v55 = vld [vmem:[#allocation11] sm:$0xf]  ;;  %2174 = vmatpush.bf16.msrb.mxu0 %v3608_v44  ;;  %v3603_v52 = vld [vmem:[#allocation11 + $0x8] sm:$0xf] }
 0x4d2   :  { %v1905_v41 = vsel %vm5053_vm4, %v5057_v37, %v1900_v10  ;;  %v3624_v63 = vor.u32 %v4031_v17, %v3621_v40  ;;  %2198 = vmatpush.bf16.msrb.mxu2 %v3640_v54  ;;  %v3596_v61 = vor.u32 %v4026_v19, %v3595_v55  ;;  %v4027_v23 = vld [vmem:[#allocation11 + $0x10] sm:$0xf0]  ;;  %vm1987_vm4 = vmand %vm1985_vm1, %vm1986_vm3 }
 0x4d3   :  { %v1944_v15 = vmul.f32 %v5072_v20, %v1943_v33  ;;  %v1930_v39 = vadd.f32 %v5063_v29, %v1929_v60  ;;  %v1964_v27 = vmul.f32 %v1961_v28, %v1905_v41  ;;  %v1969_v37 = vadd.f32 %v1965_v14, %v1963_v36  ;;  %v4033_v28 = vld [vmem:[#allocation11 + $0x40] sm:$0xf0]  ;;  %v1991_v8 = vld [vmem:[%s5527_s8 + $0x4] sm:$0x4] }
 0x4d4   :  { %v3628_v5 = vor.u32 %v4033_v28, %v3627_v62  ;;  %2186 = vmatpush.bf16.msrb.mxu1 %v3624_v63  ;;  %v4071_v19 = vld [vmem:[#allocation11 + $0xb0] sm:$0xf0] }
 0x4d5   :  { %v1934_v38 = vsel %vm5114_vm14, %v5063_v29, %v1930_v39  ;;  %v1945_v50 = vadd.f32 %v5072_v20, %v1944_v15  ;;  %v1970_v14 = vadd.f32 %v1966_v13, %v1964_v27  ;;  %4203 = vtanh.f32 %v1969_v37  ;;  %2175 = vmatpush.bf16.msrb.mxu0 %v3596_v61 }
 0x4d6   :  { %v1939_v1 = vsel %vm5103_vm13, %v1938_v47, %v1934_v38  ;;  %2199 = vmatpush.bf16.msrb.mxu2 %v3628_v5  ;;  %v5165_v47 = vld [vmem:[#allocation3 + $0x5] ss:$8 sm:$0x7]  ;;  %v2253_v27 = vrot.slane %v5167_v51, 1  ;;  %v2309_v61 = vrot.slane %v5167_v51, 2 }
 0x4d7   :  { %v1949_v29 = vsel %vm5126_vm15, %v5072_v20, %v1945_v50  ;;  %4205 = vtanh.f32 %v1970_v14  ;;  %v1956_v13 = vsub.f32 1.0, %v1939_v1  ;;  %v2252_v15 = vrot.slane %v5165_v47, 1 }
 0x4d8   :  { %v1954_v48 = vsel %vm1951_vm0, %v1953_v34, %v1949_v29  ;;  %2187 = vmatpush.bf16.msrb.mxu1 %v3612_v11 }
 0x4d9   :  { %v1957_v21 = vsub.f32 1.0, %v1954_v48  ;;  %v1958_v20 = vmul.f32 %v1956_v13, %v4988_v59  ;;  %v3604_v59 = vor.u32 %v4027_v23, %v3603_v52  ;;  %v3769_v52 = vld [vmem:[#allocation11 + $0x90] sm:$0xf] }
 0x4da   :  { %2200 = vmatpush.bf16.msrb.mxu2 %v3616_v12 }
 0x4db   :  { %v4204_v22 = vpop.eup %4203  ;;  %v1959_v25 = vmul.f32 %v1957_v21, %v4990_v42  ;;  %v4070_v21 = vld [vmem:[#allocation11 + $0xac] sm:$0xf] }
 0x4dc   :  { %v1973_v4 = vmul.f32 %v4204_v22, %v1939_v1  ;;  %2188 = vmatpush.bf16.msrb.mxu1 %v3600_v35  ;;  %v4072_v22 = vld [vmem:[#allocation11 + $0xb8] sm:$0xf0]  ;;  %v3782_v35 = vor.u32 %v4071_v19, %v3781_v16  ;;  %v4061_v19 = vld [vmem:[#allocation11 + $0x64] sm:$0xf] }
 0x4dd   :  { %v4206_v56 = vpop.eup %4205 }
 0x4de   :  { %v1974_v2 = vmul.f32 %v4206_v56, %v1954_v48  ;;  %v5143_v46 = vadd.f32 %v1973_v4, %v1958_v20  ;;  %2201 = vmatpush.bf16.msrb.mxu2 %v3604_v59  ;;  %v2308_v4 = vrot.slane %v5165_v47, 2  ;;  %v3786_v59 = vor.u32 %v4070_v21, %v3783_v6  ;;  %2516 = vmatpush.bf16.msrb.mxu3 %v3782_v35 }
 0x4e0   :  { %v5145_v24 = vadd.f32 %v1974_v2, %v1959_v25  ;;  %v1977_v18 = vpack.c.bf16 %v5143_v46, %v5143_v46  ;;  %2529 = vmatpush.bf16.msra.mxu0 %v3786_v59 }
 0x4e2   :  { %v1978_v42 = vpack.c.bf16 %v5145_v24, %v5145_v24  ;;  %v1981_v53 = vrot.slane %v1977_v18, 6  ;;  %v2030_v60 = vunpack.c.l.b16 %v1977_v18  ;;  %v3790_v18 = vor.u32 %v4072_v22, %v3789_v32  ;;  %v3747_v32 = vld [vmem:[#allocation11 + $0x6c] sm:$0xf0]  ;;  %v4063_v22 = vld [vmem:[#allocation11 + $0x70] sm:$0xf0] }
 0x4e4   :  { %v1982_v26 = vrot.slane %v1978_v42, 6  ;;  %v1989_v30 = vsel %vm1987_vm4, %v1981_v53, %v1988_v0  ;;  %v2031_v33 = vunpack.c.l.b16 %v1978_v42  ;;  %v3591_v17 = vunpack.i.l.s16 %v2030_v60  ;;  %v4068_v0 = vld [vmem:[#allocation11 + $0x98] sm:$0xf0]  ;;  %v4067_v42 = vld [vmem:[#allocation11 + $0x94] sm:$0xf]  ;;  %2542 = vmatpush.bf16.msra.mxu1 %v3790_v18 }
 0x4e5   :  { %1990 = vst [vmem:[%s5527_s8] sm:$0x4] %v1989_v30  ;;  %v3770_v60 = vor.u32 %v4068_v0, %v3769_v52 }
 0x4e6   :  { %v1992_v10 = vsel %vm1987_vm4, %v1982_v26, %v1991_v8  ;;  %v3592_v36 = vunpack.i.l.s16 %v2031_v33  ;;  %v3771_v33 = vld [vmem:[#allocation11 + $0x9c] sm:$0xf0] }
 0x4e7   :  { %1993 = vst [vmem:[%s5527_s8 + $0x4] sm:$0x4] %v1992_v10  ;;  %v3777_v10 = vld [vmem:[#allocation11 + $0x98] sm:$0xf]  ;;  %2517 = vmatpush.bf16.msrb.mxu3 %v3770_v60 }
 0x4e8   :  { %v2036_v40 = vrot.slane %v3592_v36, 7 }
 0x4ea   :  { %v2037_v41 = vsel %vm656_vm6, %v2036_v40, %v3591_v17 }
 0x4eb   :  { %v2038_v43 = vpack.c.b16 %v2037_v41, %v2037_v41 }
 0x4ed   :  { %2176 = vmatmul.bf16.vlgmr.msrb.gmra.mxu0 %v2038_v43  ;;  %2189 = vmatmul.bf16.vlgmr.msrb.gmra.mxu1 %v2038_v43 }
 0x4ee   :  { %2202 = vmatmul.bf16.vlgmr.msrb.gmra.mxu2 %v2038_v43  ;;  %v3774_v43 = vor.u32 %v4067_v42, %v3771_v33  ;;  %v3750_v42 = vor.u32 %v4061_v19, %v3747_v32  ;;  %v4049_v32 = vld [vmem:[#allocation11 + $0x4] sm:$0xf] }
 0x4f0   :  { %2530 = vmatpush.bf16.msra.mxu0 %v3774_v43  ;;  %v3735_v43 = vld [vmem:[#allocation11 + $0x54] sm:$0xf0] }
 0x56a   :  { %v2177_v39 = vpop.f32.mrf.mxu0  ;;  %v2190_v45 = vpop.f32.mrf.mxu1 }
 0x56b   :  { %v2208_v37 = vrot.slane %v2177_v39, 1  ;;  %v2210_v57 = vadd.f32 %v2177_v39, %v5165_v47  ;;  %v2257_v34 = vrot.slane %v2190_v45, 1  ;;  %v2259_v54 = vadd.f32 %v2252_v15, %v2190_v45  ;;  %v4069_v15 = vld [vmem:[#allocation11 + $0xa0] sm:$0xf0]  ;;  %v3757_v39 = vld [vmem:[#allocation11 + $0x78] sm:$0xf] }
 0x56c   :  { %v3729_v47 = vld [vmem:[#allocation11 + $0x38] sm:$0xf] }
 0x56d   :  { %v2211_v49 = vadd.f32 %v2208_v37, %v5167_v51  ;;  %v3689_v63 = vmul.f32 -1.442695, %v2210_v57  ;;  %v2260_v38 = vadd.f32 %v2257_v34, %v2253_v27  ;;  %v3691_v50 = vmul.f32 -1.442695, %v2259_v54  ;;  %v4065_v34 = vld [vmem:[#allocation11 + $0x80] sm:$0xf0] }
 0x56e   :  { %v3778_v57 = vor.u32 %v4069_v15, %v3777_v10  ;;  %v4064_v54 = vld [vmem:[#allocation11 + $0x7c] sm:$0xf]  ;;  %v3733_v10 = vld [vmem:[#allocation11 + $0x48] sm:$0xf]  ;;  %v3741_v15 = vld [vmem:[#allocation11 + $0x50] sm:$0xf] }
 0x56f   :  { %4207 = vpow2.f32 %v3689_v63  ;;  %v3690_v14 = vmul.f32 -1.442695, %v2211_v49  ;;  %v3692_v62 = vmul.f32 -1.442695, %v2260_v38  ;;  %v3717_v51 = vld [vmem:[#allocation11 + $0x20] sm:$0xf] }
 0x570   :  { %4209 = vpow2.f32 %v3691_v50  ;;  %v3759_v50 = vld [vmem:[#allocation11 + $0x84] sm:$0xf0]  ;;  %2543 = vmatpush.bf16.msra.mxu1 %v3778_v57 }
 0x571   :  { %4211 = vpow2.f32 %v3690_v14  ;;  %v5173_v28 = vpop.f32.mrf.mxu2  ;;  %v3765_v14 = vld [vmem:[#allocation11 + $0x80] sm:$0xf] }
 0x572   :  { %4213 = vpow2.f32 %v3692_v62  ;;  %v2179_v7 = vpop.f32.mrf.mxu0  ;;  %v2192_v1 = vpop.f32.mrf.mxu1  ;;  %v2304_v56 = vrot.slane %v5173_v28, 1 }
 0x573   :  { %v3758_v1 = vor.u32 %v4065_v34, %v3757_v39 }
 0x575   :  { %v4208_v31 = vpop.eup %4207  ;;  %2518 = vmatpush.bf16.msrb.mxu3 %v3758_v1  ;;  %v4053_v1 = vld [vmem:[#allocation11 + $0x20] sm:$0xf0] }
 0x576   :  { %v4210_v3 = vpop.eup %4209  ;;  %v5175_v58 = vadd.f32 1.0, %v4208_v31  ;;  %v4066_v31 = vld [vmem:[#allocation11 + $0x88] sm:$0xf0] }
 0x577   :  { %v4212_v29 = vpop.eup %4211  ;;  %v5177_v48 = vadd.f32 1.0, %v4210_v3  ;;  %v3745_v3 = vld [vmem:[#allocation11 + $0x60] sm:$0xf]  ;;  %v3766_v16 = vor.u32 %v4066_v31, %v3765_v14  ;;  %v4052_v31 = vld [vmem:[#allocation11 + $0x1c] sm:$0xf] }
 0x578   :  { %v4214_v13 = vpop.eup %4213  ;;  %v5179_v5 = vadd.f32 1.0, %v4212_v29  ;;  %4215 = vrcp.f32 %v5175_v58  ;;  %v2229_v44 = vand.u32 2147483647, %v5175_v58  ;;  %v2231_v55 = vand.u32 2147483648, %v5175_v58 }
 0x579   :  { %v5182_v9 = vadd.f32 1.0, %v4214_v13  ;;  %4217 = vrcp.f32 %v5177_v48  ;;  %v2205_v11 = vpop.f32.mrf.mxu2  ;;  %v2280_v20 = vand.u32 2147483648, %v5177_v48  ;;  %vm2225_vm5 = vweird.f32 %v5175_v58  ;;  %2544 = vmatpush.bf16.msra.mxu1 %v3766_v16  ;;  %v3697_v16 = vld [vmem:[#allocation11] sm:$0xf] }
 0x57a   :  { %4219 = vrcp.f32 %v5179_v5  ;;  %v2244_v12 = vand.u32 2147483647, %v5179_v5  ;;  %v5197_v2 = vor.u32 1.1754944e-38, %v2231_v55  ;;  %vm5204_vm7 = vcmp.eq.f32.partialorder %v2229_v44, 8.507059e+37  ;;  %v4062_v55 = vld [vmem:[#allocation11 + $0x68] sm:$0xf0] }
 0x57b   :  { %4221 = vrcp.f32 %v5182_v9  ;;  %v2295_v25 = vand.u32 2147483648, %v5182_v9  ;;  %v2278_v30 = vand.u32 2147483647, %v5177_v48  ;;  %v2246_v40 = vand.u32 2147483648, %v5179_v5 }
 0x57c   :  { %v5214_v41 = vor.u32 1.1754944e-38, %v2280_v20  ;;  %vm5223_vm9 = vcmp.eq.f32.partialorder %v2244_v12, 8.507059e+37  ;;  %v3762_v11 = vor.u32 %v4064_v54, %v3759_v50  ;;  %vm2274_vm12 = vweird.f32 %v5177_v48  ;;  %v3721_v54 = vld [vmem:[#allocation11 + $0x30] sm:$0xf] }
 0x57d   :  { %vm2240_vm13 = vweird.f32 %v5179_v5  ;;  %v2247_v12 = vor.u32 1.1754944e-38, %v2246_v40  ;;  %v3746_v59 = vor.u32 %v4062_v55, %v3745_v3  ;;  %v4058_v40 = vld [vmem:[#allocation11 + $0x4c] sm:$0xf]  ;;  %vm2289_vm3 = vweird.f32 %v5182_v9  ;;  %v3711_v3 = vld [vmem:[#allocation11 + $0x24] sm:$0xf0] }
 0x57e   :  { %v5194_v23 = vpop.eup %4215  ;;  %2531 = vmatpush.bf16.msra.mxu0 %v3762_v11  ;;  %vm2279_vm4 = vcmp.eq.f32.partialorder %v2278_v30, 8.507059e+37  ;;  %v3714_v19 = vor.u32 %v4052_v31, %v3711_v3  ;;  %v4095_v31 = vld [vmem:[#allocation11 + $0xb0] sm:$0xf0] }
 0x57f   :  { %v5199_v53 = vpop.eup %4217  ;;  %v2221_v8 = vmul.f32 %v5194_v23, %v5175_v58  ;;  %vm2226_vm8 = vweird.f32 %v5194_v23  ;;  %v3753_v58 = vld [vmem:[#allocation11 + $0x68] sm:$0xf]  ;;  %2519 = vmatpush.bf16.msrb.mxu3 %v3746_v59 }
 0x580   :  { %v5209_v36 = vpop.eup %4219  ;;  %v2270_v17 = vmul.f32 %v5199_v53, %v5177_v48  ;;  %vm2275_vm10 = vweird.f32 %v5199_v53  ;;  %vm5235_vm11 = vmor %vm2225_vm5, %vm2226_vm8  ;;  %vm2332_vm8 = vsmask.f32 7946 }
 0x581   :  { %v5216_v45 = vpop.eup %4221  ;;  %v2222_v27 = vsub.f32 1.0, %v2221_v8  ;;  %v2236_v37 = vmul.f32 %v5209_v36, %v5179_v5  ;;  %vm2241_vm2 = vweird.f32 %v5209_v36  ;;  %vm5247_vm14 = vmor %vm2274_vm12, %vm2275_vm10  ;;  %v3754_v8 = vor.u32 %v4063_v22, %v3753_v58  ;;  %v3699_v58 = vld [vmem:[#allocation11 + $0xc] sm:$0xf0] }
 0x582   :  { %v2271_v49 = vsub.f32 1.0, %v2270_v17  ;;  %v2285_v63 = vmul.f32 %v5216_v45, %v5182_v9  ;;  %vm5257_vm15 = vmor %vm2240_vm13, %vm2241_vm2  ;;  %vm2290_vm0 = vweird.f32 %v5216_v45  ;;  %v4059_v17 = vld [vmem:[#allocation11 + $0x50] sm:$0xf0]  ;;  %2532 = vmatpush.bf16.msra.mxu0 %v3750_v42 }
 0x583   :  { %v2223_v62 = vmul.f32 %v5194_v23, %v2222_v27  ;;  %v2237_v7 = vsub.f32 1.0, %v2236_v37  ;;  %v2293_v27 = vand.u32 2147483647, %v5182_v9  ;;  %v2296_v37 = vor.u32 1.1754944e-38, %v2295_v25  ;;  %vm5284_vm5 = vmor %vm2289_vm3, %vm2290_vm0  ;;  %2545 = vmatpush.bf16.msra.mxu1 %v3754_v8 }
 0x584   :  { %v2272_v29 = vmul.f32 %v5199_v53, %v2271_v49  ;;  %v2286_v13 = vsub.f32 1.0, %v2285_v63  ;;  %v3734_v30 = vor.u32 %v4059_v17, %v3733_v10  ;;  %v3738_v25 = vor.u32 %v4058_v40, %v3735_v43  ;;  %v4056_v49 = vld [vmem:[#allocation11 + $0x38] sm:$0xf0]  ;;  %v4055_v63 = vld [vmem:[#allocation11 + $0x34] sm:$0xf] }
 0x585   :  { %v2224_v21 = vadd.f32 %v5194_v23, %v2223_v62  ;;  %v2238_v6 = vmul.f32 %v5209_v36, %v2237_v7  ;;  %v3709_v7 = vld [vmem:[#allocation11 + $0x18] sm:$0xf]  ;;  %v2334_v40 = vld [vmem:[%s5527_s8] sm:$0x4] }
 0x586   :  { %v2287_v20 = vmul.f32 %v5216_v45, %v2286_v13  ;;  %v2273_v35 = vadd.f32 %v5199_v53, %v2272_v29  ;;  %2520 = vmatpush.bf16.msrb.mxu3 %v3734_v30  ;;  %2533 = vmatpush.bf16.msra.mxu0 %v3738_v25  ;;  %v3710_v11 = vor.u32 %v4053_v1, %v3709_v7  ;;  %v3883_v1 = vld [vmem:[#allocation11 + $0xa8] sm:$0xf] }
 0x587   :  { %v2228_v18 = vsel %vm5235_vm11, %v5194_v23, %v2224_v21  ;;  %v2239_v5 = vadd.f32 %v5209_v36, %v2238_v6  ;;  %v4050_v6 = vld [vmem:[#allocation11 + $0x8] sm:$0xf0] }
 0x588   :  { %v2233_v60 = vsel %vm5204_vm7, %v5197_v2, %v2228_v18  ;;  %v2277_v33 = vsel %vm5247_vm14, %v5199_v53, %v2273_v35  ;;  %v2288_v23 = vadd.f32 %v5216_v45, %v2287_v20  ;;  %v4060_v53 = vld [vmem:[#allocation11 + $0x58] sm:$0xf0]  ;;  %vm2294_vm7 = vcmp.eq.f32.partialorder %v2293_v27, 8.507059e+37  ;;  %v3705_v20 = vld [vmem:[#allocation11 + $0x8] sm:$0xf] }
 0x589   :  { %v2243_v26 = vsel %vm5257_vm15, %v5209_v36, %v2239_v5  ;;  %v2306_v2 = vmul.f32 %v2233_v60, %v5173_v28  ;;  %v2282_v57 = vsel %vm2279_vm4, %v5214_v41, %v2277_v33  ;;  %v3742_v41 = vor.u32 %v4060_v53, %v3741_v15  ;;  %v2337_v15 = vld [vmem:[%s5527_s8 + $0x4] sm:$0x4]  ;;  %v5329_v36 = vld [vmem:[#allocation3 + $0x6] ss:$8 sm:$0x7] }
 0x58a   :  { %v2248_v39 = vsel %vm5223_vm9, %v2247_v12, %v2243_v26  ;;  %v2292_v9 = vsel %vm5284_vm5, %v5216_v45, %v2288_v23  ;;  %v2299_v50 = vsub.f32 1.0, %v2282_v57  ;;  %v3722_v45 = vor.u32 %v4056_v49, %v3721_v54  ;;  %v4051_v12 = vld [vmem:[#allocation11 + $0x10] sm:$0xf0]  ;;  %vm5308_vm9 = vmand %vm1985_vm1, %vm2332_vm8 }
 0x58b   :  { %v2307_v34 = vmul.f32 %v2304_v56, %v2248_v39  ;;  %v2312_v48 = vadd.f32 %v2308_v4, %v2306_v2  ;;  %v3723_v56 = vld [vmem:[#allocation11 + $0x3c] sm:$0xf0]  ;;  %v4057_v4 = vld [vmem:[#allocation11 + $0x40] sm:$0xf0]  ;;  %v2297_v38 = vsel %vm2294_vm7, %v2296_v37, %v2292_v9  ;;  %2546 = vmatpush.bf16.msra.mxu1 %v3742_v41  ;;  %v3702_v18 = vor.u32 %v4049_v32, %v3699_v58 }
 0x58c   :  { %v3726_v14 = vor.u32 %v4055_v63, %v3723_v56  ;;  %v3730_v62 = vor.u32 %v4057_v4, %v3729_v47  ;;  %v2300_v29 = vsub.f32 1.0, %v2297_v38  ;;  %v2301_v44 = vmul.f32 %v2299_v50, %v5143_v46  ;;  %2521 = vmatpush.bf16.msrb.mxu3 %v3722_v45 }
 0x58d   :  { %v2313_v28 = vadd.f32 %v2309_v61, %v2307_v34  ;;  %4223 = vtanh.f32 %v2312_v48  ;;  %v4054_v61 = vld [vmem:[#allocation11 + $0x28] sm:$0xf0]  ;;  %v3698_v46 = vor.u32 %v4050_v6, %v3697_v16  ;;  %v3706_v0 = vor.u32 %v4051_v12, %v3705_v20  ;;  %v5331_v34 = vld [vmem:[#allocation3 + $0x1e] ss:$8 sm:$0x7] }
 0x58e   :  { %2534 = vmatpush.bf16.msra.mxu0 %v3726_v14  ;;  %v3718_v21 = vor.u32 %v4054_v61, %v3717_v51  ;;  %v2302_v35 = vmul.f32 %v2300_v29, %v5145_v24  ;;  %v2600_v48 = vrot.slane %v5329_v36, 1  ;;  %v2601_v9 = vrot.slane %v5331_v34, 1  ;;  %v4094_v61 = vld [vmem:[#allocation11 + $0xac] sm:$0xf]  ;;  %v3885_v29 = vld [vmem:[#allocation11 + $0xb4] sm:$0xf0] }
 0x58f   :  { %4225 = vtanh.f32 %v2313_v28  ;;  %2547 = vmatpush.bf16.msra.mxu1 %v3730_v62  ;;  %v3884_v51 = vor.u32 %v4095_v31, %v3883_v1  ;;  %v4096_v16 = vld [vmem:[#allocation11 + $0xb8] sm:$0xf0]  ;;  %v3873_v20 = vld [vmem:[#allocation11 + $0x9c] sm:$0xf0]  ;;  %v3879_v12 = vld [vmem:[#allocation11 + $0x98] sm:$0xf] }
 0x590   :  { %2522 = vmatpush.bf16.msrb.mxu3 %v3710_v11  ;;  %v3891_v11 = vld [vmem:[#allocation11 + $0xb0] sm:$0xf]  ;;  %v4092_v6 = vld [vmem:[#allocation11 + $0x98] sm:$0xf0]  ;;  %v3837_v1 = vld [vmem:[#allocation11 + $0x54] sm:$0xf0] }
 0x591   :  { %2859 = vmatpush.bf16.msra.mxu2 %v3884_v51  ;;  %v3892_v32 = vor.u32 %v4096_v16, %v3891_v11  ;;  %v3843_v31 = vld [vmem:[#allocation11 + $0x50] sm:$0xf] }
 0x592   :  { %2535 = vmatpush.bf16.msra.mxu0 %v3714_v19 }
 0x593   :  { %v4224_v13 = vpop.eup %4223  ;;  %2548 = vmatpush.bf16.msra.mxu1 %v3718_v21 }
 0x594   :  { %v2316_v55 = vmul.f32 %v4224_v13, %v2282_v57  ;;  %2523 = vmatpush.bf16.msrb.mxu3 %v3698_v46  ;;  %v4093_v46 = vld [vmem:[#allocation11 + $0xa0] sm:$0xf0] }
 0x595   :  { %v4226_v22 = vpop.eup %4225 }
 0x596   :  { %v2317_v52 = vmul.f32 %v4226_v22, %v2297_v38  ;;  %v5299_v59 = vadd.f32 %v2316_v55, %v2301_v44  ;;  %2536 = vmatpush.bf16.msra.mxu0 %v3702_v18  ;;  %v3888_v44 = vor.u32 %v4094_v61, %v3885_v29  ;;  %v3871_v55 = vld [vmem:[#allocation11 + $0x90] sm:$0xf]  ;;  %v4091_v22 = vld [vmem:[#allocation11 + $0x94] sm:$0xf]  ;;  %v3859_v18 = vld [vmem:[#allocation11 + $0x78] sm:$0xf] }
 0x597   :  { %2549 = vmatpush.bf16.msra.mxu1 %v3706_v0  ;;  %v3872_v58 = vor.u32 %v4092_v6, %v3871_v55  ;;  %v4084_v61 = vld [vmem:[#allocation11 + $0x58] sm:$0xf0]  ;;  %v3823_v29 = vld [vmem:[#allocation11 + $0x30] sm:$0xf]  ;;  %v3825_v6 = vld [vmem:[#allocation11 + $0x3c] sm:$0xf0] }
 0x598   :  { %v5301_v5 = vadd.f32 %v2317_v52, %v2302_v35  ;;  %v2320_v42 = vpack.c.bf16 %v5299_v59, %v5299_v59  ;;  %2872 = vmatpush.bf16.msra.mxu3 %v3888_v44  ;;  %v3876_v52 = vor.u32 %v4091_v22, %v3873_v20 }
 0x599   :  { %2860 = vmatpush.bf16.msra.mxu2 %v3872_v58 }
 0x59a   :  { %v2321_v8 = vpack.c.bf16 %v5301_v5, %v5301_v5  ;;  %v2323_v60 = vshll.u32 %v2320_v42, 16  ;;  %v2378_v10 = vunpack.c.l.b16 %v2320_v42  ;;  %2885 = vmatpush.bf16.msrb.mxu0 %v3892_v32  ;;  %v3880_v42 = vor.u32 %v4093_v46, %v3879_v12  ;;  %v3831_v46 = vld [vmem:[#allocation11 + $0x38] sm:$0xf] }
 0x59c   :  { %v2325_v33 = vrot.slane %v2323_v60, 6  ;;  %v2327_v23 = vshll.u32 %v2321_v8, 16  ;;  %v2379_v17 = vunpack.c.l.b16 %v2321_v8  ;;  %v3693_v39 = vunpack.i.l.s16 %v2378_v10  ;;  %v4089_v8 = vld [vmem:[#allocation11 + $0x80] sm:$0xf0]  ;;  %v4088_v60 = vld [vmem:[#allocation11 + $0x7c] sm:$0xf]  ;;  %2873 = vmatpush.bf16.msra.mxu3 %v3876_v52 }
 0x59e   :  { %v2329_v26 = vrot.slane %v2327_v23, 6  ;;  %v2335_v2 = vsel %vm5308_vm9, %v2325_v33, %v2334_v40  ;;  %v3694_v43 = vunpack.i.l.s16 %v2379_v17  ;;  %v3860_v33 = vor.u32 %v4089_v8, %v3859_v18  ;;  %v3861_v23 = vld [vmem:[#allocation11 + $0x84] sm:$0xf0]  ;;  %v3867_v40 = vld [vmem:[#allocation11 + $0x80] sm:$0xf]  ;;  %2886 = vmatpush.bf16.msrb.mxu0 %v3880_v42 }
 0x59f   :  { %2336 = vst [vmem:[%s5527_s8] sm:$0x4] %v2335_v2  ;;  %v3864_v2 = vor.u32 %v4088_v60, %v3861_v23  ;;  %v4081_v18 = vld [vmem:[#allocation11 + $0x40] sm:$0xf0] }
 0x5a0   :  { %v2338_v53 = vsel %vm5308_vm9, %v2329_v26, %v2337_v15  ;;  %v2384_v27 = vrot.slane %v3694_v43, 7  ;;  %v4090_v43 = vld [vmem:[#allocation11 + $0x88] sm:$0xf0]  ;;  %v3847_v15 = vld [vmem:[#allocation11 + $0x60] sm:$0xf]  ;;  %2861 = vmatpush.bf16.msra.mxu2 %v3860_v33 }
 0x5a1   :  { %2339 = vst [vmem:[%s5527_s8 + $0x4] sm:$0x4] %v2338_v53  ;;  %v4086_v53 = vld [vmem:[#allocation11 + $0x68] sm:$0xf0]  ;;  %2874 = vmatpush.bf16.msra.mxu3 %v3864_v2  ;;  %v4077_v33 = vld [vmem:[#allocation11 + $0x20] sm:$0xf0] }
 0x5a2   :  { %v2385_v37 = vsel %vm656_vm6, %v2384_v27, %v3693_v39  ;;  %v4085_v27 = vld [vmem:[#allocation11 + $0x64] sm:$0xf]  ;;  %v4076_v2 = vld [vmem:[#allocation11 + $0x1c] sm:$0xf] }
 0x5a3   :  { %v2386_v57 = vpack.c.b16 %v2385_v37, %v2385_v37  ;;  %v2656_v37 = vrot.slane %v5329_v36, 2 }
 0x5a5   :  { %2524 = vmatmul.bf16.vlgmr.msrb.gmra.mxu3 %v2386_v57  ;;  %2537 = vmatmul.bf16.vlgmr.msra.gmra.mxu0 %v2386_v57 }
 0x5a6   :  { %2550 = vmatmul.bf16.vlgmr.msra.gmra.mxu1 %v2386_v57  ;;  %v2657_v57 = vrot.slane %v5331_v34, 2 }
 0x622   :  { %v2538_v30 = vpop.f32.mrf.mxu0 }
 0x623   :  { %v2605_v25 = vrot.slane %v2538_v30, 1  ;;  %v2607_v41 = vadd.f32 %v2600_v48, %v2538_v30  ;;  %v5335_v54 = vpop.f32.mrf.mxu1  ;;  %v3849_v48 = vld [vmem:[#allocation11 + $0x6c] sm:$0xf0]  ;;  %v3855_v30 = vld [vmem:[#allocation11 + $0x68] sm:$0xf] }
 0x625   :  { %v2608_v49 = vadd.f32 %v2605_v25, %v2601_v9  ;;  %v3793_v63 = vmul.f32 -1.442695, %v2607_v41  ;;  %v3868_v41 = vor.u32 %v4090_v43, %v3867_v40  ;;  %v3813_v43 = vld [vmem:[#allocation11 + $0x24] sm:$0xf0] }
 0x627   :  { %4227 = vpow2.f32 %v3793_v63  ;;  %v3794_v28 = vmul.f32 -1.442695, %v2608_v49  ;;  %v3848_v49 = vor.u32 %v4086_v53, %v3847_v15  ;;  %v4087_v63 = vld [vmem:[#allocation11 + $0x70] sm:$0xf0]  ;;  %2887 = vmatpush.bf16.msrb.mxu0 %v3868_v41  ;;  %v3832_v41 = vor.u32 %v4081_v18, %v3831_v46 }
 0x628   :  { %v2525_v56 = vpop.f32.mrf.mxu3 }
 0x629   :  { %4229 = vpow2.f32 %v3794_v28  ;;  %v2556_v47 = vrot.slane %v2525_v56, 1  ;;  %v2558_v4 = vadd.f32 %v2525_v56, %v5329_v36  ;;  %v3835_v28 = vld [vmem:[#allocation11 + $0x48] sm:$0xf]  ;;  %2862 = vmatpush.bf16.msra.mxu2 %v3848_v49 }
 0x62a   :  { %v2540_v38 = vpop.f32.mrf.mxu0 }
 0x62b   :  { %v2559_v50 = vadd.f32 %v2556_v47, %v5331_v34  ;;  %v3791_v45 = vmul.f32 -1.442695, %v2558_v4  ;;  %v2553_v14 = vpop.f32.mrf.mxu1  ;;  %v2652_v47 = vrot.slane %v5335_v54, 1  ;;  %v3852_v4 = vor.u32 %v4085_v27, %v3849_v48  ;;  %v4083_v38 = vld [vmem:[#allocation11 + $0x50] sm:$0xf0] }
 0x62d   :  { %v4228_v62 = vpop.eup %4227  ;;  %4231 = vpow2.f32 %v3791_v45  ;;  %v3792_v7 = vmul.f32 -1.442695, %v2559_v50  ;;  %v4082_v50 = vld [vmem:[#allocation11 + $0x4c] sm:$0xf]  ;;  %2875 = vmatpush.bf16.msra.mxu3 %v3852_v4  ;;  %v3816_v4 = vor.u32 %v4076_v2, %v3813_v43 }
 0x62e   :  { %v5339_v3 = vadd.f32 1.0, %v4228_v62  ;;  %v3856_v62 = vor.u32 %v4087_v63, %v3855_v30  ;;  %v3840_v55 = vor.u32 %v4082_v50, %v3837_v1  ;;  %v3819_v63 = vld [vmem:[#allocation11 + $0x20] sm:$0xf]  ;;  %v4073_v1 = vld [vmem:[#allocation11 + $0x4] sm:$0xf] }
 0x62f   :  { %v4230_v13 = vpop.eup %4229  ;;  %4233 = vpow2.f32 %v3792_v7  ;;  %v3836_v7 = vor.u32 %v4083_v38, %v3835_v28  ;;  %v4078_v38 = vld [vmem:[#allocation11 + $0x28] sm:$0xf0]  ;;  %v3799_v50 = vld [vmem:[#allocation11] sm:$0xf] }
 0x630   :  { %v5341_v19 = vadd.f32 1.0, %v4230_v13  ;;  %4235 = vrcp.f32 %v5339_v3  ;;  %v2527_v21 = vpop.f32.mrf.mxu3  ;;  %v2626_v9 = vand.u32 2147483647, %v5339_v3  ;;  %v4080_v13 = vld [vmem:[#allocation11 + $0x38] sm:$0xf0]  ;;  %vm2622_vm1 = vweird.f32 %v5339_v3  ;;  %2888 = vmatpush.bf16.msrb.mxu0 %v3856_v62 }
 0x631   :  { %v2628_v11 = vand.u32 2147483648, %v5339_v3  ;;  %v4079_v21 = vld [vmem:[#allocation11 + $0x34] sm:$0xf]  ;;  %2863 = vmatpush.bf16.msra.mxu2 %v3836_v7  ;;  %v3824_v52 = vor.u32 %v4080_v13, %v3823_v29  ;;  %2876 = vmatpush.bf16.msra.mxu3 %v3840_v55 }
 0x632   :  { %4237 = vrcp.f32 %v5341_v19  ;;  %vm2637_vm2 = vweird.f32 %v5341_v19  ;;  %v3828_v60 = vor.u32 %v4079_v21, %v3825_v6  ;;  %v2643_v40 = vand.u32 2147483648, %v5341_v19 }
 0x633   :  { %v4232_v35 = vpop.eup %4231  ;;  %v2641_v29 = vand.u32 2147483647, %v5341_v19  ;;  %v2629_v21 = vor.u32 1.1754944e-38, %v2628_v11  ;;  %vm2627_vm9 = vcmp.eq.f32.partialorder %v2626_v9, 8.507059e+37 }
 0x634   :  { %v5345_v0 = vadd.f32 1.0, %v4232_v35  ;;  %v3844_v35 = vor.u32 %v4084_v61, %v3843_v31  ;;  %v3801_v31 = vld [vmem:[#allocation11 + $0xc] sm:$0xf0]  ;;  %v2644_v11 = vor.u32 1.1754944e-38, %v2643_v40 }
 0x635   :  { %v4234_v24 = vpop.eup %4233  ;;  %2864 = vmatpush.bf16.msra.mxu2 %v3824_v52  ;;  %2877 = vmatpush.bf16.msra.mxu3 %v3828_v60 }
 0x636   :  { %v5347_v10 = vpop.eup %4235  ;;  %v5349_v17 = vadd.f32 1.0, %v4234_v24  ;;  %4239 = vrcp.f32 %v5345_v0  ;;  %v2577_v14 = vand.u32 2147483647, %v5345_v0  ;;  %v2579_v22 = vand.u32 2147483648, %v5345_v0  ;;  %v3811_v24 = vld [vmem:[#allocation11 + $0x18] sm:$0xf]  ;;  %2889 = vmatpush.bf16.msrb.mxu0 %v3844_v35 }
 0x637   :  { %v2618_v26 = vmul.f32 %v5347_v10, %v5339_v3  ;;  %vm2623_vm10 = vweird.f32 %v5347_v10  ;;  %vm2573_vm12 = vweird.f32 %v5345_v0  ;;  %v3812_v49 = vor.u32 %v4077_v33, %v3811_v24 }
 0x638   :  { %v5354_v39 = vpop.eup %4237  ;;  %4241 = vrcp.f32 %v5349_v17  ;;  %v2592_v12 = vand.u32 2147483647, %v5349_v17  ;;  %vm5390_vm13 = vmor %vm2622_vm1, %vm2623_vm10  ;;  %vm5403_vm0 = vcmp.eq.f32.partialorder %v2577_v14, 8.507059e+37  ;;  %vm2588_vm3 = vweird.f32 %v5349_v17  ;;  %v4074_v14 = vld [vmem:[#allocation11 + $0x8] sm:$0xf0] }
 0x639   :  { %v2633_v25 = vmul.f32 %v5354_v39, %v5341_v19  ;;  %v2619_v56 = vsub.f32 1.0, %v2618_v26  ;;  %v2594_v26 = vand.u32 2147483648, %v5349_v17  ;;  %vm2638_vm4 = vweird.f32 %v5354_v39  ;;  %2865 = vmatpush.bf16.msra.mxu2 %v3812_v49  ;;  %2878 = vmatpush.bf16.msra.mxu3 %v3816_v4 }
 0x63a   :  { %vm2593_vm7 = vcmp.eq.f32.partialorder %v2592_v12, 8.507059e+37  ;;  %2890 = vmatpush.bf16.msrb.mxu0 %v3832_v41  ;;  %v3800_v55 = vor.u32 %v4074_v14, %v3799_v50  ;;  %vm5430_vm8 = vmor %vm2637_vm2, %vm2638_vm4  ;;  %vm2642_vm1 = vcmp.eq.f32.partialorder %v2641_v29, 8.507059e+37  ;;  %vm2676_vm10 = vcmask 1043459   ;;  %v5474_v41 = vld [vmem:[#allocation3 + $0x1f] ss:$8 sm:$0x7] }
 0x63b   :  { %v2634_v16 = vsub.f32 1.0, %v2633_v25  ;;  %v2620_v32 = vmul.f32 %v5347_v10, %v2619_v56  ;;  %v2580_v25 = vor.u32 1.1754944e-38, %v2579_v22  ;;  %v4075_v22 = vld [vmem:[#allocation11 + $0x10] sm:$0xf0]  ;;  %vm2677_vm2 = vsmask.f32 3328 }
 0x63c   :  { %v5363_v45 = vpop.eup %4239  ;;  %v2944_v50 = vrot.slane %v5474_v41, 1 }
 0x63d   :  { %v2569_v51 = vmul.f32 %v5363_v45, %v5345_v0  ;;  %vm2574_vm11 = vweird.f32 %v5363_v45  ;;  %v2635_v23 = vmul.f32 %v5354_v39, %v2634_v16  ;;  %v2621_v15 = vadd.f32 %v5347_v10, %v2620_v32  ;;  %2866 = vmatpush.bf16.msra.mxu2 %v3800_v55 }
 0x63e   :  { %v5368_v44 = vpop.eup %4241  ;;  %vm5399_vm15 = vmor %vm2573_vm12, %vm2574_vm11  ;;  %v3820_v16 = vor.u32 %v4078_v38, %v3819_v63  ;;  %v3804_v32 = vor.u32 %v4073_v1, %v3801_v31 }
 0x63f   :  { %v2570_v58 = vsub.f32 1.0, %v2569_v51  ;;  %v2584_v20 = vmul.f32 %v5368_v44, %v5349_v17  ;;  %vm2589_vm14 = vweird.f32 %v5368_v44  ;;  %v2636_v62 = vadd.f32 %v5354_v39, %v2635_v23  ;;  %vm2678_vm11 = vmand %vm2676_vm10, %vm2677_vm2 }
 0x640   :  { %vm2590_vm5 = vmor %vm2588_vm3, %vm2589_vm14  ;;  %v2625_v17 = vsel %vm5390_vm13, %v5347_v10, %v2621_v15  ;;  %2891 = vmatpush.bf16.msrb.mxu0 %v3820_v16  ;;  %2879 = vmatpush.bf16.msra.mxu3 %v3804_v32 }
 0x641   :  { %v2571_v42 = vmul.f32 %v5363_v45, %v2570_v58  ;;  %v2585_v8 = vsub.f32 1.0, %v2584_v20  ;;  %v3807_v58 = vld [vmem:[#allocation11 + $0x8] sm:$0xf]  ;;  %v2640_v19 = vsel %vm5430_vm8, %v5354_v39, %v2636_v62 }
 0x642   :  { %v3808_v36 = vor.u32 %v4075_v22, %v3807_v58 }
 0x643   :  { %v2572_v27 = vadd.f32 %v5363_v45, %v2571_v42  ;;  %v2586_v48 = vmul.f32 %v5368_v44, %v2585_v8 }
 0x644   :  { %2892 = vmatpush.bf16.msrb.mxu0 %v3808_v36 }
 0x645   :  { %v2576_v28 = vsel %vm5399_vm15, %v5363_v45, %v2572_v27  ;;  %v2587_v56 = vadd.f32 %v5368_v44, %v2586_v48  ;;  %v2595_v45 = vor.u32 1.1754944e-38, %v2594_v26  ;;  %v5471_v48 = vld [vmem:[#allocation3 + $0x7] ss:$8 sm:$0x7] }
 0x646   :  { %v2581_v7 = vsel %vm5403_vm0, %v2580_v25, %v2576_v28 }
 0x647   :  { %v2591_v51 = vsel %vm2590_vm5, %v5368_v44, %v2587_v56  ;;  %v2654_v61 = vmul.f32 %v2581_v7, %v5335_v54  ;;  %v2630_v54 = vsel %vm2627_vm9, %v2629_v21, %v2625_v17  ;;  %v2943_v56 = vrot.slane %v5471_v48, 1 }
 0x648   :  { %v2596_v13 = vsel %vm2593_vm7, %v2595_v45, %v2591_v51 }
 0x649   :  { %v2655_v44 = vmul.f32 %v2652_v47, %v2596_v13  ;;  %v2660_v6 = vadd.f32 %v2656_v37, %v2654_v61  ;;  %v2645_v37 = vsel %vm2642_vm1, %v2644_v11, %v2640_v19  ;;  %v2647_v47 = vsub.f32 1.0, %v2630_v54 }
 0x64a   :  { %v2648_v3 = vsub.f32 1.0, %v2645_v37 }
 0x64b   :  { %v2661_v20 = vadd.f32 %v2657_v57, %v2655_v44  ;;  %4243 = vtanh.f32 %v2660_v6  ;;  %v2649_v12 = vmul.f32 %v2647_v47, %v5299_v59  ;;  %v2679_v59 = vld [vmem:[%s5527_s8] sm:$0x8] }
 0x64c   :  { %v2650_v34 = vmul.f32 %v2648_v3, %v5301_v5  ;;  %v2682_v5 = vld [vmem:[%s5527_s8 + $0x4] sm:$0x8] }
 0x64d   :  { %4245 = vtanh.f32 %v2661_v20 }
 0x651   :  { %v4244_v9 = vpop.eup %4243 }
 0x652   :  { %v2664_v39 = vmul.f32 %v4244_v9, %v2630_v54 }
 0x653   :  { %v4246_v35 = vpop.eup %4245 }
 0x654   :  { %v2665_v57 = vmul.f32 %v4246_v35, %v2645_v37  ;;  %v5447_v52 = vadd.f32 %v2664_v39, %v2649_v12  ;;  %v2999_v37 = vrot.slane %v5471_v48, 2 }
 0x656   :  { %v5449_v46 = vadd.f32 %v2665_v57, %v2650_v34  ;;  %v2668_v18 = vpack.c.bf16 %v5447_v52, %v5447_v52 }
 0x658   :  { %v2669_v42 = vpack.c.bf16 %v5449_v46, %v5449_v46  ;;  %v2672_v8 = vrot.slane %v2668_v18, 5  ;;  %v2721_v33 = vunpack.c.l.b16 %v2668_v18 }
 0x65a   :  { %v2673_v60 = vrot.slane %v2669_v42, 5  ;;  %v2680_v24 = vsel %vm2678_vm11, %v2672_v8, %v2679_v59  ;;  %v2722_v23 = vunpack.c.l.b16 %v2669_v42  ;;  %v3795_v2 = vunpack.i.l.s16 %v2721_v33 }
 0x65b   :  { %2681 = vst [vmem:[%s5527_s8] sm:$0x8] %v2680_v24 }
 0x65c   :  { %v2683_v40 = vsel %vm2678_vm11, %v2673_v60, %v2682_v5  ;;  %v3796_v26 = vunpack.i.l.s16 %v2722_v23 }
 0x65d   :  { %2684 = vst [vmem:[%s5527_s8 + $0x4] sm:$0x8] %v2683_v40 }
 0x65e   :  { %v2727_v43 = vrot.slane %v3796_v26, 7 }
 0x660   :  { %v2728_v15 = vsel %vm656_vm6, %v2727_v43, %v3795_v2 }
 0x661   :  { %v2729_v53 = vpack.c.b16 %v2728_v15, %v2728_v15 }
 0x663   :  { %2867 = vmatmul.bf16.vlgmr.msra.gmra.mxu2 %v2729_v53  ;;  %2880 = vmatmul.bf16.vlgmr.msra.gmra.mxu3 %v2729_v53 }
 0x664   :  { %2893 = vmatmul.bf16.vlgmr.msrb.gmra.mxu0 %v2729_v53 }
 0x6e1   :  { %v5469_v27 = vpop.f32.mrf.mxu0 }
 0x6e2   :  { %v2995_v54 = vrot.slane %v5469_v27, 1 }
 0x6e6   :  { %v2868_v0 = vpop.f32.mrf.mxu2  ;;  %v2881_v38 = vpop.f32.mrf.mxu3 }
 0x6e7   :  { %v2899_v30 = vrot.slane %v2868_v0, 1  ;;  %v2901_v25 = vadd.f32 %v2868_v0, %v5471_v48  ;;  %v2948_v14 = vrot.slane %v2881_v38, 1  ;;  %v2950_v62 = vadd.f32 %v2943_v56, %v2881_v38 }
 0x6e9   :  { %v2902_v49 = vadd.f32 %v2899_v30, %v5474_v41  ;;  %v3893_v63 = vmul.f32 -1.442695, %v2901_v25  ;;  %v2896_v28 = vpop.f32.mrf.mxu0  ;;  %v2951_v7 = vadd.f32 %v2948_v14, %v2944_v50  ;;  %v3895_v45 = vmul.f32 -1.442695, %v2950_v62 }
 0x6eb   :  { %4247 = vpow2.f32 %v3893_v63  ;;  %v3894_v4 = vmul.f32 -1.442695, %v2902_v49  ;;  %v3896_v31 = vmul.f32 -1.442695, %v2951_v7  ;;  %v3000_v63 = vrot.slane %v5474_v41, 2 }
 0x6ed   :  { %4249 = vpow2.f32 %v3894_v4 }
 0x6ee   :  { %v2870_v1 = vpop.f32.mrf.mxu2  ;;  %4251 = vpow2.f32 %v3895_v45  ;;  %v2883_v29 = vpop.f32.mrf.mxu3 }
 0x6ef   :  { %4253 = vpow2.f32 %v3896_v31 }
 0x6f1   :  { %v4248_v17 = vpop.eup %4247 }
 0x6f2   :  { %v2909_v51 = vadd.f32 1.0, %v4248_v17 }
 0x6f3   :  { %v4250_v61 = vpop.eup %4249 }
 0x6f4   :  { %v2910_v13 = vadd.f32 1.0, %v4250_v61  ;;  %4255 = vrcp.f32 %v2909_v51  ;;  %v4252_v16 = vpop.eup %4251  ;;  %v2920_v58 = vand.u32 2147483647, %v2909_v51  ;;  %v2922_v22 = vand.u32 2147483648, %v2909_v51 }
 0x6f5   :  { %v2958_v55 = vadd.f32 1.0, %v4252_v16  ;;  %v4254_v21 = vpop.eup %4253  ;;  %vm2916_vm6 = vweird.f32 %v2909_v51 }
 0x6f6   :  { %4257 = vrcp.f32 %v2910_v13  ;;  %v5479_v10 = vadd.f32 1.0, %v4254_v21  ;;  %v2935_v20 = vand.u32 2147483647, %v2910_v13  ;;  %v2937_v36 = vand.u32 2147483648, %v2910_v13 }
 0x6f7   :  { %4259 = vrcp.f32 %v2958_v55  ;;  %vm5484_vm13 = vcmp.eq.f32.partialorder %v2920_v58, 8.507059e+37  ;;  %v2923_v39 = vor.u32 1.1754944e-38, %v2922_v22  ;;  %vm2931_vm14 = vweird.f32 %v2910_v13 }
 0x6f8   :  { %4261 = vrcp.f32 %v5479_v10  ;;  %vm5488_vm0 = vcmp.eq.f32.partialorder %v2935_v20, 8.507059e+37  ;;  %v2938_v42 = vor.u32 1.1754944e-38, %v2937_v36  ;;  %vm2965_vm4 = vweird.f32 %v2958_v55 }
 0x6f9   :  { %v2969_v33 = vand.u32 2147483647, %v2958_v55  ;;  %v2971_v23 = vand.u32 2147483648, %v2958_v55  ;;  %v2984_v53 = vand.u32 2147483647, %v5479_v10  ;;  %v2986_v48 = vand.u32 2147483648, %v5479_v10 }
 0x6fa   :  { %v4256_v44 = vpop.eup %4255  ;;  %vm2980_vm2 = vweird.f32 %v5479_v10 }
 0x6fb   :  { %v2912_v6 = vmul.f32 %v4256_v44, %v2909_v51  ;;  %vm2917_vm12 = vweird.f32 %v4256_v44  ;;  %v2972_v56 = vor.u32 1.1754944e-38, %v2971_v23  ;;  %vm2970_vm1 = vcmp.eq.f32.partialorder %v2969_v33, 8.507059e+37 }
 0x6fc   :  { %v4258_v32 = vpop.eup %4257  ;;  %vm2918_vm3 = vmor %vm2916_vm6, %vm2917_vm12  ;;  %v2987_v14 = vor.u32 1.1754944e-38, %v2986_v48  ;;  %vm2985_vm6 = vcmp.eq.f32.partialorder %v2984_v53, 8.507059e+37  ;;  %vm3023_vm12 = vsmask.f32 7950 }
 0x6fd   :  { %v2913_v19 = vsub.f32 1.0, %v2912_v6  ;;  %v2927_v11 = vmul.f32 %v4258_v32, %v2910_v13  ;;  %v4260_v47 = vpop.eup %4259  ;;  %vm2932_vm15 = vweird.f32 %v4258_v32 }
 0x6fe   :  { %v2961_v35 = vmul.f32 %v4260_v47, %v2958_v55  ;;  %v4262_v34 = vpop.eup %4261  ;;  %vm2933_vm5 = vmor %vm2931_vm14, %vm2932_vm15  ;;  %vm2966_vm7 = vweird.f32 %v4260_v47 }
 0x6ff   :  { %v2914_v3 = vmul.f32 %v4256_v44, %v2913_v19  ;;  %v2928_v9 = vsub.f32 1.0, %v2927_v11  ;;  %v2976_v5 = vmul.f32 %v4262_v34, %v5479_v10  ;;  %vm2981_vm8 = vweird.f32 %v4262_v34  ;;  %vm2967_vm9 = vmor %vm2965_vm4, %vm2966_vm7 }
 0x700   :  { %v2962_v8 = vsub.f32 1.0, %v2961_v35  ;;  %vm2982_vm11 = vmor %vm2980_vm2, %vm2981_vm8 }
 0x701   :  { %v2915_v57 = vadd.f32 %v4256_v44, %v2914_v3  ;;  %v2929_v18 = vmul.f32 %v4258_v32, %v2928_v9  ;;  %v2977_v2 = vsub.f32 1.0, %v2976_v5 }
 0x702   :  { %v2963_v26 = vmul.f32 %v4260_v47, %v2962_v8 }
 0x703   :  { %v2919_v60 = vsel %vm2918_vm3, %v4256_v44, %v2915_v57  ;;  %v2930_v24 = vadd.f32 %v4258_v32, %v2929_v18  ;;  %v2978_v25 = vmul.f32 %v4262_v34, %v2977_v2 }
 0x704   :  { %v2924_v40 = vsel %vm5484_vm13, %v2923_v39, %v2919_v60  ;;  %v2964_v30 = vadd.f32 %v4260_v47, %v2963_v26  ;;  %vm3024_vm13 = vmand %vm2676_vm10, %vm3023_vm12 }
 0x705   :  { %v2934_v43 = vsel %vm2933_vm5, %v4258_v32, %v2930_v24  ;;  %v2997_v15 = vmul.f32 %v2924_v40, %v5469_v27  ;;  %v2979_v27 = vadd.f32 %v4262_v34, %v2978_v25 }
 0x706   :  { %v2939_v0 = vsel %vm5488_vm0, %v2938_v42, %v2934_v43  ;;  %v2968_v4 = vsel %vm2967_vm9, %v4260_v47, %v2964_v30 }
 0x707   :  { %v2998_v49 = vmul.f32 %v2995_v54, %v2939_v0  ;;  %v3003_v28 = vadd.f32 %v2999_v37, %v2997_v15  ;;  %v2973_v50 = vsel %vm2970_vm1, %v2972_v56, %v2968_v4  ;;  %v2983_v62 = vsel %vm2982_vm11, %v4262_v34, %v2979_v27 }
 0x708   :  { %v2988_v7 = vsel %vm2985_vm6, %v2987_v14, %v2983_v62  ;;  %v2990_v45 = vsub.f32 1.0, %v2973_v50 }
 0x709   :  { %v3004_v38 = vadd.f32 %v3000_v63, %v2998_v49  ;;  %4263 = vtanh.f32 %v3003_v28  ;;  %v2991_v41 = vsub.f32 1.0, %v2988_v7 }
 0x70a   :  { %v2992_v31 = vmul.f32 %v2990_v45, %v5447_v52  ;;  %v3025_v52 = vld [vmem:[%s5527_s8] sm:$0x8] }
 0x70b   :  { %4265 = vtanh.f32 %v3004_v38  ;;  %v2993_v61 = vmul.f32 %v2991_v41, %v5449_v46  ;;  %v3028_v46 = vld [vmem:[%s5527_s8 + $0x4] sm:$0x8] }
 0x70f   :  { %v4264_v1 = vpop.eup %4263 }
 0x710   :  { %v3007_v17 = vmul.f32 %v4264_v1, %v2973_v50 }
 0x711   :  { %v4266_v51 = vpop.eup %4265 }
 0x712   :  { %v3008_v29 = vmul.f32 %v4266_v51, %v2988_v7  ;;  %v3009_v13 = vadd.f32 %v3007_v17, %v2992_v31 }
 0x714   :  { %v3010_v16 = vadd.f32 %v3008_v29, %v2993_v61  ;;  %v3011_v55 = vpack.c.bf16 %v3009_v13, %v3009_v13  ;;  %3033 = vst [vmem:[#allocation1] ss:$9 sm:$0xff] %v3009_v13 }
 0x716   :  { %v3012_v21 = vpack.c.bf16 %v3010_v16, %v3010_v16  ;;  %v3014_v10 = vshll.u32 %v3011_v55, 16  ;;  %3035 = vst [vmem:[#allocation1 + $0x1] ss:$9 sm:$0xff] %v3010_v16 }
 0x718   :  { %v3016_v44 = vrot.slane %v3014_v10, 5  ;;  %v3018_v6 = vshll.u32 %v3012_v21, 16 }
 0x71a   :  { %v3020_v32 = vrot.slane %v3018_v6, 5  ;;  %v3026_v58 = vsel %vm3024_vm13, %v3016_v44, %v3025_v52 }
 0x71b   :  { %3027 = vst [vmem:[%s5527_s8] sm:$0x8] %v3026_v58 }
 0x71c   :  { %v3029_v22 = vsel %vm3024_vm13, %v3020_v32, %v3028_v46 }
 0x71d   :  { %3030 = vst [vmem:[%s5527_s8 + $0x4] sm:$0x8] %v3029_v22  ;;  %v3036_v19 = vld [vmem:[#allocation1] sm:$0xff] }
 0x71e   :  { %3038 = vst [vmem:[#allocation2] sm:$0x3] %v3036_v19 }
 0x71f   :  { %3043 = vsyncpa [#allocation5], 1 }
 0x720   :  { %3044 = vsyncpa [#allocation7], 1 }
 0x721   :  { %3045 = vsyncpa [#allocation10], 1 }

</bundles_post_ra>
